<compile_context>
chip_gen: v7x
topology: tpu7x:2x2x1
jax: 0.10.0
libtpu: 0.0.40
codegen_flags: <defaults>
</compile_context>

<pallas_src>
import math

import jax
import jax.numpy as jnp
from jax.experimental import pallas as pl
from jax.experimental.pallas import tpu as pltpu

EPS = 1e-5          # nn.BatchNorm2d default eps
NEG_SLOPE = 0.01    # nn.LeakyReLU() default negative_slope


# ----------------------------------------------------------------------------
# Fused head kernel: three chained matmuls + f32 (scale, shift, LeakyReLU)
# epilogues.  Refs are 2D (channels, spatial-tile) thanks to pl.Squeezed().
# ----------------------------------------------------------------------------
def _head_kernel(x_ref, w1_ref, sc1_ref, sh1_ref, w2_ref, sc2_ref, sh2_ref,
                 w3_ref, b3_ref, o_ref):
    x = x_ref[...]                               # (Cin, T)
    if x.dtype != jnp.bfloat16:                  # static (trace-time) branch
        x = x.astype(jnp.bfloat16)

    # conv_1 -> BN1 (f32 scale/shift epilogue) -> LeakyReLU
    y = jnp.dot(w1_ref[...], x, preferred_element_type=jnp.float32)   # (512, T)
    y = y * sc1_ref[...] + sh1_ref[...]
    y = jnp.where(y > 0, y, NEG_SLOPE * y)

    # conv_2 -> BN2 -> LeakyReLU
    y = jnp.dot(w2_ref[...], y.astype(jnp.bfloat16),
                preferred_element_type=jnp.float32)                   # (128, T)
    y = y * sc2_ref[...] + sh2_ref[...]
    y = jnp.where(y > 0, y, NEG_SLOPE * y)

    # semantic_output (+ bias), no activation
    y = jnp.dot(w3_ref[...], y.astype(jnp.bfloat16),
                preferred_element_type=jnp.float32)                   # (nc, T)
    y = y + b3_ref[...]

    o_ref[...] = y.astype(o_ref.dtype)


# ----------------------------------------------------------------------------
# Hardware / VMEM heuristics.
# ----------------------------------------------------------------------------
def _vmem_limit_bytes():
    """Per-generation scoped VMEM limit (~75% of physical; v7x has 64 MiB)."""
    try:
        cap = int(pltpu.get_tpu_info().vmem_capacity_bytes)
    except Exception:
        cap = 64 * 1024 * 1024  # conservative fallback (v7x per-TC VMEM)
    return max(16 * 1024 * 1024, (cap * 3) // 4)


def _num_tensorcores():
    """Best-effort TensorCore count per device (v7x=2, v5e/v6e=1)."""
    n = 1
    try:
        info = pltpu.get_tpu_info()
        for attr in ("num_cores", "num_tensorcores", "tensorcores_per_chip",
                     "cores_per_chip"):
            v = getattr(info, attr, None)
            if v:
                n = max(n, int(v))
    except Exception:
        pass
    try:
        v = getattr(jax.devices()[0], "num_cores", None)
        if v:
            n = max(n, int(v))
    except Exception:
        pass
    return n


def _tile_vmem_bytes(t, Cin, c1, c2, nc, x_bytes):
    """Per-step VMEM footprint of the spatial-tile-dependent buffers."""
    x_tiles = 2 * Cin * t * x_bytes              # double-buffered activation tile
    x_cast = Cin * t * 2 if x_bytes != 2 else 0  # in-kernel bf16 copy (f32 path)
    y1 = c1 * t * (4 + 2)                        # f32 result + bf16 recast
    y2 = c2 * t * (4 + 2)
    out = 2 * nc * t * 4                         # double-buffered f32 output tile
    return x_tiles + x_cast + y1 + y2 + out


def _pick_spatial_tile(HW, N, Cin, c1, c2, nc, x_bytes, vmem_limit, num_cores):
    """Largest lane tile fitting the VMEM budget; aim for 4+ steps/TC but never
    shrink below 512 lanes just to add steps; prefer balanced steps on 2-TC."""
    if HW <= 128:
        return HW                                # full row == full dim, legal

    # Grid-invariant weights/vectors (double-buffered by the pipeline) + slack.
    weight_bytes = 2 * ((c1 * Cin + c2 * c1 + nc * c2) * 2         # bf16 weights
                        + (2 * c1 + 2 * c2 + nc) * 128 * 4)        # lane-padded vecs
    budget = vmem_limit - weight_bytes - (4 << 20)

    max_t = min((HW // 128) * 128, 8192)
    cands = [t for t in range(max_t, 127, -128)
             if _tile_vmem_bytes(t, Cin, c1, c2, nc, x_bytes) <= budget]
    if not cands:
        return 128

    def steps(t):
        return N * (-(-HW // t))

    target = 4 * num_cores
    # Pass 1: largest t >= 512 reaching the pipelining target, balanced on 2-TC.
    for t in cands:
        if t < 512:
            break
        s = steps(t)
        if s >= target and (num_cores < 2 or s % num_cores == 0):
            return t
    # Pass 2: relax the balance requirement.
    for t in cands:
        if t < 512:
            break
        if steps(t) >= target:
            return t
    # Pass 3: largest fitting tile; prefer balanced step counts on 2-TC chips.
    if num_cores >= 2:
        for t in cands:
            if steps(t) % num_cores == 0:
                return t
    return cands[0]


# ----------------------------------------------------------------------------
# Parameter prep: raw conv weights in bf16, BN folded into f32 scale/shift.
# ----------------------------------------------------------------------------
def prepare_head_params(params):
    def prep(conv, bn):
        w = conv["w"].T.astype(jnp.bfloat16)                       # (Cout, Cin)
        scale = (bn["gamma"] / jnp.sqrt(bn["var"] + EPS)).astype(jnp.float32)
        shift = (bn["beta"] + (conv["b"] - bn["mean"]) * scale).astype(jnp.float32)
        return w, scale.reshape(-1, 1), shift.reshape(-1, 1)

    w1, sc1, sh1 = prep(params["conv1"], params["bn1"])
    w2, sc2, sh2 = prep(params["conv2"], params["bn2"])
    w3 = params["conv3"]["w"].T.astype(jnp.bfloat16)               # (nc, 128)
    b3 = params["conv3"]["b"].astype(jnp.float32).reshape(-1, 1)
    return w1, sc1, sh1, w2, sc2, sh2, w3, b3


# ----------------------------------------------------------------------------
# Forward wrapper (NCHW in, NCHW out — matches the PyTorch module).
# Accepts f32 or bf16 activations; bf16 is consumed directly (no extra cast).
# ----------------------------------------------------------------------------
def semantic_head_forward(prepared, x_nchw):
    w1, sc1, sh1, w2, sc2, sh2, w3, b3 = prepared
    N, Cin, H, W = x_nchw.shape
    HW = H * W
    c1, c2, nc = w1.shape[0], w2.shape[0], w3.shape[0]

    vmem_limit = _vmem_limit_bytes()
    num_cores = _num_tensorcores()
    x_bytes = x_nchw.dtype.itemsize
    t = _pick_spatial_tile(HW, N, Cin, c1, c2, nc, x_bytes, vmem_limit, num_cores)
    grid = (N, pl.cdiv(HW, t))                 # masked edge tile if HW % t != 0

    x = x_nchw.reshape(N, Cin, HW)             # metadata-only reshape

    out = pl.pallas_call(
        _head_kernel,
        out_shape=jax.ShapeDtypeStruct((N, nc, HW), jnp.float32),
        grid=grid,
        in_specs=[
            pl.BlockSpec((pl.Squeezed(), Cin, t), lambda n, j: (n, 0, j)),  # x
            pl.BlockSpec((c1, Cin), lambda n, j: (0, 0)),   # W1^T (raw conv, bf16)
            pl.BlockSpec((c1, 1), lambda n, j: (0, 0)),     # BN1 scale (f32)
            pl.BlockSpec((c1, 1), lambda n, j: (0, 0)),     # BN1 shift (f32)
            pl.BlockSpec((c2, c1), lambda n, j: (0, 0)),    # W2^T
            pl.BlockSpec((c2, 1), lambda n, j: (0, 0)),     # BN2 scale
            pl.BlockSpec((c2, 1), lambda n, j: (0, 0)),     # BN2 shift
            pl.BlockSpec((nc, c2), lambda n, j: (0, 0)),    # W3^T
            pl.BlockSpec((nc, 1), lambda n, j: (0, 0)),     # bias3
        ],
        out_specs=pl.BlockSpec((pl.Squeezed(), nc, t), lambda n, j: (n, 0, j)),
        compiler_params=pltpu.CompilerParams(
            dimension_semantics=("parallel", "parallel"),
            vmem_limit_bytes=vmem_limit),
    )(x, w1, sc1, sh1, w2, sc2, sh2, w3, b3)

    return out.reshape(N, nc, H, W)


# ----------------------------------------------------------------------------
# Deterministic synthetic parameters mirroring the module's layer shapes.
# ----------------------------------------------------------------------------
def make_params(key, input_channel=1024, num_class=20):
    ks = jax.random.split(key, 8)

    def conv(kw, kb, cin, cout):
        std = 1.0 / math.sqrt(cin)
        return {"w": std * jax.random.normal(kw, (cin, cout), jnp.float32),
                "b": 0.1 * jax.random.normal(kb, (cout,), jnp.float32)}

    def bn(k4, c):
        kg, kb, km, kv = jax.random.split(k4, 4)
        return {"gamma": jax.random.uniform(kg, (c,), jnp.float32, 0.5, 1.5),
                "beta": 0.1 * jax.random.normal(kb, (c,), jnp.float32),
                "mean": 0.1 * jax.random.normal(km, (c,), jnp.float32),
                "var": jax.random.uniform(kv, (c,), jnp.float32, 0.5, 1.5)}

    return {
        "conv1": conv(ks[0], ks[1], input_channel, 512),
        "bn1": bn(ks[2], 512),
        "conv2": conv(ks[3], ks[4], 512, 128),
        "bn2": bn(ks[5], 128),
        "conv3": conv(ks[6], ks[7], 128, num_class),
    }


# ----------------------------------------------------------------------------
# Pure-JAX f32 reference (exact torch semantics: conv+bias, BN, LeakyReLU).
# ----------------------------------------------------------------------------
def forward_ref(params, x):
    def bnorm(y, p):
        scale = p["gamma"] / jnp.sqrt(p["var"] + EPS)
        shift = p["beta"] - p["mean"] * scale
        return y * scale[None, :, None, None] + shift[None, :, None, None]

    def conv1x1(y, p):
        return (jnp.einsum("nchw,cd->ndhw", y, p["w"],
                           preferred_element_type=jnp.float32)
                + p["b"][None, :, None, None])

    y = conv1x1(x, params["conv1"])
    y = bnorm(y, params["bn1"])
    y = jnp.where(y > 0, y, NEG_SLOPE * y)
    y = conv1x1(y, params["conv2"])
    y = bnorm(y, params["bn2"])
    y = jnp.where(y > 0, y, NEG_SLOPE * y)
    return conv1x1(y, params["conv3"])


# ----------------------------------------------------------------------------
if __name__ == "__main__":
    key = jax.random.PRNGKey(0)
    pkey, xkey = jax.random.split(key)

    num_class = 20
    input_channel = 1024                      # module default
    params = make_params(pkey, input_channel=input_channel, num_class=num_class)
    x = jax.random.normal(xkey, (2, input_channel, 16, 16), jnp.float32)  # NCHW

    prepared = prepare_head_params(params)
    fwd = jax.jit(lambda inp: semantic_head_forward(prepared, inp))

    ref = jax.block_until_ready(forward_ref(params, x))
    denom = float(jnp.max(jnp.abs(ref))) + 1e-6

    # f32 activation path (module-default semantics).
    out = jax.block_until_ready(fwd(x))
    assert out.shape == (2, num_class, 16, 16), out.shape
    assert bool(jnp.isfinite(out).all())
    max_abs = float(jnp.max(jnp.abs(out - ref)))
    assert max_abs / denom < 4e-2, (max_abs, denom)   # bf16 matmuls, f32 accum

    # bf16 activation path (producer-emitted bf16; dominant HBM-read halved).
    out_bf = jax.block_until_ready(fwd(x.astype(jnp.bfloat16)))
    assert out_bf.shape == (2, num_class, 16, 16), out_bf.shape
    assert bool(jnp.isfinite(out_bf).all())
    max_abs_bf = float(jnp.max(jnp.abs(out_bf - ref)))
    assert max_abs_bf / denom < 5e-2, (max_abs_bf, denom)

    print("KERNEL_OK")
</pallas_src>

<mosaic_0001>
module attributes {stable_mosaic.version = 11 : i64} {
  func.func @_head_kernel(%arg0: i32, %arg1: i32, %arg2: memref<1x1024x256xf32, #tpu.memory_space<vmem>>, %arg3: memref<512x1024xbf16, #tpu.memory_space<vmem>>, %arg4: memref<512x1xf32, #tpu.memory_space<vmem>>, %arg5: memref<512x1xf32, #tpu.memory_space<vmem>>, %arg6: memref<128x512xbf16, #tpu.memory_space<vmem>>, %arg7: memref<128x1xf32, #tpu.memory_space<vmem>>, %arg8: memref<128x1xf32, #tpu.memory_space<vmem>>, %arg9: memref<20x128xbf16, #tpu.memory_space<vmem>>, %arg10: memref<20x1xf32, #tpu.memory_space<vmem>>, %arg11: memref<1x20x256xf32, #tpu.memory_space<vmem>>) attributes {dimension_semantics = [#tpu.dimension_semantics<parallel>, #tpu.dimension_semantics<parallel>], iteration_bounds = array<i64: 2, 1>, scalar_prefetch = 0 : i64, scratch_operands = 0 : i64, tpu.core_type = #tpu.core_type<tc>, window_params = [{transform_indices = @transform_0, window_bounds = array<i64: 1, 1024, 256>}, {pipeline_mode = #tpu.pipeline_mode<synchronous>, transform_indices = @transform_1, window_bounds = array<i64: 512, 1024>}, {pipeline_mode = #tpu.pipeline_mode<synchronous>, transform_indices = @transform_2, window_bounds = array<i64: 512, 1>}, {pipeline_mode = #tpu.pipeline_mode<synchronous>, transform_indices = @transform_3, window_bounds = array<i64: 512, 1>}, {pipeline_mode = #tpu.pipeline_mode<synchronous>, transform_indices = @transform_4, window_bounds = array<i64: 128, 512>}, {pipeline_mode = #tpu.pipeline_mode<synchronous>, transform_indices = @transform_5, window_bounds = array<i64: 128, 1>}, {pipeline_mode = #tpu.pipeline_mode<synchronous>, transform_indices = @transform_6, window_bounds = array<i64: 128, 1>}, {pipeline_mode = #tpu.pipeline_mode<synchronous>, transform_indices = @transform_7, window_bounds = array<i64: 20, 128>}, {pipeline_mode = #tpu.pipeline_mode<synchronous>, transform_indices = @transform_8, window_bounds = array<i64: 20, 1>}, {transform_indices = @transform_9, window_bounds = array<i64: 1, 20, 256>}]} {
    %c0 = arith.constant 0 : index
    %c0_0 = arith.constant 0 : index
    %c0_1 = arith.constant 0 : index
    %0 = vector.load %arg2[%c0, %c0_0, %c0_1] : memref<1x1024x256xf32, #tpu.memory_space<vmem>>, vector<1x1024x256xf32>
    %1 = vector.shape_cast %0 : vector<1x1024x256xf32> to vector<1024x256xf32>
    %2 = arith.truncf %1 : vector<1024x256xf32> to vector<1024x256xbf16>
    %c0_2 = arith.constant 0 : index
    %c0_3 = arith.constant 0 : index
    %3 = vector.load %arg3[%c0_2, %c0_3] : memref<512x1024xbf16, #tpu.memory_space<vmem>>, vector<512x1024xbf16>
    %cst = arith.constant dense<0.000000e+00> : vector<512x256xf32>
    %4 = tpu.matmul %3, %2, %cst {dimension_numbers = #tpu.dot_dimension_numbers<[1], [0], [0], [1], [0, 0, 1, 1], [], []>} : vector<512x1024xbf16>, vector<1024x256xbf16>, vector<512x256xf32> -> vector<512x256xf32>
    %c0_4 = arith.constant 0 : index
    %c0_5 = arith.constant 0 : index
    %5 = vector.load %arg4[%c0_4, %c0_5] : memref<512x1xf32, #tpu.memory_space<vmem>>, vector<512x1xf32>
    %6 = vector.broadcast %5 : vector<512x1xf32> to vector<512x256xf32>
    %7 = arith.mulf %4, %6 : vector<512x256xf32>
    %c0_6 = arith.constant 0 : index
    %c0_7 = arith.constant 0 : index
    %8 = vector.load %arg5[%c0_6, %c0_7] : memref<512x1xf32, #tpu.memory_space<vmem>>, vector<512x1xf32>
    %9 = vector.broadcast %8 : vector<512x1xf32> to vector<512x256xf32>
    %10 = arith.addf %7, %9 : vector<512x256xf32>
    %cst_8 = arith.constant 0.000000e+00 : f32
    %11 = vector.broadcast %cst_8 : f32 to vector<512x256xf32>
    %12 = arith.cmpf ogt, %10, %11 : vector<512x256xf32>
    %cst_9 = arith.constant 0.00999999977 : f32
    %13 = vector.broadcast %cst_9 : f32 to vector<512x256xf32>
    %14 = arith.mulf %13, %10 : vector<512x256xf32>
    %15 = arith.select %12, %10, %14 : vector<512x256xi1>, vector<512x256xf32>
    %c0_10 = arith.constant 0 : index
    %c0_11 = arith.constant 0 : index
    %16 = vector.load %arg6[%c0_10, %c0_11] : memref<128x512xbf16, #tpu.memory_space<vmem>>, vector<128x512xbf16>
    %17 = arith.truncf %15 : vector<512x256xf32> to vector<512x256xbf16>
    %cst_12 = arith.constant dense<0.000000e+00> : vector<128x256xf32>
    %18 = tpu.matmul %16, %17, %cst_12 {dimension_numbers = #tpu.dot_dimension_numbers<[1], [0], [0], [1], [0, 0, 1, 1], [], []>} : vector<128x512xbf16>, vector<512x256xbf16>, vector<128x256xf32> -> vector<128x256xf32>
    %c0_13 = arith.constant 0 : index
    %c0_14 = arith.constant 0 : index
    %19 = vector.load %arg7[%c0_13, %c0_14] : memref<128x1xf32, #tpu.memory_space<vmem>>, vector<128x1xf32>
    %20 = vector.broadcast %19 : vector<128x1xf32> to vector<128x256xf32>
    %21 = arith.mulf %18, %20 : vector<128x256xf32>
    %c0_15 = arith.constant 0 : index
    %c0_16 = arith.constant 0 : index
    %22 = vector.load %arg8[%c0_15, %c0_16] : memref<128x1xf32, #tpu.memory_space<vmem>>, vector<128x1xf32>
    %23 = vector.broadcast %22 : vector<128x1xf32> to vector<128x256xf32>
    %24 = arith.addf %21, %23 : vector<128x256xf32>
    %cst_17 = arith.constant 0.000000e+00 : f32
    %25 = vector.broadcast %cst_17 : f32 to vector<128x256xf32>
    %26 = arith.cmpf ogt, %24, %25 : vector<128x256xf32>
    %cst_18 = arith.constant 0.00999999977 : f32
    %27 = vector.broadcast %cst_18 : f32 to vector<128x256xf32>
    %28 = arith.mulf %27, %24 : vector<128x256xf32>
    %29 = arith.select %26, %24, %28 : vector<128x256xi1>, vector<128x256xf32>
    %c0_19 = arith.constant 0 : index
    %c0_20 = arith.constant 0 : index
    %30 = vector.load %arg9[%c0_19, %c0_20] : memref<20x128xbf16, #tpu.memory_space<vmem>>, vector<20x128xbf16>
    %31 = arith.truncf %29 : vector<128x256xf32> to vector<128x256xbf16>
    %cst_21 = arith.constant dense<0.000000e+00> : vector<20x256xf32>
    %32 = tpu.matmul %30, %31, %cst_21 {dimension_numbers = #tpu.dot_dimension_numbers<[1], [0], [0], [1], [0, 0, 1, 1], [], []>} : vector<20x128xbf16>, vector<128x256xbf16>, vector<20x256xf32> -> vector<20x256xf32>
    %c0_22 = arith.constant 0 : index
    %c0_23 = arith.constant 0 : index
    %33 = vector.load %arg10[%c0_22, %c0_23] : memref<20x1xf32, #tpu.memory_space<vmem>>, vector<20x1xf32>
    %34 = vector.broadcast %33 : vector<20x1xf32> to vector<20x256xf32>
    %35 = arith.addf %32, %34 : vector<20x256xf32>
    %c0_24 = arith.constant 0 : index
    %c0_25 = arith.constant 0 : index
    %c0_26 = arith.constant 0 : index
    %36 = vector.load %arg11[%c0_24, %c0_25, %c0_26] : memref<1x20x256xf32, #tpu.memory_space<vmem>>, vector<1x20x256xf32>
    %37 = vector.shape_cast %36 : vector<1x20x256xf32> to vector<20x256xf32>
    %38 = vector.shape_cast %35 : vector<20x256xf32> to vector<1x20x256xf32>
    tpu.vector_store %arg11[%c0_24, %c0_25, %c0_26], %38 {strides = array<i32>} : memref<1x20x256xf32, #tpu.memory_space<vmem>>, vector<1x20x256xf32>,
    return
  }
  func.func @transform_0(%arg0: i32, %arg1: i32) -> (i32, i32, i32) {
    %c0_i32 = arith.constant 0 : i32
    %c0_i32_0 = arith.constant 0 : i32
    return %arg0, %c0_i32, %arg1 : i32, i32, i32
  }
  func.func @transform_1(%arg0: i32, %arg1: i32) -> (i32, i32) {
    %c0_i32 = arith.constant 0 : i32
    %c0_i32_0 = arith.constant 0 : i32
    %c0_i32_1 = arith.constant 0 : i32
    return %c0_i32, %c0_i32_0 : i32, i32
  }
  func.func @transform_2(%arg0: i32, %arg1: i32) -> (i32, i32) {
    %c0_i32 = arith.constant 0 : i32
    %c0_i32_0 = arith.constant 0 : i32
    %c0_i32_1 = arith.constant 0 : i32
    return %c0_i32, %c0_i32_0 : i32, i32
  }
  func.func @transform_3(%arg0: i32, %arg1: i32) -> (i32, i32) {
    %c0_i32 = arith.constant 0 : i32
    %c0_i32_0 = arith.constant 0 : i32
    %c0_i32_1 = arith.constant 0 : i32
    return %c0_i32, %c0_i32_0 : i32, i32
  }
  func.func @transform_4(%arg0: i32, %arg1: i32) -> (i32, i32) {
    %c0_i32 = arith.constant 0 : i32
    %c0_i32_0 = arith.constant 0 : i32
    %c0_i32_1 = arith.constant 0 : i32
    return %c0_i32, %c0_i32_0 : i32, i32
  }
  func.func @transform_5(%arg0: i32, %arg1: i32) -> (i32, i32) {
    %c0_i32 = arith.constant 0 : i32
    %c0_i32_0 = arith.constant 0 : i32
    %c0_i32_1 = arith.constant 0 : i32
    return %c0_i32, %c0_i32_0 : i32, i32
  }
  func.func @transform_6(%arg0: i32, %arg1: i32) -> (i32, i32) {
    %c0_i32 = arith.constant 0 : i32
    %c0_i32_0 = arith.constant 0 : i32
    %c0_i32_1 = arith.constant 0 : i32
    return %c0_i32, %c0_i32_0 : i32, i32
  }
  func.func @transform_7(%arg0: i32, %arg1: i32) -> (i32, i32) {
    %c0_i32 = arith.constant 0 : i32
    %c0_i32_0 = arith.constant 0 : i32
    %c0_i32_1 = arith.constant 0 : i32
    return %c0_i32, %c0_i32_0 : i32, i32
  }
  func.func @transform_8(%arg0: i32, %arg1: i32) -> (i32, i32) {
    %c0_i32 = arith.constant 0 : i32
    %c0_i32_0 = arith.constant 0 : i32
    %c0_i32_1 = arith.constant 0 : i32
    return %c0_i32, %c0_i32_0 : i32, i32
  }
  func.func @transform_9(%arg0: i32, %arg1: i32) -> (i32, i32, i32) {
    %c0_i32 = arith.constant 0 : i32
    %c0_i32_0 = arith.constant 0 : i32
    return %arg0, %c0_i32, %arg1 : i32, i32, i32
  }
}

</mosaic_0001>

<bundles_post_ra>
// kernel: _lambda_.1
= control target key start
LH: loop header
LB: loop body
LE: loop exit
PB: predicated region body
PF: predicated region fallthrough
CT: control target
= control target key end

     0   :  { %s7040_s30 = smov 0   ;;  %s7042_s10 = smov 0   ;;  %s9947_s0 = inlined_call_operand.vmem [shape: f32[2,1024,256], index: 0, kind: input, shape index: {}]   ;;  %s9948_s1 = inlined_call_operand.vmem [shape: bf16[512,1024], index: 1, kind: input, shape index: {}]   ;;  %s9949_s2 = inlined_call_operand.vmem [shape: f32[512,1], index: 2, kind: input, shape index: {}]   ;;  %s9950_s3 = inlined_call_operand.vmem [shape: f32[512,1], index: 3, kind: input, shape index: {}]   ;;  %s9951_s4 = inlined_call_operand.vmem [shape: bf16[128,512], index: 4, kind: input, shape index: {}]   ;;  %s9952_s5 = inlined_call_operand.vmem [shape: f32[128,1], index: 5, kind: input, shape index: {}]   ;;  %s9953_s6 = inlined_call_operand.vmem [shape: f32[128,1], index: 6, kind: input, shape index: {}]   ;;  %s9954_s7 = inlined_call_operand.vmem [shape: bf16[20,128], index: 7, kind: input, shape index: {}]   ;;  %s9955_s8 = inlined_call_operand.vmem [shape: f32[20,1], index: 8, kind: input, shape index: {}]   ;;  %s9956_s9 = inlined_call_operand.vmem [shape: f32[2,20,256], index: 9, kind: output, shape index: {}]  }
   0x1   :  { %s7044_s11 = smov 0  }
   0x2 LB: > { %s31_s12 = sadd.s32 1, %s6983_s10  ;;  %p6142_p0 = scmp.ge.s32.totalorder %s6987_s11, 1  ;;  %s6987_s11 = sphi %s7044_s11, %s19_s11   ;;  %s6983_s10 = sphi %s7042_s10, %s10269_s10   ;;  %s6979_s30 = sphi %s7040_s30, %s10268_s30  }
   0x3   : > { %p33_p1 = scmp.ge.s32.totalorder %s31_s12, 2  ;;  %p308_p2 = scmp.lt.s32.totalorder %s6987_s11, 3 }
   0x5   : > { %s10271_s12 = smov (%p33_p1, %s31_s12), 0  ;;  %p309_p3 = pnand %p6142_p0, %p308_p2 }
   0x7   : > { %312 = sbr.rel (%p309_p3) target bundleno = 1401 (0x579), region = 56 }
   0xe   : > { %p353_p4 = scmp.lt.s32.totalorder %s6979_s30, 1  ;;  %v7061_v0 = vld [vmem:[%s9948_s1] sm:$0xff]  ;;  %v7071_v2 = vld [vmem:[%s9948_s1 + $0x8] sm:$0xff] }
   0xf   : > { %v7066_v1 = vld [vmem:[%s9948_s1 + $0x20] sm:$0xff]  ;;  %v7080_v5 = vld [vmem:[%s9948_s1 + $0x28] sm:$0xff] }
  0x10   : > { %v6146_v3 = vcombine.low %v7061_v0, %v7066_v1  ;;  %v6147_v4 = vcombine.high %v7061_v0, %v7066_v1  ;;  %s10273_s30 = smov (!%p353_p4, %s6979_s30), 1  ;;  %v6148_v6 = vcombine.low %v7071_v2, %v7080_v5  ;;  %v6149_v7 = vcombine.high %v7071_v2, %v7080_v5  ;;  %v777_v0 = vld [vmem:[%s9948_s1 + $0xa0] sm:$0xff]  ;;  %v774_v1 = vld [vmem:[%s9948_s1 + $0x88] sm:$0xff] }
  0x11   : > { %s6438_s21 = sshll.u32 %s10273_s30, 11  ;;  %s6887_s28 = smul.u32 48, %s10273_s30 }
  0x12   : > { %2325 = vmatprep.mubr.bf16.mxu1 %v6147_v4  ;;  %2678 = vmatprep.mubr.bf16.mxu0 %v6149_v7  ;;  %s7092_s24 = scalar_lea.vmem %s9947_s0, %s6438_s21 }
  0x13   : > { %v374_v8 = vld [vmem:[%s7092_s24 + $0x8] sm:$0xff]  ;;  %v376_v9 = vld [vmem:[%s7092_s24 + $0x18] sm:$0xff]  ;;  %v373_v13 = vld [vmem:[%s7092_s24] sm:$0xff]  ;;  %s370_s14 = scalar_lea.vmem %s9956_s9, %s6887_s28 }
  0x14   : > { %v438_v10 = vld [vmem:[%s7092_s24 + $0x208] sm:$0xff]  ;;  %v630_v11 = vpack.c.bf16 %v376_v9, %v374_v8  ;;  %v440_v12 = vld [vmem:[%s7092_s24 + $0x218] sm:$0xff]  ;;  %v375_v14 = vld [vmem:[%s7092_s24 + $0x10] sm:$0xff] }
  0x15   : > { %v7100_v15 = vpack.c.bf16 %v440_v12, %v438_v10  ;;  %v629_v16 = vpack.c.bf16 %v375_v14, %v373_v13  ;;  %v437_v17 = vld [vmem:[%s7092_s24 + $0x200] sm:$0xff]  ;;  %v439_v18 = vld [vmem:[%s7092_s24 + $0x210] sm:$0xff]  ;;  %v378_v19 = vld [vmem:[%s7092_s24 + $0x28] sm:$0xff] }
  0x16   : > { %2293 = vmatprep.subr.bf16.mxu1 %v630_v11  ;;  %v7105_v20 = vpack.c.bf16 %v439_v18, %v437_v17  ;;  %v380_v21 = vld [vmem:[%s7092_s24 + $0x38] sm:$0xff]  ;;  %v442_v22 = vld [vmem:[%s7092_s24 + $0x228] sm:$0xff]  ;;  %v377_v26 = vld [vmem:[%s7092_s24 + $0x20] sm:$0xff] }
  0x17   : > { %v444_v23 = vld [vmem:[%s7092_s24 + $0x238] sm:$0xff]  ;;  %2646 = vmatprep.subr.bf16.mxu0 %v7100_v15  ;;  %2294 = vmatpush1.bf16.msra.mxu1 %v629_v16  ;;  %v632_v24 = vpack.c.bf16 %v380_v21, %v378_v19  ;;  %v379_v27 = vld [vmem:[%s7092_s24 + $0x30] sm:$0xff]  ;;  %v441_v28 = vld [vmem:[%s7092_s24 + $0x220] sm:$0xff] }
  0x18   : > { %v7111_v25 = vpack.c.bf16 %v444_v23, %v442_v22  ;;  %2647 = vmatpush1.bf16.msra.mxu0 %v7105_v20  ;;  %v631_v29 = vpack.c.bf16 %v379_v27, %v377_v26  ;;  %v443_v30 = vld [vmem:[%s7092_s24 + $0x230] sm:$0xff]  ;;  %v382_v31 = vld [vmem:[%s7092_s24 + $0x48] sm:$0xff]  ;;  %v384_v32 = vld [vmem:[%s7092_s24 + $0x58] sm:$0xff] }
  0x19   : > { %2295 = vmatprep.subr.bf16.mxu1 %v632_v24  ;;  %v7121_v33 = vpack.c.bf16 %v443_v30, %v441_v28  ;;  %v634_v34 = vpack.c.bf16 %v384_v32, %v382_v31  ;;  %v446_v35 = vld [vmem:[%s7092_s24 + $0x248] sm:$0xff]  ;;  %v448_v36 = vld [vmem:[%s7092_s24 + $0x258] sm:$0xff]  ;;  %v381_v37 = vld [vmem:[%s7092_s24 + $0x40] sm:$0xff] }
  0x1a   : > { %2648 = vmatprep.subr.bf16.mxu0 %v7111_v25  ;;  %v7126_v38 = vpack.c.bf16 %v448_v36, %v446_v35  ;;  %v383_v39 = vld [vmem:[%s7092_s24 + $0x50] sm:$0xff]  ;;  %v445_v40 = vld [vmem:[%s7092_s24 + $0x240] sm:$0xff]  ;;  %v386_v43 = vld [vmem:[%s7092_s24 + $0x68] sm:$0xff] }
  0x1b   : > { %v447_v41 = vld [vmem:[%s7092_s24 + $0x250] sm:$0xff]  ;;  %2296 = vmatpush1.bf16.msra.mxu1 %v631_v29  ;;  %v633_v42 = vpack.c.bf16 %v383_v39, %v381_v37  ;;  %v388_v44 = vld [vmem:[%s7092_s24 + $0x78] sm:$0xff]  ;;  %v450_v45 = vld [vmem:[%s7092_s24 + $0x268] sm:$0xff] }
  0x1c   : > { %2649 = vmatpush1.bf16.msra.mxu0 %v7121_v33  ;;  %2297 = vmatprep.subr.bf16.mxu1 %v634_v34  ;;  %v7135_v46 = vpack.c.bf16 %v447_v41, %v445_v40  ;;  %v636_v47 = vpack.c.bf16 %v388_v44, %v386_v43  ;;  %v452_v48 = vld [vmem:[%s7092_s24 + $0x278] sm:$0xff]  ;;  %v385_v49 = vld [vmem:[%s7092_s24 + $0x60] sm:$0xff]  ;;  %v387_v50 = vld [vmem:[%s7092_s24 + $0x70] sm:$0xff] }
  0x1d   : > { %2650 = vmatprep.subr.bf16.mxu0 %v7126_v38  ;;  %v7141_v51 = vpack.c.bf16 %v452_v48, %v450_v45  ;;  %v449_v52 = vld [vmem:[%s7092_s24 + $0x260] sm:$0xff]  ;;  %v451_v53 = vld [vmem:[%s7092_s24 + $0x270] sm:$0xff]  ;;  %v390_v54 = vld [vmem:[%s7092_s24 + $0x88] sm:$0xff]  ;;  %v635_v58 = vpack.c.bf16 %v387_v50, %v385_v49 }
  0x1e   : > { %v392_v55 = vld [vmem:[%s7092_s24 + $0x98] sm:$0xff]  ;;  %v454_v56 = vld [vmem:[%s7092_s24 + $0x288] sm:$0xff]  ;;  %v7150_v59 = vpack.c.bf16 %v451_v53, %v449_v52  ;;  %v389_v61 = vld [vmem:[%s7092_s24 + $0x80] sm:$0xff] }
  0x1f   : > { %v456_v57 = vld [vmem:[%s7092_s24 + $0x298] sm:$0xff]  ;;  %2298 = vmatpush1.bf16.msra.mxu1 %v633_v42  ;;  %v638_v60 = vpack.c.bf16 %v392_v55, %v390_v54  ;;  %v391_v62 = vld [vmem:[%s7092_s24 + $0x90] sm:$0xff]  ;;  %v453_v63 = vld [vmem:[%s7092_s24 + $0x280] sm:$0xff] }
  0x20   : > { %2651 = vmatpush1.bf16.msra.mxu0 %v7135_v46  ;;  %2299 = vmatprep.subr.bf16.mxu1 %v636_v47  ;;  %v7156_v4 = vpack.c.bf16 %v456_v57, %v454_v56  ;;  %v455_v7 = vld [vmem:[%s7092_s24 + $0x290] sm:$0xff]  ;;  %v394_v8 = vld [vmem:[%s7092_s24 + $0xa8] sm:$0xff]  ;;  %v396_v9 = vld [vmem:[%s7092_s24 + $0xb8] sm:$0xff]  ;;  %v637_v12 = vpack.c.bf16 %v391_v62, %v389_v61 }
  0x21   : > { %2652 = vmatprep.subr.bf16.mxu0 %v7141_v51  ;;  %v458_v10 = vld [vmem:[%s7092_s24 + $0x2a8] sm:$0xff]  ;;  %v460_v11 = vld [vmem:[%s7092_s24 + $0x2b8] sm:$0xff]  ;;  %v7164_v13 = vpack.c.bf16 %v455_v7, %v453_v63  ;;  %v640_v14 = vpack.c.bf16 %v396_v9, %v394_v8  ;;  %v393_v16 = vld [vmem:[%s7092_s24 + $0xa0] sm:$0xff]  ;;  %v9957_v9 = vmov 0  }
  0x22   : > { %v395_v17 = vld [vmem:[%s7092_s24 + $0xb0] sm:$0xff]  ;;  %v457_v18 = vld [vmem:[%s7092_s24 + $0x2a0] sm:$0xff]  ;;  %v7170_v19 = vpack.c.bf16 %v460_v11, %v458_v10  ;;  %v398_v22 = vld [vmem:[%s7092_s24 + $0xc8] sm:$0xff]  ;;  %6913 = vset.pattern.permute.xlu0 %v9957_v9  ;;  %6914 = vset.pattern.permute.xlu1 %v9957_v9 }
  0x23   : > { %2300 = vmatpush1.bf16.msra.mxu1 %v635_v58  ;;  %v459_v21 = vld [vmem:[%s7092_s24 + $0x2b0] sm:$0xff]  ;;  %v400_v23 = vld [vmem:[%s7092_s24 + $0xd8] sm:$0xff]  ;;  %v462_v24 = vld [vmem:[%s7092_s24 + $0x2c8] sm:$0xff]  ;;  %v639_v27 = vpack.c.bf16 %v395_v17, %v393_v16 }
  0x24   : > { %2653 = vmatpush1.bf16.msra.mxu0 %v7150_v59  ;;  %2301 = vmatprep.subr.bf16.mxu1 %v638_v60  ;;  %v464_v26 = vld [vmem:[%s7092_s24 + $0x2d8] sm:$0xff]  ;;  %v7178_v28 = vpack.c.bf16 %v459_v21, %v457_v18  ;;  %v642_v29 = vpack.c.bf16 %v400_v23, %v398_v22  ;;  %v397_v30 = vld [vmem:[%s7092_s24 + $0xc0] sm:$0xff]  ;;  %v399_v31 = vld [vmem:[%s7092_s24 + $0xd0] sm:$0xff] }
  0x25   : > { %2654 = vmatprep.subr.bf16.mxu0 %v7156_v4  ;;  %v461_v32 = vld [vmem:[%s7092_s24 + $0x2c0] sm:$0xff]  ;;  %v7184_v34 = vpack.c.bf16 %v464_v26, %v462_v24  ;;  %v463_v35 = vld [vmem:[%s7092_s24 + $0x2d0] sm:$0xff]  ;;  %v402_v36 = vld [vmem:[%s7092_s24 + $0xe8] sm:$0xff]  ;;  %v641_v41 = vpack.c.bf16 %v399_v31, %v397_v30 }
  0x26   : > { %v404_v37 = vld [vmem:[%s7092_s24 + $0xf8] sm:$0xff]  ;;  %v466_v39 = vld [vmem:[%s7092_s24 + $0x2e8] sm:$0xff]  ;;  %v7192_v42 = vpack.c.bf16 %v463_v35, %v461_v32  ;;  %v401_v44 = vld [vmem:[%s7092_s24 + $0xe0] sm:$0xff] }
  0x27   : > { %2302 = vmatpush1.bf16.msra.mxu1 %v637_v12  ;;  %v468_v40 = vld [vmem:[%s7092_s24 + $0x2f8] sm:$0xff]  ;;  %v644_v43 = vpack.c.bf16 %v404_v37, %v402_v36  ;;  %v403_v45 = vld [vmem:[%s7092_s24 + $0xf0] sm:$0xff]  ;;  %v465_v47 = vld [vmem:[%s7092_s24 + $0x2e0] sm:$0xff] }
  0x28   : > { %2655 = vmatpush1.bf16.msra.mxu0 %v7164_v13  ;;  %2303 = vmatprep.subr.bf16.mxu1 %v640_v14  ;;  %v7198_v48 = vpack.c.bf16 %v468_v40, %v466_v39  ;;  %v467_v49 = vld [vmem:[%s7092_s24 + $0x2f0] sm:$0xff]  ;;  %v406_v50 = vld [vmem:[%s7092_s24 + $0x108] sm:$0xff]  ;;  %v408_v52 = vld [vmem:[%s7092_s24 + $0x118] sm:$0xff]  ;;  %v643_v55 = vpack.c.bf16 %v403_v45, %v401_v44 }
  0x29   : > { %2656 = vmatprep.subr.bf16.mxu0 %v7170_v19  ;;  %v470_v53 = vld [vmem:[%s7092_s24 + $0x308] sm:$0xff]  ;;  %v472_v54 = vld [vmem:[%s7092_s24 + $0x318] sm:$0xff]  ;;  %v7206_v56 = vpack.c.bf16 %v467_v49, %v465_v47  ;;  %v646_v57 = vpack.c.bf16 %v408_v52, %v406_v50  ;;  %v405_v58 = vld [vmem:[%s7092_s24 + $0x100] sm:$0xff] }
  0x2a   : > { %v407_v60 = vld [vmem:[%s7092_s24 + $0x110] sm:$0xff]  ;;  %v469_v61 = vld [vmem:[%s7092_s24 + $0x300] sm:$0xff]  ;;  %v7212_v62 = vpack.c.bf16 %v472_v54, %v470_v53  ;;  %v410_v7 = vld [vmem:[%s7092_s24 + $0x128] sm:$0xff] }
  0x2b   : > { %2304 = vmatpush1.bf16.msra.mxu1 %v639_v27  ;;  %v471_v63 = vld [vmem:[%s7092_s24 + $0x310] sm:$0xff]  ;;  %v412_v8 = vld [vmem:[%s7092_s24 + $0x138] sm:$0xff]  ;;  %v474_v10 = vld [vmem:[%s7092_s24 + $0x328] sm:$0xff]  ;;  %v645_v12 = vpack.c.bf16 %v407_v60, %v405_v58 }
  0x2c   : > { %2657 = vmatpush1.bf16.msra.mxu0 %v7178_v28  ;;  %2305 = vmatprep.subr.bf16.mxu1 %v642_v29  ;;  %v476_v11 = vld [vmem:[%s7092_s24 + $0x338] sm:$0xff]  ;;  %v7222_v14 = vpack.c.bf16 %v471_v63, %v469_v61  ;;  %v648_v16 = vpack.c.bf16 %v412_v8, %v410_v7  ;;  %v409_v17 = vld [vmem:[%s7092_s24 + $0x120] sm:$0xff]  ;;  %v411_v18 = vld [vmem:[%s7092_s24 + $0x130] sm:$0xff] }
  0x2d   : > { %2658 = vmatprep.subr.bf16.mxu0 %v7184_v34  ;;  %v473_v21 = vld [vmem:[%s7092_s24 + $0x320] sm:$0xff]  ;;  %v7228_v22 = vpack.c.bf16 %v476_v11, %v474_v10  ;;  %v475_v23 = vld [vmem:[%s7092_s24 + $0x330] sm:$0xff]  ;;  %v414_v24 = vld [vmem:[%s7092_s24 + $0x148] sm:$0xff]  ;;  %v647_v30 = vpack.c.bf16 %v411_v18, %v409_v17 }
  0x2e   : > { %v416_v26 = vld [vmem:[%s7092_s24 + $0x158] sm:$0xff]  ;;  %v478_v27 = vld [vmem:[%s7092_s24 + $0x348] sm:$0xff]  ;;  %v7236_v31 = vpack.c.bf16 %v475_v23, %v473_v21  ;;  %v413_v35 = vld [vmem:[%s7092_s24 + $0x140] sm:$0xff] }
  0x2f   : > { %2306 = vmatpush1.bf16.msra.mxu1 %v641_v41  ;;  %v480_v29 = vld [vmem:[%s7092_s24 + $0x358] sm:$0xff]  ;;  %v650_v32 = vpack.c.bf16 %v416_v26, %v414_v24  ;;  %v415_v36 = vld [vmem:[%s7092_s24 + $0x150] sm:$0xff]  ;;  %v477_v37 = vld [vmem:[%s7092_s24 + $0x340] sm:$0xff] }
  0x30   : > { %2659 = vmatpush1.bf16.msra.mxu0 %v7192_v42  ;;  %2307 = vmatprep.subr.bf16.mxu1 %v644_v43  ;;  %v7242_v39 = vpack.c.bf16 %v480_v29, %v478_v27  ;;  %v479_v40 = vld [vmem:[%s7092_s24 + $0x350] sm:$0xff]  ;;  %v418_v41 = vld [vmem:[%s7092_s24 + $0x168] sm:$0xff]  ;;  %v420_v43 = vld [vmem:[%s7092_s24 + $0x178] sm:$0xff]  ;;  %v649_v47 = vpack.c.bf16 %v415_v36, %v413_v35 }
  0x31   : > { %2660 = vmatprep.subr.bf16.mxu0 %v7198_v48  ;;  %v482_v44 = vld [vmem:[%s7092_s24 + $0x368] sm:$0xff]  ;;  %v484_v45 = vld [vmem:[%s7092_s24 + $0x378] sm:$0xff]  ;;  %v7250_v49 = vpack.c.bf16 %v479_v40, %v477_v37  ;;  %v652_v50 = vpack.c.bf16 %v420_v43, %v418_v41  ;;  %v417_v52 = vld [vmem:[%s7092_s24 + $0x160] sm:$0xff] }
  0x32   : > { %v419_v53 = vld [vmem:[%s7092_s24 + $0x170] sm:$0xff]  ;;  %v481_v54 = vld [vmem:[%s7092_s24 + $0x360] sm:$0xff]  ;;  %v422_v58 = vld [vmem:[%s7092_s24 + $0x188] sm:$0xff] }
  0x33   : > { %2308 = vmatpush1.bf16.msra.mxu1 %v643_v55  ;;  %v7256_v55 = vpack.c.bf16 %v484_v45, %v482_v44  ;;  %v424_v60 = vld [vmem:[%s7092_s24 + $0x198] sm:$0xff]  ;;  %v486_v61 = vld [vmem:[%s7092_s24 + $0x388] sm:$0xff]  ;;  %v651_v7 = vpack.c.bf16 %v419_v53, %v417_v52  ;;  %v421_v11 = vld [vmem:[%s7092_s24 + $0x180] sm:$0xff] }
  0x34   : > { %2661 = vmatpush1.bf16.msra.mxu0 %v7206_v56  ;;  %2309 = vmatprep.subr.bf16.mxu1 %v646_v57  ;;  %v483_v57 = vld [vmem:[%s7092_s24 + $0x370] sm:$0xff]  ;;  %v488_v63 = vld [vmem:[%s7092_s24 + $0x398] sm:$0xff]  ;;  %v654_v10 = vpack.c.bf16 %v424_v60, %v422_v58  ;;  %v426_v21 = vld [vmem:[%s7092_s24 + $0x1a8] sm:$0xff] }
  0x35   : > { %2662 = vmatprep.subr.bf16.mxu0 %v7212_v62  ;;  %v7264_v8 = vpack.c.bf16 %v483_v57, %v481_v54  ;;  %v7270_v17 = vpack.c.bf16 %v488_v63, %v486_v61  ;;  %v487_v18 = vld [vmem:[%s7092_s24 + $0x390] sm:$0xff]  ;;  %v428_v23 = vld [vmem:[%s7092_s24 + $0x1b8] sm:$0xff]  ;;  %v490_v24 = vld [vmem:[%s7092_s24 + $0x3a8] sm:$0xff] }
  0x36   : > { %v492_v26 = vld [vmem:[%s7092_s24 + $0x3b8] sm:$0xff]  ;;  %v427_v35 = vld [vmem:[%s7092_s24 + $0x1b0] sm:$0xff]  ;;  %v489_v36 = vld [vmem:[%s7092_s24 + $0x3a0] sm:$0xff] }
  0x37   : > { %2310 = vmatpush1.bf16.msra.mxu1 %v645_v12  ;;  %v423_v12 = vld [vmem:[%s7092_s24 + $0x190] sm:$0xff]  ;;  %v7284_v37 = vpack.c.bf16 %v492_v26, %v490_v24  ;;  %v430_v41 = vld [vmem:[%s7092_s24 + $0x1c8] sm:$0xff]  ;;  %v432_v43 = vld [vmem:[%s7092_s24 + $0x1d8] sm:$0xff] }
  0x38   : > { %2663 = vmatpush1.bf16.msra.mxu0 %v7222_v14  ;;  %2311 = vmatprep.subr.bf16.mxu1 %v648_v16  ;;  %v485_v16 = vld [vmem:[%s7092_s24 + $0x380] sm:$0xff]  ;;  %v653_v27 = vpack.c.bf16 %v423_v12, %v421_v11  ;;  %v491_v40 = vld [vmem:[%s7092_s24 + $0x3b0] sm:$0xff]  ;;  %v494_v44 = vld [vmem:[%s7092_s24 + $0x3c8] sm:$0xff]  ;;  %v658_v52 = vpack.c.bf16 %v432_v43, %v430_v41 }
  0x39   : > { %2664 = vmatprep.subr.bf16.mxu0 %v7228_v22  ;;  %v7278_v29 = vpack.c.bf16 %v487_v18, %v485_v16  ;;  %v496_v45 = vld [vmem:[%s7092_s24 + $0x3d8] sm:$0xff]  ;;  %v429_v53 = vld [vmem:[%s7092_s24 + $0x1c0] sm:$0xff]  ;;  %v431_v54 = vld [vmem:[%s7092_s24 + $0x1d0] sm:$0xff] }
  0x3a   : > { %v493_v57 = vld [vmem:[%s7092_s24 + $0x3c0] sm:$0xff]  ;;  %v7298_v58 = vpack.c.bf16 %v496_v45, %v494_v44  ;;  %v495_v60 = vld [vmem:[%s7092_s24 + $0x3d0] sm:$0xff]  ;;  %v434_v61 = vld [vmem:[%s7092_s24 + $0x1e8] sm:$0xff]  ;;  %v657_v11 = vpack.c.bf16 %v431_v54, %v429_v53 }
  0x3b   : > { %2312 = vmatpush1.bf16.msra.mxu1 %v647_v30  ;;  %v656_v30 = vpack.c.bf16 %v428_v23, %v426_v21  ;;  %v436_v63 = vld [vmem:[%s7092_s24 + $0x1f8] sm:$0xff]  ;;  %v7306_v12 = vpack.c.bf16 %v495_v60, %v493_v57  ;;  %v433_v18 = vld [vmem:[%s7092_s24 + $0x1e0] sm:$0xff]  ;;  %v435_v21 = vld [vmem:[%s7092_s24 + $0x1f0] sm:$0xff] }
  0x3c   : > { %2665 = vmatpush1.bf16.msra.mxu0 %v7236_v31  ;;  %2313 = vmatprep.subr.bf16.mxu1 %v650_v32  ;;  %v425_v32 = vld [vmem:[%s7092_s24 + $0x1a0] sm:$0xff]  ;;  %v660_v16 = vpack.c.bf16 %v436_v63, %v434_v61  ;;  %v499_v26 = vld [vmem:[%s7092_s24 + $0x3f0] sm:$0xff]  ;;  %v766_v41 = vld [vmem:[%s9948_s1 + $0x48] sm:$0xff] }
  0x3d   : > { %2666 = vmatprep.subr.bf16.mxu0 %v7242_v39  ;;  %v497_v24 = vld [vmem:[%s7092_s24 + $0x3e0] sm:$0xff]  ;;  %v503_v45 = vld [vmem:[%s7092_s24 + $0x410] sm:$0xff]  ;;  %v508_v53 = vld [vmem:[%s7092_s24 + $0x438] sm:$0xff] }
  0x3e   : > { %v501_v44 = vld [vmem:[%s7092_s24 + $0x400] sm:$0xff]  ;;  %v511_v5 = vld [vmem:[%s7092_s24 + $0x450] sm:$0xff] }
  0x3f   : > { %2314 = vmatpush1.bf16.msra.mxu1 %v649_v47  ;;  %v655_v47 = vpack.c.bf16 %v427_v35, %v425_v32  ;;  %v659_v32 = vpack.c.bf16 %v435_v21, %v433_v18  ;;  %v7318_v35 = vpack.c.bf16 %v499_v26, %v497_v24  ;;  %v693_v57 = vpack.c.bf16 %v503_v45, %v501_v44  ;;  %v505_v63 = vld [vmem:[%s7092_s24 + $0x420] sm:$0xff]  ;;  %v514_v21 = vld [vmem:[%s7092_s24 + $0x468] sm:$0xff]  ;;  %v516_v24 = vld [vmem:[%s7092_s24 + $0x478] sm:$0xff] }
  0x40   : > { %2667 = vmatpush1.bf16.msra.mxu0 %v7250_v49  ;;  %2315 = vmatprep.subr.bf16.mxu1 %v652_v50  ;;  %v7292_v50 = vpack.c.bf16 %v491_v40, %v489_v36  ;;  %v765_v36 = vld [vmem:[%s9948_s1 + $0x40] sm:$0xff]  ;;  %v515_v45 = vld [vmem:[%s7092_s24 + $0x470] sm:$0xff] }
  0x41   : > { %2668 = vmatprep.subr.bf16.mxu0 %v7256_v55  ;;  %v769_v40 = vld [vmem:[%s9948_s1 + $0x60] sm:$0xff] }
  0x42   : > { %v6155_v54 = vcombine.high %v765_v36, %v769_v40  ;;  %v6154_v18 = vcombine.low %v765_v36, %v769_v40  ;;  %v513_v44 = vld [vmem:[%s7092_s24 + $0x460] sm:$0xff] }
  0x43   : > { %2316 = vmatpush1.bf16.msra.mxu1 %v651_v7  ;;  %v498_v7 = vld [vmem:[%s7092_s24 + $0x3e8] sm:$0xff]  ;;  %v3705_v36 = vld [vmem:[%s9949_s2] sm:$0xff]  ;;  %v699_v40 = vpack.c.bf16 %v515_v45, %v513_v44  ;;  %v527_v45 = vld [vmem:[%s7092_s24 + $0x4d0] sm:$0xff] }
  0x44   : > { %2669 = vmatpush1.bf16.msra.mxu0 %v7264_v8  ;;  %2317 = vmatprep.subr.bf16.mxu1 %v654_v10  ;;  %v500_v10 = vld [vmem:[%s7092_s24 + $0x3f8] sm:$0xff]  ;;  %v525_v44 = vld [vmem:[%s7092_s24 + $0x4c0] sm:$0xff] }
  0x45   : > { %2670 = vmatprep.subr.bf16.mxu0 %v7270_v17  ;;  %v7311_v23 = vpack.c.bf16 %v500_v10, %v498_v7  ;;  %v507_v7 = vld [vmem:[%s7092_s24 + $0x430] sm:$0xff]  ;;  %v510_v10 = vld [vmem:[%s7092_s24 + $0x448] sm:$0xff]  ;;  %3771 = vperm.xlu0 %6913, %v3705_v36   ;;  %v532_v36 = vld [vmem:[%s7092_s24 + $0x4f8] sm:$0xff] }
  0x47   : > { %2318 = vmatpush1.bf16.msra.mxu1 %v653_v27  ;;  %v502_v27 = vld [vmem:[%s7092_s24 + $0x408] sm:$0xff] }
  0x48   : > { %2671 = vmatpush1.bf16.msra.mxu0 %v7278_v29  ;;  %2319 = vmatprep.subr.bf16.mxu1 %v656_v30  ;;  %v504_v30 = vld [vmem:[%s7092_s24 + $0x418] sm:$0xff] }
  0x49   : > { %2672 = vmatprep.subr.bf16.mxu0 %v7284_v37  ;;  %v694_v43 = vpack.c.bf16 %v504_v30, %v502_v27 }
  0x4b   : > { %2320 = vmatpush1.bf16.msra.mxu1 %v655_v47  ;;  %v770_v47 = vld [vmem:[%s9948_s1 + $0x68] sm:$0xff] }
  0x4c   : > { %2673 = vmatpush1.bf16.msra.mxu0 %v7292_v50  ;;  %2321 = vmatprep.subr.bf16.mxu1 %v658_v52  ;;  %v506_v52 = vld [vmem:[%s7092_s24 + $0x428] sm:$0xff]  ;;  %v6157_v60 = vcombine.high %v766_v41, %v770_v47  ;;  %v6156_v26 = vcombine.low %v766_v41, %v770_v47  ;;  %v7382_v41 = vld [vmem:[%s9948_s1 + $0xe0] sm:$0xff] }
  0x4d   : > { %2674 = vmatprep.subr.bf16.mxu0 %v7298_v58  ;;  %v696_v61 = vpack.c.bf16 %v508_v53, %v506_v52  ;;  %v518_v52 = vld [vmem:[%s7092_s24 + $0x488] sm:$0xff]  ;;  %v4217_v53 = vld [vmem:[%s9950_s3] sm:$0xff] }
  0x4e   : > { %v7387_v47 = vld [vmem:[%s9948_s1 + $0xc8] sm:$0xff]  ;;  %4283 = vperm.xlu1 %6914, %v4217_v53  }
  0x4f   : > { %2322 = vmatpush1.bf16.msra.mxu1 %v657_v11  ;;  %v512_v11 = vld [vmem:[%s7092_s24 + $0x458] sm:$0xff] }
  0x50   : > { %2675 = vmatpush1.bf16.msra.mxu0 %v7306_v12  ;;  %2323 = vmatprep.subr.bf16.mxu1 %v660_v16  ;;  %v773_v16 = vld [vmem:[%s9948_s1 + $0x80] sm:$0xff]  ;;  %v698_v2 = vpack.c.bf16 %v512_v11, %v510_v10  ;;  %v524_v10 = vld [vmem:[%s7092_s24 + $0x4b8] sm:$0xff]  ;;  %v3706_v11 = vld [vmem:[%s9949_s2 + $0x8] sm:$0xff] }
  0x51   : > { %2676 = vmatprep.subr.bf16.mxu0 %v7311_v23  ;;  %v6163_v27 = vcombine.high %v773_v16, %v777_v0  ;;  %3776 = vperm.xlu0 %6913, %v3706_v11   ;;  %v7476_v11 = vld [vmem:[%s9948_s1 + $0x140] sm:$0xff] }
  0x53   : > { %2324 = vmatpush1.bf16.msra.mxu1 %v659_v32 }
  0x54   : > { %2677 = vmatpush1.bf16.msra.mxu0 %v7318_v35  ;;  %6439 = vmatprep.subr.bf16.mxu1 %v7100_v15  ;;  %v695_v15 = vpack.c.bf16 %v507_v7, %v505_v63  ;;  %v6162_v63 = vcombine.low %v773_v16, %v777_v0  ;;  %v522_v7 = vld [vmem:[%s7092_s24 + $0x4a8] sm:$0xff] }
  0x55   : > { %2999 = vmatprep.subr.bf16.mxu0 %v694_v43  ;;  %v700_v43 = vpack.c.bf16 %v516_v24, %v514_v21  ;;  %v528_v21 = vld [vmem:[%s7092_s24 + $0x4d8] sm:$0xff] }
  0x56   : > { %2326 = vmatmul.mubr.bf16.vlgmr.msra.gmra.mrb[0].mxu1 %v6146_v3  ;;  %v509_v3 = vld [vmem:[%s7092_s24 + $0x440] sm:$0xff] }
  0x57   : > { %2679 = vmatmul.mubr.bf16.vlgmr.msra.gmra.mrb[0].mxu0 %v6148_v6  ;;  %2335 = vmatprep.mubr.bf16.mxu1 %v6155_v54  ;;  %v778_v6 = vld [vmem:[%s9948_s1 + $0xa8] sm:$0xff]  ;;  %v697_v30 = vpack.c.bf16 %v511_v5, %v509_v3  ;;  %v704_v5 = vpack.c.bf16 %v524_v10, %v522_v7 }
  0x58   : > { %3000 = vmatpush1.bf16.msra.mxu0 %v693_v57  ;;  %2688 = vmatprep.mubr.bf16.mxu0 %v6157_v60  ;;  %v6165_v32 = vcombine.high %v774_v1, %v778_v6  ;;  %v7395_v57 = vld [vmem:[%s9948_s1 + $0xe8] sm:$0xff]  ;;  %v517_v60 = vld [vmem:[%s7092_s24 + $0x480] sm:$0xff] }
  0x59   : > { %3001 = vmatprep.subr.bf16.mxu0 %v696_v61  ;;  %6455 = vmatpush1.bf16.msra.mxu1 %v7105_v20  ;;  %v520_v20 = vld [vmem:[%s7092_s24 + $0x498] sm:$0xff]  ;;  %v519_v61 = vld [vmem:[%s7092_s24 + $0x490] sm:$0xff]  ;;  %v4218_v3 = vld [vmem:[%s9950_s3 + $0x8] sm:$0xff]  ;;  %v6173_v16 = vcombine.high %v7387_v47, %v7395_v57  ;;  %v6172_v53 = vcombine.low %v7387_v47, %v7395_v57 }
  0x5a   : > { %6440 = vmatprep.subr.bf16.mxu1 %v7111_v25  ;;  %v7377_v25 = vld [vmem:[%s9948_s1 + $0xc0] sm:$0xff]  ;;  %v702_v54 = vpack.c.bf16 %v520_v20, %v518_v52  ;;  %v701_v0 = vpack.c.bf16 %v519_v61, %v517_v60  ;;  %4288 = vperm.xlu1 %6914, %v4218_v3   ;;  %v530_v20 = vld [vmem:[%s7092_s24 + $0x4e8] sm:$0xff]  ;;  %v705_v60 = vpack.c.bf16 %v527_v45, %v525_v44  ;;  %v536_v57 = vld [vmem:[%s7092_s24 + $0x518] sm:$0xff] }
  0x5b   : > { %v6170_v52 = vcombine.low %v7377_v25, %v7382_v41  ;;  %v708_v61 = vpack.c.bf16 %v532_v36, %v530_v20  ;;  %v534_v47 = vld [vmem:[%s7092_s24 + $0x508] sm:$0xff]  ;;  %v537_v44 = vld [vmem:[%s7092_s24 + $0x520] sm:$0xff]  ;;  %v544_v45 = vld [vmem:[%s7092_s24 + $0x558] sm:$0xff] }
  0x5c   : > { %3002 = vmatpush1.bf16.msra.mxu0 %v695_v15  ;;  %v6164_v15 = vcombine.low %v774_v1, %v778_v6  ;;  %v523_v1 = vld [vmem:[%s7092_s24 + $0x4b0] sm:$0xff]  ;;  %v526_v6 = vld [vmem:[%s7092_s24 + $0x4c8] sm:$0xff]  ;;  %v7526_v20 = vld [vmem:[%s9948_s1 + $0x180] sm:$0xff] }
  0x5d   : > { %3003 = vmatprep.subr.bf16.mxu0 %v698_v2  ;;  %v6171_v2 = vcombine.high %v7377_v25, %v7382_v41  ;;  %6456 = vmatpush1.bf16.msra.mxu1 %v7121_v33  ;;  %v3707_v33 = vld [vmem:[%s9949_s2 + $0x10] sm:$0xff]  ;;  %v4220_v25 = vld [vmem:[%s9950_s3 + $0x18] sm:$0xff]  ;;  %v3710_v7 = vld [vmem:[%s9949_s2 + $0x28] sm:$0xff] }
  0x5e   : > { %2336 = vmatmul.mubr.bf16.gmra.mrb[4].mxu1 %v6154_v18  ;;  %6441 = vmatprep.subr.bf16.mxu1 %v7126_v38  ;;  %v521_v18 = vld [vmem:[%s7092_s24 + $0x4a0] sm:$0xff]  ;;  %v3708_v38 = vld [vmem:[%s9949_s2 + $0x18] sm:$0xff]  ;;  %v7491_v3 = vld [vmem:[%s9948_s1 + $0x168] sm:$0xff] }
  0x5f   : > { %2689 = vmatmul.mubr.bf16.gmra.mrb[4].mxu0 %v6156_v26  ;;  %2345 = vmatprep.mubr.bf16.mxu1 %v6163_v27  ;;  %v703_v24 = vpack.c.bf16 %v523_v1, %v521_v18  ;;  %v7426_v26 = vld [vmem:[%s9948_s1 + $0x100] sm:$0xff]  ;;  %v538_v1 = vld [vmem:[%s7092_s24 + $0x528] sm:$0xff] }
  0x60   : > { %3004 = vmatpush1.bf16.msra.mxu0 %v697_v30  ;;  %2698 = vmatprep.mubr.bf16.mxu0 %v6165_v32  ;;  %v7431_v27 = vld [vmem:[%s9948_s1 + $0x120] sm:$0xff]  ;;  %v7436_v30 = vld [vmem:[%s9948_s1 + $0x108] sm:$0xff] }
  0x61   : > { %3005 = vmatprep.subr.bf16.mxu0 %v700_v43  ;;  %v7441_v32 = vld [vmem:[%s9948_s1 + $0x128] sm:$0xff]  ;;  %v706_v43 = vpack.c.bf16 %v528_v21, %v526_v6  ;;  %3781 = vperm.xlu0 %6913, %v3707_v33   ;;  %v6178_v18 = vcombine.low %v7426_v26, %v7431_v27  ;;  %v540_v6 = vld [vmem:[%s7092_s24 + $0x538] sm:$0xff]  ;;  %v4221_v21 = vld [vmem:[%s9950_s3 + $0x20] sm:$0xff] }
  0x62   : > { %3786 = vperm.xlu1 %6914, %v3708_v38   ;;  %6457 = vmatpush1.bf16.msra.mxu1 %v7135_v46  ;;  %v6181_v41 = vcombine.high %v7436_v30, %v7441_v32  ;;  %v529_v46 = vld [vmem:[%s7092_s24 + $0x4e0] sm:$0xff]  ;;  %v6180_v33 = vcombine.low %v7436_v30, %v7441_v32  ;;  %v539_v30 = vld [vmem:[%s7092_s24 + $0x530] sm:$0xff]  ;;  %v542_v32 = vld [vmem:[%s7092_s24 + $0x548] sm:$0xff] }
  0x63   : > { %6442 = vmatprep.subr.bf16.mxu1 %v7141_v51  ;;  %v3709_v51 = vld [vmem:[%s9949_s2 + $0x20] sm:$0xff] }
  0x64   : > { %3006 = vmatpush1.bf16.msra.mxu0 %v699_v40  ;;  %v4219_v40 = vld [vmem:[%s9950_s3 + $0x10] sm:$0xff]  ;;  %v7531_v36 = vld [vmem:[%s9948_s1 + $0x1a0] sm:$0xff] }
  0x65   : > { %3007 = vmatprep.subr.bf16.mxu0 %v702_v54  ;;  %v6179_v54 = vcombine.high %v7426_v26, %v7431_v27  ;;  %4293 = vperm.xlu0 %6913, %v4219_v40   ;;  %v7536_v40 = vld [vmem:[%s9948_s1 + $0x188] sm:$0xff] }
  0x66   : > { %2346 = vmatmul.mubr.bf16.gmra.mrb[8].mxu1 %v6162_v63  ;;  %v531_v63 = vld [vmem:[%s7092_s24 + $0x4f0] sm:$0xff]  ;;  %4298 = vperm.xlu1 %6914, %v4220_v25   ;;  %v541_v25 = vld [vmem:[%s7092_s24 + $0x540] sm:$0xff] }
  0x67   : > { %2699 = vmatmul.mubr.bf16.gmra.mrb[8].mxu0 %v6164_v15  ;;  %2355 = vmatprep.mubr.bf16.mxu1 %v6171_v2  ;;  %v707_v10 = vpack.c.bf16 %v531_v63, %v529_v46  ;;  %v7481_v15 = vld [vmem:[%s9948_s1 + $0x160] sm:$0xff]  ;;  %v7486_v2 = vld [vmem:[%s9948_s1 + $0x148] sm:$0xff]  ;;  %v548_v46 = vld [vmem:[%s7092_s24 + $0x578] sm:$0xff] }
  0x68   : > { %2708 = vmatprep.mubr.bf16.mxu0 %v6173_v16  ;;  %3008 = vmatpush1.bf16.msra.mxu0 %v701_v0  ;;  %v710_v16 = vpack.c.bf16 %v536_v57, %v534_v47  ;;  %v533_v0 = vld [vmem:[%s7092_s24 + $0x500] sm:$0xff]  ;;  %v6187_v38 = vcombine.high %v7476_v11, %v7481_v15  ;;  %v6189_v26 = vcombine.high %v7486_v2, %v7491_v3  ;;  %v4223_v63 = vld [vmem:[%s9950_s3 + $0x30] sm:$0xff] }
  0x69   : > { %3009 = vmatprep.subr.bf16.mxu0 %v704_v5  ;;  %v535_v5 = vld [vmem:[%s7092_s24 + $0x510] sm:$0xff]  ;;  %3791 = vperm.xlu0 %6913, %v3709_v51   ;;  %v6188_v47 = vcombine.low %v7486_v2, %v7491_v3  ;;  %v6195_v57 = vcombine.high %v7526_v20, %v7531_v36  ;;  %v4224_v51 = vld [vmem:[%s9950_s3 + $0x38] sm:$0xff]  ;;  %v550_v2 = vld [vmem:[%s7092_s24 + $0x588] sm:$0xff] }
  0x6a   : > { %3796 = vperm.xlu1 %6914, %v3710_v7   ;;  %6458 = vmatpush1.bf16.msra.mxu1 %v7150_v59  ;;  %v709_v27 = vpack.c.bf16 %v535_v5, %v533_v0  ;;  %v3711_v59 = vld [vmem:[%s9949_s2 + $0x30] sm:$0xff]  ;;  %v552_v3 = vld [vmem:[%s7092_s24 + $0x598] sm:$0xff]  ;;  %v7576_v5 = vld [vmem:[%s9948_s1 + $0x1c0] sm:$0xff] }
  0x6b   : > { %6443 = vmatprep.subr.bf16.mxu1 %v7156_v4  ;;  %v3712_v4 = vld [vmem:[%s9949_s2 + $0x38] sm:$0xff] }
  0x6c   : > { %3010 = vmatpush1.bf16.msra.mxu0 %v703_v24  ;;  %v4222_v24 = vld [vmem:[%s9950_s3 + $0x28] sm:$0xff] }
  0x6d   : > { %3011 = vmatprep.subr.bf16.mxu0 %v706_v43  ;;  %v712_v43 = vpack.c.bf16 %v540_v6, %v538_v1  ;;  %4303 = vperm.xlu0 %6913, %v4221_v21   ;;  %v7586_v1 = vld [vmem:[%s9948_s1 + $0x1c8] sm:$0xff]  ;;  %v718_v21 = vpack.c.bf16 %v552_v3, %v550_v2  ;;  %v563_v2 = vld [vmem:[%s7092_s24 + $0x5f0] sm:$0xff] }
  0x6e   : > { %2356 = vmatmul.mubr.bf16.gmra.mrb[12].mxu1 %v6170_v52  ;;  %4308 = vperm.xlu1 %6914, %v4222_v24   ;;  %v711_v52 = vpack.c.bf16 %v539_v30, %v537_v44  ;;  %v7591_v6 = vld [vmem:[%s9948_s1 + $0x1e8] sm:$0xff]  ;;  %v6194_v24 = vcombine.low %v7526_v20, %v7531_v36  ;;  %v560_v20 = vld [vmem:[%s7092_s24 + $0x5d8] sm:$0xff]  ;;  %v3715_v36 = vld [vmem:[%s9949_s2 + $0x50] sm:$0xff] }
  0x6f   : > { %2709 = vmatmul.mubr.bf16.gmra.mrb[12].mxu0 %v6172_v53  ;;  %2365 = vmatprep.mubr.bf16.mxu1 %v6179_v54  ;;  %v7541_v53 = vld [vmem:[%s9948_s1 + $0x1a8] sm:$0xff]  ;;  %v714_v54 = vpack.c.bf16 %v544_v45, %v542_v32  ;;  %v553_v32 = vld [vmem:[%s7092_s24 + $0x5a0] sm:$0xff]  ;;  %v555_v45 = vld [vmem:[%s7092_s24 + $0x5b0] sm:$0xff] }
  0x70   : > { %2718 = vmatprep.mubr.bf16.mxu0 %v6181_v41  ;;  %3012 = vmatpush1.bf16.msra.mxu0 %v705_v60  ;;  %v543_v41 = vld [vmem:[%s7092_s24 + $0x550] sm:$0xff]  ;;  %v6186_v60 = vcombine.low %v7476_v11, %v7481_v15  ;;  %v6197_v7 = vcombine.high %v7536_v40, %v7541_v53  ;;  %v6196_v44 = vcombine.low %v7536_v40, %v7541_v53  ;;  %v7628_v53 = vld [vmem:[%s9948_s1 + $0x220] sm:$0xff] }
  0x71   : > { %3013 = vmatprep.subr.bf16.mxu0 %v708_v61  ;;  %3801 = vperm.xlu0 %6913, %v3711_v59   ;;  %v546_v61 = vld [vmem:[%s7092_s24 + $0x568] sm:$0xff]  ;;  %v547_v15 = vld [vmem:[%s7092_s24 + $0x570] sm:$0xff] }
  0x72   : > { %3806 = vperm.xlu1 %6914, %v3712_v4   ;;  %6459 = vmatpush1.bf16.msra.mxu1 %v7164_v13  ;;  %v716_v11 = vpack.c.bf16 %v548_v46, %v546_v61  ;;  %v545_v13 = vld [vmem:[%s7092_s24 + $0x560] sm:$0xff]  ;;  %v4226_v59 = vld [vmem:[%s9950_s3 + $0x48] sm:$0xff]  ;;  %v6205_v4 = vcombine.high %v7586_v1, %v7591_v6  ;;  %v719_v61 = vpack.c.bf16 %v555_v45, %v553_v32  ;;  %v559_v46 = vld [vmem:[%s7092_s24 + $0x5d0] sm:$0xff] }
  0x73   : > { %6444 = vmatprep.subr.bf16.mxu1 %v7170_v19  ;;  %v3713_v19 = vld [vmem:[%s9949_s2 + $0x40] sm:$0xff]  ;;  %v715_v0 = vpack.c.bf16 %v547_v15, %v545_v13  ;;  %v3719_v32 = vld [vmem:[%s9949_s2 + $0x70] sm:$0xff] }
  0x74   : > { %3014 = vmatpush1.bf16.msra.mxu0 %v707_v10  ;;  %v713_v10 = vpack.c.bf16 %v543_v41, %v541_v25  ;;  %v826_v25 = vld [vmem:[%s9948_s1 + $0x228] sm:$0xff]  ;;  %v557_v41 = vld [vmem:[%s7092_s24 + $0x5c0] sm:$0xff] }
  0x75   : > { %3015 = vmatprep.subr.bf16.mxu0 %v710_v16  ;;  %4313 = vperm.xlu0 %6913, %v4223_v63   ;;  %v3714_v16 = vld [vmem:[%s9949_s2 + $0x48] sm:$0xff]  ;;  %v561_v15 = vld [vmem:[%s7092_s24 + $0x5e0] sm:$0xff] }
  0x76   : > { %2366 = vmatmul.mubr.bf16.gmra.mrb[16].mxu1 %v6178_v18  ;;  %4318 = vperm.xlu1 %6914, %v4224_v51   ;;  %v7581_v18 = vld [vmem:[%s9948_s1 + $0x1e0] sm:$0xff]  ;;  %v562_v63 = vld [vmem:[%s7092_s24 + $0x5e8] sm:$0xff]  ;;  %v4227_v51 = vld [vmem:[%s9950_s3 + $0x50] sm:$0xff] }
  0x77   : > { %2719 = vmatmul.mubr.bf16.gmra.mrb[16].mxu0 %v6180_v33  ;;  %2375 = vmatprep.mubr.bf16.mxu1 %v6187_v38  ;;  %v549_v33 = vld [vmem:[%s7092_s24 + $0x580] sm:$0xff]  ;;  %v551_v38 = vld [vmem:[%s7092_s24 + $0x590] sm:$0xff]  ;;  %v6203_v30 = vcombine.high %v7576_v5, %v7581_v18 }
  0x78   : > { %2728 = vmatprep.mubr.bf16.mxu0 %v6189_v26  ;;  %3016 = vmatpush1.bf16.msra.mxu0 %v709_v27  ;;  %v554_v26 = vld [vmem:[%s7092_s24 + $0x5a8] sm:$0xff]  ;;  %v556_v27 = vld [vmem:[%s7092_s24 + $0x5b8] sm:$0xff]  ;;  %v837_v45 = vld [vmem:[%s9948_s1 + $0x280] sm:$0xff] }
  0x79   : > { %3017 = vmatprep.subr.bf16.mxu0 %v712_v43  ;;  %3811 = vperm.xlu0 %6913, %v3713_v19   ;;  %v4225_v43 = vld [vmem:[%s9950_s3 + $0x40] sm:$0xff]  ;;  %v720_v40 = vpack.c.bf16 %v556_v27, %v554_v26  ;;  %v721_v19 = vpack.c.bf16 %v559_v46, %v557_v41  ;;  %v4230_v27 = vld [vmem:[%s9950_s3 + $0x68] sm:$0xff] }
  0x7a   : > { %3816 = vperm.xlu1 %6914, %v3714_v16   ;;  %6460 = vmatpush1.bf16.msra.mxu1 %v7178_v28  ;;  %v717_v28 = vpack.c.bf16 %v551_v38, %v549_v33  ;;  %v566_v16 = vld [vmem:[%s7092_s24 + $0x608] sm:$0xff]  ;;  %v763_v33 = vld [vmem:[%s9948_s1 + $0x30] sm:$0xff]  ;;  %v4229_v26 = vld [vmem:[%s9950_s3 + $0x60] sm:$0xff] }
  0x7b   : > { %6445 = vmatprep.subr.bf16.mxu1 %v7184_v34  ;;  %v7623_v34 = vld [vmem:[%s9948_s1 + $0x200] sm:$0xff]  ;;  %v574_v46 = vld [vmem:[%s7092_s24 + $0x648] sm:$0xff] }
  0x7c   : > { %3018 = vmatpush1.bf16.msra.mxu0 %v711_v52  ;;  %v558_v52 = vld [vmem:[%s7092_s24 + $0x5c8] sm:$0xff]  ;;  %v6211_v13 = vcombine.high %v7623_v34, %v7628_v53 }
  0x7d   : > { %3019 = vmatprep.subr.bf16.mxu0 %v714_v54  ;;  %4323 = vperm.xlu0 %6913, %v4225_v43   ;;  %v822_v54 = vld [vmem:[%s9948_s1 + $0x208] sm:$0xff] }
  0x7e   : > { %2376 = vmatmul.mubr.bf16.gmra.mrb[20].mxu1 %v6186_v60  ;;  %4328 = vperm.xlu1 %6914, %v4226_v59   ;;  %v3716_v60 = vld [vmem:[%s9949_s2 + $0x58] sm:$0xff]  ;;  %v6213_v3 = vcombine.high %v822_v54, %v826_v25  ;;  %v6212_v43 = vcombine.low %v822_v54, %v826_v25  ;;  %v841_v59 = vld [vmem:[%s9948_s1 + $0x2a0] sm:$0xff] }
  0x7f   : > { %2729 = vmatmul.mubr.bf16.gmra.mrb[20].mxu0 %v6188_v47  ;;  %2385 = vmatprep.mubr.bf16.mxu1 %v6195_v57  ;;  %v564_v47 = vld [vmem:[%s7092_s24 + $0x5f8] sm:$0xff]  ;;  %v722_v57 = vpack.c.bf16 %v560_v20, %v558_v52  ;;  %v771_v52 = vld [vmem:[%s9948_s1 + $0x70] sm:$0xff] }
  0x80   : > { %2738 = vmatprep.mubr.bf16.mxu0 %v6197_v7  ;;  %3020 = vmatpush1.bf16.msra.mxu0 %v713_v10  ;;  %v4228_v7 = vld [vmem:[%s9950_s3 + $0x58] sm:$0xff]  ;;  %v6202_v10 = vcombine.low %v7576_v5, %v7581_v18  ;;  %v3717_v5 = vld [vmem:[%s9949_s2 + $0x60] sm:$0xff]  ;;  %v723_v18 = vpack.c.bf16 %v563_v2, %v561_v15  ;;  %v575_v15 = vld [vmem:[%s7092_s24 + $0x650] sm:$0xff]  ;;  %v6226_v2 = vcombine.low %v837_v45, %v841_v59 }
  0x81   : > { %3021 = vmatprep.subr.bf16.mxu0 %v716_v11  ;;  %3821 = vperm.xlu0 %6913, %v3715_v36   ;;  %v6204_v11 = vcombine.low %v7586_v1, %v7591_v6  ;;  %v829_v1 = vld [vmem:[%s9948_s1 + $0x240] sm:$0xff]  ;;  %v570_v36 = vld [vmem:[%s7092_s24 + $0x628] sm:$0xff]  ;;  %v4232_v54 = vld [vmem:[%s9950_s3 + $0x78] sm:$0xff] }
  0x82   : > { %3826 = vperm.xlu1 %6914, %v3716_v60   ;;  %6461 = vmatpush1.bf16.msra.mxu1 %v7192_v42  ;;  %v724_v42 = vpack.c.bf16 %v564_v47, %v562_v63  ;;  %v833_v6 = vld [vmem:[%s9948_s1 + $0x260] sm:$0xff]  ;;  %v576_v63 = vld [vmem:[%s7092_s24 + $0x658] sm:$0xff] }
  0x83   : > { %6446 = vmatprep.subr.bf16.mxu1 %v7198_v48  ;;  %v3718_v48 = vld [vmem:[%s9949_s2 + $0x68] sm:$0xff]  ;;  %v6218_v20 = vcombine.low %v829_v1, %v833_v6  ;;  %v569_v60 = vld [vmem:[%s7092_s24 + $0x620] sm:$0xff] }
  0x84   : > { %3022 = vmatpush1.bf16.msra.mxu0 %v715_v0  ;;  %v568_v0 = vld [vmem:[%s7092_s24 + $0x618] sm:$0xff]  ;;  %v3721_v47 = vld [vmem:[%s9949_s2 + $0x80] sm:$0xff] }
  0x85   : > { %3023 = vmatprep.subr.bf16.mxu0 %v718_v21  ;;  %4333 = vperm.xlu0 %6913, %v4227_v51   ;;  %v759_v21 = vld [vmem:[%s9948_s1 + $0x10] sm:$0xff]  ;;  %v726_v38 = vpack.c.bf16 %v568_v0, %v566_v16  ;;  %v4233_v16 = vld [vmem:[%s9950_s3 + $0x80] sm:$0xff] }
  0x86   : > { %2386 = vmatmul.mubr.bf16.gmra.mrb[24].mxu1 %v6194_v24  ;;  %4338 = vperm.xlu1 %6914, %v4228_v7   ;;  %v6210_v24 = vcombine.low %v7623_v34, %v7628_v53  ;;  %v6150_v34 = vcombine.low %v759_v21, %v763_v33  ;;  %v6227_v53 = vcombine.high %v837_v45, %v841_v59  ;;  %v7747_v51 = vld [vmem:[%s9948_s1 + $0x90] sm:$0xff]  ;;  %v586_v45 = vld [vmem:[%s7092_s24 + $0x6a8] sm:$0xff]  ;;  %v588_v59 = vld [vmem:[%s7092_s24 + $0x6b8] sm:$0xff] }
  0x87   : > { %2739 = vmatmul.mubr.bf16.gmra.mrb[24].mxu0 %v6196_v44  ;;  %2395 = vmatprep.mubr.bf16.mxu1 %v6203_v30  ;;  %v6219_v44 = vcombine.high %v829_v1, %v833_v6  ;;  %v6151_v30 = vcombine.high %v759_v21, %v763_v33  ;;  %v577_v6 = vld [vmem:[%s7092_s24 + $0x660] sm:$0xff]  ;;  %v582_v21 = vld [vmem:[%s7092_s24 + $0x688] sm:$0xff]  ;;  %v584_v33 = vld [vmem:[%s7092_s24 + $0x698] sm:$0xff] }
  0x88   : > { %2748 = vmatprep.mubr.bf16.mxu0 %v6205_v4  ;;  %3024 = vmatpush1.bf16.msra.mxu0 %v717_v28  ;;  %v567_v4 = vld [vmem:[%s7092_s24 + $0x610] sm:$0xff] }
  0x89   : > { %3025 = vmatprep.subr.bf16.mxu0 %v720_v40  ;;  %3831 = vperm.xlu0 %6913, %v3717_v5   ;;  %v7707_v28 = vld [vmem:[%s9948_s1 + $0x50] sm:$0xff]  ;;  %v572_v40 = vld [vmem:[%s7092_s24 + $0x638] sm:$0xff] }
  0x8a   : > { %3836 = vperm.xlu1 %6914, %v3718_v48   ;;  %6462 = vmatpush1.bf16.msra.mxu1 %v7206_v56  ;;  %v3720_v56 = vld [vmem:[%s9949_s2 + $0x78] sm:$0xff]  ;;  %v6159_v41 = vcombine.high %v7707_v28, %v771_v52  ;;  %v6158_v0 = vcombine.low %v7707_v28, %v771_v52 }
  0x8b   : > { %6447 = vmatprep.subr.bf16.mxu1 %v7212_v62  ;;  %v565_v62 = vld [vmem:[%s7092_s24 + $0x600] sm:$0xff] }
  0x8c   : > { %3026 = vmatpush1.bf16.msra.mxu0 %v719_v61  ;;  %v725_v25 = vpack.c.bf16 %v567_v4, %v565_v62  ;;  %v571_v61 = vld [vmem:[%s7092_s24 + $0x630] sm:$0xff] }
  0x8d   : > { %3027 = vmatprep.subr.bf16.mxu0 %v722_v57  ;;  %4343 = vperm.xlu0 %6913, %v4229_v26   ;;  %v7742_v57 = vld [vmem:[%s9948_s1 + $0x2e0] sm:$0xff]  ;;  %v727_v7 = vpack.c.bf16 %v571_v61, %v569_v60  ;;  %v4235_v4 = vld [vmem:[%s9950_s3 + $0x90] sm:$0xff] }
  0x8e   : > { %2396 = vmatmul.mubr.bf16.gmra.mrb[28].mxu1 %v6202_v10  ;;  %4348 = vperm.xlu1 %6914, %v4230_v27   ;;  %v7752_v10 = vld [vmem:[%s9948_s1 + $0xb0] sm:$0xff]  ;;  %v7789_v26 = vld [vmem:[%s9948_s1 + $0x320] sm:$0xff] }
  0x8f   : > { %2749 = vmatmul.mubr.bf16.gmra.mrb[28].mxu0 %v6204_v11  ;;  %2405 = vmatprep.mubr.bf16.mxu1 %v6211_v13  ;;  %v730_v11 = vpack.c.bf16 %v576_v63, %v574_v46  ;;  %v573_v13 = vld [vmem:[%s7092_s24 + $0x640] sm:$0xff]  ;;  %v6167_v48 = vcombine.high %v7747_v51, %v7752_v10  ;;  %v7794_v27 = vld [vmem:[%s9948_s1 + $0xd0] sm:$0xff]  ;;  %v6166_v28 = vcombine.low %v7747_v51, %v7752_v10  ;;  %v594_v51 = vld [vmem:[%s7092_s24 + $0x6e8] sm:$0xff] }
  0x90   : > { %2758 = vmatprep.mubr.bf16.mxu0 %v6213_v3  ;;  %3028 = vmatpush1.bf16.msra.mxu0 %v721_v19  ;;  %v578_v3 = vld [vmem:[%s7092_s24 + $0x668] sm:$0xff]  ;;  %v580_v19 = vld [vmem:[%s7092_s24 + $0x678] sm:$0xff]  ;;  %v7844_v60 = vld [vmem:[%s9948_s1 + $0x110] sm:$0xff] }
  0x91   : > { %3029 = vmatprep.subr.bf16.mxu0 %v724_v42  ;;  %6463 = vmatpush1.bf16.msra.mxu1 %v7222_v14  ;;  %v4231_v14 = vld [vmem:[%s9950_s3 + $0x70] sm:$0xff]  ;;  %v4234_v42 = vld [vmem:[%s9950_s3 + $0x88] sm:$0xff]  ;;  %v732_v1 = vpack.c.bf16 %v580_v19, %v578_v3  ;;  %v593_v3 = vld [vmem:[%s7092_s24 + $0x6e0] sm:$0xff] }
  0x92   : > { %3841 = vperm.xlu0 %6913, %v3719_v32   ;;  %6448 = vmatprep.subr.bf16.mxu1 %v7228_v22  ;;  %v728_v22 = vpack.c.bf16 %v572_v40, %v570_v36  ;;  %v581_v32 = vld [vmem:[%s7092_s24 + $0x680] sm:$0xff]  ;;  %v7849_v46 = vld [vmem:[%s9948_s1 + $0x130] sm:$0xff] }
  0x93   : > { %3846 = vperm.xlu1 %6914, %v3720_v56   ;;  %v583_v56 = vld [vmem:[%s7092_s24 + $0x690] sm:$0xff] }
  0x94   : > { %3030 = vmatpush1.bf16.msra.mxu0 %v723_v18  ;;  %v729_v18 = vpack.c.bf16 %v575_v15, %v573_v13  ;;  %v733_v40 = vpack.c.bf16 %v583_v56, %v581_v32  ;;  %v4238_v13 = vld [vmem:[%s9950_s3 + $0xa8] sm:$0xff]  ;;  %v6183_v15 = vcombine.high %v7844_v60, %v7849_v46  ;;  %v595_v19 = vld [vmem:[%s7092_s24 + $0x6f0] sm:$0xff] }
  0x95   : > { %3352 = vmatprep.subr.bf16.mxu0 %v726_v38  ;;  %6464 = vmatpush1.bf16.msra.mxu1 %v7236_v31  ;;  %v3722_v31 = vld [vmem:[%s9949_s2 + $0x88] sm:$0xff]  ;;  %v3724_v38 = vld [vmem:[%s9949_s2 + $0x98] sm:$0xff] }
  0x96   : > { %2406 = vmatmul.mubr.bf16.gmra.mrb[32].mxu1 %v6210_v24  ;;  %4353 = vperm.xlu0 %6913, %v4231_v14   ;;  %v7784_v24 = vld [vmem:[%s9948_s1 + $0x300] sm:$0xff] }
  0x97   : > { %2759 = vmatmul.mubr.bf16.gmra.mrb[32].mxu0 %v6212_v43  ;;  %2415 = vmatprep.mubr.bf16.mxu1 %v6219_v44  ;;  %v7799_v44 = vld [vmem:[%s9948_s1 + $0xf0] sm:$0xff]  ;;  %v6243_v52 = vcombine.high %v7784_v24, %v7789_v26  ;;  %v585_v14 = vld [vmem:[%s7092_s24 + $0x6a0] sm:$0xff] }
  0x98   : > { %3031 = vmatprep.mubr.bf16.mxu0 %v6151_v30  ;;  %6449 = vmatprep.subr.bf16.mxu1 %v7242_v39  ;;  %v7737_v39 = vld [vmem:[%s9948_s1 + $0x2c0] sm:$0xff]  ;;  %v734_v30 = vpack.c.bf16 %v584_v33, %v582_v21  ;;  %v6175_v36 = vcombine.high %v7794_v27, %v7799_v44  ;;  %v6174_v10 = vcombine.low %v7794_v27, %v7799_v44  ;;  %v599_v33 = vld [vmem:[%s7092_s24 + $0x710] sm:$0xff]  ;;  %v4240_v44 = vld [vmem:[%s9950_s3 + $0xb8] sm:$0xff] }
  0x99   : > { %4358 = vperm.xlu1 %6914, %v4232_v54   ;;  %6465 = vmatpush1.bf16.msra.mxu1 %v7250_v49  ;;  %v6235_v5 = vcombine.high %v7737_v39, %v7742_v57  ;;  %v579_v49 = vld [vmem:[%s7092_s24 + $0x670] sm:$0xff]  ;;  %v6234_v62 = vcombine.low %v7737_v39, %v7742_v57  ;;  %v590_v54 = vld [vmem:[%s7092_s24 + $0x6c8] sm:$0xff]  ;;  %v6242_v39 = vcombine.low %v7784_v24, %v7789_v26  ;;  %v4237_v57 = vld [vmem:[%s9950_s3 + $0xa0] sm:$0xff] }
  0x9a   : > { %3851 = vperm.xlu0 %6913, %v3721_v47   ;;  %6450 = vmatprep.subr.bf16.mxu1 %v7256_v55  ;;  %v3723_v55 = vld [vmem:[%s9949_s2 + $0x90] sm:$0xff]  ;;  %v731_v43 = vpack.c.bf16 %v579_v49, %v577_v6  ;;  %v589_v47 = vld [vmem:[%s7092_s24 + $0x6c0] sm:$0xff]  ;;  %v602_v24 = vld [vmem:[%s7092_s24 + $0x728] sm:$0xff]  ;;  %v6182_v27 = vcombine.low %v7844_v60, %v7849_v46 }
  0x9b   : > { %v803_v6 = vld [vmem:[%s9948_s1 + $0x170] sm:$0xff]  ;;  %v597_v21 = vld [vmem:[%s7092_s24 + $0x700] sm:$0xff]  ;;  %v604_v26 = vld [vmem:[%s7092_s24 + $0x738] sm:$0xff] }
  0x9c   : > { %v741_v32 = vpack.c.bf16 %v599_v33, %v597_v21  ;;  %v744_v56 = vpack.c.bf16 %v604_v26, %v602_v24  ;;  %v889_v46 = vld [vmem:[%s9948_s1 + $0x420] sm:$0xff]  ;;  %v3735_v21 = vld [vmem:[%s9949_s2 + $0xf0] sm:$0xff]  ;;  %v3736_v33 = vld [vmem:[%s9949_s2 + $0xf8] sm:$0xff] }
  0x9d   : > { %3856 = vperm.xlu1 %6914, %v3722_v31   ;;  %6466 = vmatpush1.bf16.msra.mxu1 %v7264_v8  ;;  %v736_v8 = vpack.c.bf16 %v588_v59, %v586_v45  ;;  %v591_v31 = vld [vmem:[%s7092_s24 + $0x6d0] sm:$0xff]  ;;  %v3729_v45 = vld [vmem:[%s9949_s2 + $0xc0] sm:$0xff]  ;;  %v3730_v59 = vld [vmem:[%s9949_s2 + $0xc8] sm:$0xff] }
  0x9e   : > { %2416 = vmatmul.mubr.bf16.gmra.mrb[36].mxu1 %v6218_v20  ;;  %4363 = vperm.xlu0 %6913, %v4233_v16   ;;  %v4236_v20 = vld [vmem:[%s9950_s3 + $0x98] sm:$0xff]  ;;  %v3727_v16 = vld [vmem:[%s9949_s2 + $0xb0] sm:$0xff] }
  0x9f   : > { %3032 = vmatmul.mubr.bf16.vlgmr.msra.gmra.mrb[0].mxu0 %v6150_v34  ;;  %2425 = vmatprep.mubr.bf16.mxu1 %v6227_v53  ;;  %v587_v34 = vld [vmem:[%s7092_s24 + $0x6b0] sm:$0xff]  ;;  %v3725_v53 = vld [vmem:[%s9949_s2 + $0xa0] sm:$0xff] }
  0xa0   : > { %3353 = vmatpush1.bf16.msra.mxu0 %v725_v25  ;;  %3041 = vmatprep.mubr.bf16.mxu0 %v6159_v41  ;;  %v3726_v25 = vld [vmem:[%s9949_s2 + $0xa8] sm:$0xff]  ;;  %v7834_v41 = vld [vmem:[%s9948_s1 + $0x340] sm:$0xff]  ;;  %v735_v61 = vpack.c.bf16 %v587_v34, %v585_v14  ;;  %v607_v34 = vld [vmem:[%s7092_s24 + $0x750] sm:$0xff] }
  0xa1   : > { %3354 = vmatprep.subr.bf16.mxu0 %v728_v22  ;;  %4368 = vperm.xlu1 %6914, %v4234_v42   ;;  %v7839_v22 = vld [vmem:[%s9948_s1 + $0x360] sm:$0xff]  ;;  %v831_v24 = vld [vmem:[%s9948_s1 + $0x250] sm:$0xff] }
  0xa2   : > { %3861 = vperm.xlu0 %6913, %v3723_v55   ;;  %6451 = vmatprep.subr.bf16.mxu1 %v7270_v17  ;;  %v592_v17 = vld [vmem:[%s7092_s24 + $0x6d8] sm:$0xff]  ;;  %v869_v42 = vld [vmem:[%s9948_s1 + $0x380] sm:$0xff]  ;;  %v6250_v55 = vcombine.low %v7834_v41, %v7839_v22  ;;  %v835_v26 = vld [vmem:[%s9948_s1 + $0x270] sm:$0xff] }
  0xa3   : > { %v738_v63 = vpack.c.bf16 %v592_v17, %v590_v54  ;;  %6467 = vmatpush1.bf16.msra.mxu1 %v7278_v29  ;;  %v605_v14 = vld [vmem:[%s7092_s24 + $0x740] sm:$0xff] }
  0xa4   : > { %3355 = vmatpush1.bf16.msra.mxu0 %v727_v7  ;;  %v596_v7 = vld [vmem:[%s7092_s24 + $0x6f8] sm:$0xff]  ;;  %6452 = vmatprep.subr.bf16.mxu1 %v7284_v37  ;;  %v4241_v54 = vld [vmem:[%s9950_s3 + $0xc0] sm:$0xff]  ;;  %v745_v60 = vpack.c.bf16 %v607_v34, %v605_v14 }
  0xa5   : > { %3356 = vmatprep.subr.bf16.mxu0 %v730_v11  ;;  %3866 = vperm.xlu1 %6914, %v3724_v38   ;;  %v6251_v11 = vcombine.high %v7834_v41, %v7839_v22  ;;  %v740_v29 = vpack.c.bf16 %v596_v7, %v594_v51  ;;  %v600_v37 = vld [vmem:[%s7092_s24 + $0x718] sm:$0xff]  ;;  %v4239_v38 = vld [vmem:[%s9950_s3 + $0xb0] sm:$0xff]  ;;  %v4242_v41 = vld [vmem:[%s9950_s3 + $0xc8] sm:$0xff] }
  0xa6   : > { %2426 = vmatmul.mubr.bf16.gmra.mrb[40].mxu1 %v6226_v2  ;;  %4373 = vperm.xlu0 %6913, %v4235_v4   ;;  %v737_v2 = vpack.c.bf16 %v591_v31, %v589_v47  ;;  %v606_v4 = vld [vmem:[%s7092_s24 + $0x748] sm:$0xff]  ;;  %v819_v47 = vld [vmem:[%s9948_s1 + $0x1f0] sm:$0xff]  ;;  %v4244_v7 = vld [vmem:[%s9950_s3 + $0xd8] sm:$0xff] }
  0xa7   : > { %3042 = vmatmul.mubr.bf16.gmra.mrb[4].mxu0 %v6158_v0  ;;  %2435 = vmatprep.mubr.bf16.mxu1 %v6235_v5  ;;  %v598_v0 = vld [vmem:[%s7092_s24 + $0x708] sm:$0xff]  ;;  %v3728_v5 = vld [vmem:[%s9949_s2 + $0xb8] sm:$0xff]  ;;  %v4249_v34 = vld [vmem:[%s9950_s3 + $0x100] sm:$0xff] }
  0xa8   : > { %3051 = vmatprep.mubr.bf16.mxu0 %v6167_v48  ;;  %3357 = vmatpush1.bf16.msra.mxu0 %v729_v18  ;;  %v873_v48 = vld [vmem:[%s9948_s1 + $0x3a0] sm:$0xff]  ;;  %v7890_v18 = vld [vmem:[%s9948_s1 + $0x150] sm:$0xff]  ;;  %v742_v49 = vpack.c.bf16 %v600_v37, %v598_v0 }
  0xa9   : > { %3358 = vmatprep.subr.bf16.mxu0 %v732_v1  ;;  %4378 = vperm.xlu1 %6914, %v4236_v20   ;;  %v739_v1 = vpack.c.bf16 %v595_v19, %v593_v3  ;;  %v6190_v17 = vcombine.low %v7890_v18, %v803_v6  ;;  %v609_v3 = vld [vmem:[%s7092_s24 + $0x760] sm:$0xff]  ;;  %v611_v19 = vld [vmem:[%s7092_s24 + $0x770] sm:$0xff] }
  0xaa   : > { %3871 = vperm.xlu0 %6913, %v3725_v53   ;;  %6468 = vmatpush1.bf16.msra.mxu1 %v7292_v50  ;;  %v601_v50 = vld [vmem:[%s7092_s24 + $0x720] sm:$0xff]  ;;  %v6258_v53 = vcombine.low %v869_v42, %v873_v48  ;;  %v827_v0 = vld [vmem:[%s9948_s1 + $0x230] sm:$0xff] }
  0xab   : > { %6453 = vmatprep.subr.bf16.mxu1 %v7298_v58  ;;  %v877_v58 = vld [vmem:[%s9948_s1 + $0x3c0] sm:$0xff] }
  0xac   : > { %3359 = vmatpush1.bf16.msra.mxu0 %v731_v43  ;;  %v6259_v43 = vcombine.high %v869_v42, %v873_v48  ;;  %v4245_v48 = vld [vmem:[%s9950_s3 + $0xe0] sm:$0xff] }
  0xad   : > { %3360 = vmatprep.subr.bf16.mxu0 %v734_v30  ;;  %3876 = vperm.xlu1 %6914, %v3726_v25   ;;  %v6191_v30 = vcombine.high %v7890_v18, %v803_v6  ;;  %v4246_v6 = vld [vmem:[%s9950_s3 + $0xe8] sm:$0xff] }
  0xae   : > { %2436 = vmatmul.mubr.bf16.gmra.mrb[44].mxu1 %v6234_v62  ;;  %4383 = vperm.xlu0 %6913, %v4237_v57   ;;  %v603_v62 = vld [vmem:[%s7092_s24 + $0x730] sm:$0xff] }
  0xaf   : > { %3052 = vmatmul.mubr.bf16.gmra.mrb[8].mxu0 %v6166_v28  ;;  %2445 = vmatprep.mubr.bf16.mxu1 %v6243_v52  ;;  %v881_v28 = vld [vmem:[%s9948_s1 + $0x3e0] sm:$0xff]  ;;  %v807_v52 = vld [vmem:[%s9948_s1 + $0x190] sm:$0xff]  ;;  %v743_v20 = vpack.c.bf16 %v603_v62, %v601_v50 }
  0xb0   : > { %3061 = vmatprep.mubr.bf16.mxu0 %v6175_v36  ;;  %3361 = vmatpush1.bf16.msra.mxu0 %v733_v40  ;;  %v608_v36 = vld [vmem:[%s7092_s24 + $0x758] sm:$0xff]  ;;  %v811_v40 = vld [vmem:[%s9948_s1 + $0x1b0] sm:$0xff]  ;;  %v6267_v25 = vcombine.high %v877_v58, %v881_v28  ;;  %v6266_v31 = vcombine.low %v877_v58, %v881_v28  ;;  %v909_v50 = vld [vmem:[%s9948_s1 + $0x4c0] sm:$0xff] }
  0xb1   : > { %3362 = vmatprep.subr.bf16.mxu0 %v736_v8  ;;  %4388 = vperm.xlu1 %6914, %v4238_v13   ;;  %v746_v8 = vpack.c.bf16 %v608_v36, %v606_v4  ;;  %v6199_v22 = vcombine.high %v807_v52, %v811_v40  ;;  %v6198_v57 = vcombine.low %v807_v52, %v811_v40  ;;  %v897_v13 = vld [vmem:[%s9948_s1 + $0x460] sm:$0xff]  ;;  %v3738_v58 = vld [vmem:[%s9949_s2 + $0x108] sm:$0xff]  ;;  %v616_v4 = vld [vmem:[%s7092_s24 + $0x798] sm:$0xff] }
  0xb2   : > { %3881 = vperm.xlu0 %6913, %v3727_v16   ;;  %6469 = vmatpush1.bf16.msra.mxu1 %v7306_v12  ;;  %v3731_v12 = vld [vmem:[%s9949_s2 + $0xd0] sm:$0xff]  ;;  %v3737_v62 = vld [vmem:[%s9949_s2 + $0x100] sm:$0xff] }
  0xb3   : > { %6454 = vmatprep.subr.bf16.mxu1 %v7311_v23  ;;  %v885_v23 = vld [vmem:[%s9948_s1 + $0x400] sm:$0xff]  ;;  %v823_v16 = vld [vmem:[%s9948_s1 + $0x210] sm:$0xff] }
  0xb4   : > { %3363 = vmatpush1.bf16.msra.mxu0 %v735_v61  ;;  %v3732_v61 = vld [vmem:[%s9949_s2 + $0xd8] sm:$0xff]  ;;  %v6275_v51 = vcombine.high %v885_v23, %v889_v46  ;;  %v6274_v42 = vcombine.low %v885_v23, %v889_v46  ;;  %v613_v28 = vld [vmem:[%s7092_s24 + $0x780] sm:$0xff]  ;;  %v615_v52 = vld [vmem:[%s7092_s24 + $0x790] sm:$0xff] }
  0xb5   : > { %3364 = vmatprep.subr.bf16.mxu0 %v738_v63  ;;  %3886 = vperm.xlu1 %6914, %v3728_v5   ;;  %v815_v63 = vld [vmem:[%s9948_s1 + $0x1d0] sm:$0xff]  ;;  %v747_v5 = vpack.c.bf16 %v611_v19, %v609_v3  ;;  %v620_v3 = vld [vmem:[%s7092_s24 + $0x7b8] sm:$0xff]  ;;  %v617_v19 = vld [vmem:[%s7092_s24 + $0x7a0] sm:$0xff] }
  0xb6   : > { %2446 = vmatmul.mubr.bf16.gmra.mrb[48].mxu1 %v6242_v39  ;;  %4393 = vperm.xlu0 %6913, %v4239_v38   ;;  %v4243_v39 = vld [vmem:[%s9950_s3 + $0xd0] sm:$0xff]  ;;  %v6206_v18 = vcombine.low %v815_v63, %v819_v47  ;;  %v905_v38 = vld [vmem:[%s9948_s1 + $0x4a0] sm:$0xff] }
  0xb7   : > { %3062 = vmatmul.mubr.bf16.gmra.mrb[12].mxu0 %v6174_v10  ;;  %2455 = vmatprep.mubr.bf16.mxu1 %v6251_v11  ;;  %v6207_v10 = vcombine.high %v815_v63, %v819_v47  ;;  %v3733_v11 = vld [vmem:[%s9949_s2 + $0xe0] sm:$0xff]  ;;  %v843_v36 = vld [vmem:[%s9948_s1 + $0x2b0] sm:$0xff] }
  0xb8   : > { %3071 = vmatprep.mubr.bf16.mxu0 %v6183_v15  ;;  %3365 = vmatpush1.bf16.msra.mxu0 %v737_v2  ;;  %v3734_v15 = vld [vmem:[%s9949_s2 + $0xe8] sm:$0xff]  ;;  %v847_v46 = vld [vmem:[%s9948_s1 + $0x2d0] sm:$0xff] }
  0xb9   : > { %3366 = vmatprep.subr.bf16.mxu0 %v740_v29  ;;  %4398 = vperm.xlu1 %6914, %v4240_v44   ;;  %v610_v2 = vld [vmem:[%s7092_s24 + $0x768] sm:$0xff]  ;;  %v612_v29 = vld [vmem:[%s7092_s24 + $0x778] sm:$0xff]  ;;  %v6214_v44 = vcombine.low %v823_v16, %v827_v0  ;;  %v851_v63 = vld [vmem:[%s9948_s1 + $0x2f0] sm:$0xff] }
  0xba   : > { %3891 = vperm.xlu0 %6913, %v3729_v45   ;;  %6470 = vmatpush1.bf16.msra.mxu1 %v7318_v35  ;;  %v893_v35 = vld [vmem:[%s9948_s1 + $0x440] sm:$0xff]  ;;  %v748_v37 = vpack.c.bf16 %v612_v29, %v610_v2  ;;  %v3742_v2 = vld [vmem:[%s9949_s2 + $0x128] sm:$0xff] }
  0xbb   : > { %v913_v45 = vld [vmem:[%s9948_s1 + $0x4e0] sm:$0xff]  ;;  %v618_v29 = vld [vmem:[%s7092_s24 + $0x7a8] sm:$0xff] }
  0xbc   : > { %3367 = vmatpush1.bf16.msra.mxu0 %v739_v1  ;;  %v6283_v1 = vcombine.high %v893_v35, %v897_v13  ;;  %v6298_v47 = vcombine.low %v909_v50, %v913_v45 }
  0xbd   : > { %3368 = vmatprep.subr.bf16.mxu0 %v742_v49  ;;  %3896 = vperm.xlu1 %6914, %v3730_v59   ;;  %v6215_v49 = vcombine.high %v823_v16, %v827_v0  ;;  %v614_v59 = vld [vmem:[%s7092_s24 + $0x788] sm:$0xff]  ;;  %v619_v16 = vld [vmem:[%s7092_s24 + $0x7b0] sm:$0xff] }
  0xbe   : > { %2456 = vmatmul.mubr.bf16.gmra.mrb[52].mxu1 %v6250_v55  ;;  %4403 = vperm.xlu0 %6913, %v4241_v54   ;;  %v901_v55 = vld [vmem:[%s9948_s1 + $0x480] sm:$0xff]  ;;  %v750_v40 = vpack.c.bf16 %v616_v4, %v614_v59  ;;  %v6299_v54 = vcombine.high %v909_v50, %v913_v45  ;;  %v855_v0 = vld [vmem:[%s9948_s1 + $0x310] sm:$0xff] }
  0xbf   : > { %3072 = vmatmul.mubr.bf16.gmra.mrb[16].mxu0 %v6182_v27  ;;  %2465 = vmatprep.mubr.bf16.mxu1 %v6259_v43  ;;  %v6282_v27 = vcombine.low %v893_v35, %v897_v13  ;;  %v4247_v43 = vld [vmem:[%s9950_s3 + $0xf0] sm:$0xff]  ;;  %v6290_v14 = vcombine.low %v901_v55, %v905_v38  ;;  %v925_v35 = vld [vmem:[%s9948_s1 + $0x540] sm:$0xff] }
  0xc0   : > { %3081 = vmatprep.mubr.bf16.mxu0 %v6191_v30  ;;  %3369 = vmatpush1.bf16.msra.mxu0 %v741_v32  ;;  %v6291_v30 = vcombine.high %v901_v55, %v905_v38  ;;  %v4248_v32 = vld [vmem:[%s9950_s3 + $0xf8] sm:$0xff]  ;;  %v3741_v13 = vld [vmem:[%s9949_s2 + $0x120] sm:$0xff]  ;;  %v3743_v38 = vld [vmem:[%s9949_s2 + $0x130] sm:$0xff] }
  0xc1   : > { %3370 = vmatprep.subr.bf16.mxu0 %v744_v56  ;;  %4408 = vperm.xlu1 %6914, %v4242_v41   ;;  %v6223_v56 = vcombine.high %v831_v24, %v835_v26  ;;  %v4255_v50 = vld [vmem:[%s9950_s3 + $0x130] sm:$0xff] }
  0xc2   : > { %3901 = vperm.xlu0 %6913, %v3731_v12   ;;  %v917_v12 = vld [vmem:[%s9948_s1 + $0x500] sm:$0xff] }
  0xc4   : > { %3371 = vmatpush1.bf16.msra.mxu0 %v743_v20  ;;  %v839_v20 = vld [vmem:[%s9948_s1 + $0x290] sm:$0xff]  ;;  %v8050_v41 = vpop.permute.xlu0 %3771 }
  0xc5   : > { %3372 = vmatprep.subr.bf16.mxu0 %v746_v8  ;;  %3906 = vperm.xlu1 %6914, %v3732_v61   ;;  %v749_v8 = vpack.c.bf16 %v615_v52, %v613_v28  ;;  %v921_v61 = vld [vmem:[%s9948_s1 + $0x520] sm:$0xff] }
  0xc6   : > { %2466 = vmatmul.mubr.bf16.gmra.mrb[56].mxu1 %v6258_v53  ;;  %4413 = vperm.xlu0 %6913, %v4243_v39   ;;  %v6222_v53 = vcombine.low %v831_v24, %v835_v26  ;;  %v6230_v39 = vcombine.low %v839_v20, %v843_v36  ;;  %v3744_v26 = vld [vmem:[%s9949_s2 + $0x138] sm:$0xff]  ;;  %v941_v28 = vld [vmem:[%s9948_s1 + $0x5c0] sm:$0xff] }
  0xc7   : > { %3082 = vmatmul.mubr.bf16.gmra.mrb[20].mxu0 %v6190_v17  ;;  %2475 = vmatprep.mubr.bf16.mxu1 %v6267_v25  ;;  %v4250_v17 = vld [vmem:[%s9950_s3 + $0x108] sm:$0xff]  ;;  %v6231_v25 = vcombine.high %v839_v20, %v843_v36  ;;  %v3745_v52 = vld [vmem:[%s9949_s2 + $0x140] sm:$0xff] }
  0xc8   : > { %3091 = vmatprep.mubr.bf16.mxu0 %v6199_v22  ;;  %3373 = vmatpush1.bf16.msra.mxu0 %v745_v60  ;;  %v3739_v22 = vld [vmem:[%s9949_s2 + $0x110] sm:$0xff]  ;;  %v3740_v60 = vld [vmem:[%s9949_s2 + $0x118] sm:$0xff]  ;;  %v945_v20 = vld [vmem:[%s9948_s1 + $0x5e0] sm:$0xff] }
  0xc9   : > { %4418 = vperm.xlu1 %6914, %v4244_v7   ;;  %3374 = vmatprep.subr.bf16.mxu0 %v748_v37  ;;  %v4252_v7 = vld [vmem:[%s9950_s3 + $0x118] sm:$0xff]  ;;  %v859_v37 = vld [vmem:[%s9948_s1 + $0x330] sm:$0xff]  ;;  %v3746_v36 = vld [vmem:[%s9949_s2 + $0x148] sm:$0xff] }
  0xca   : > { %3911 = vperm.xlu0 %6913, %v3733_v11  }
  0xcc   : > { %3375 = vmatpush1.bf16.msra.mxu0 %v747_v5 }
  0xcd   : > { %3916 = vperm.xlu1 %6914, %v3734_v15   ;;  %3376 = vmatprep.subr.bf16.mxu0 %v750_v40  ;;  %v8064_v23 = vpop.permute.xlu1 %4283  ;;  %v929_v15 = vld [vmem:[%s9948_s1 + $0x560] sm:$0xff]  ;;  %v622_v40 = vld [vmem:[%s7092_s24 + $0x7c8] sm:$0xff] }
  0xce   : > { %2476 = vmatmul.mubr.bf16.gmra.mrb[60].mxu1 %v6266_v31  ;;  %4423 = vperm.xlu0 %6913, %v4245_v48   ;;  %v4251_v31 = vld [vmem:[%s9950_s3 + $0x110] sm:$0xff]  ;;  %v751_v48 = vpack.c.bf16 %v619_v16, %v617_v19 }
  0xcf   : > { %3092 = vmatmul.mubr.bf16.gmra.mrb[24].mxu0 %v6198_v57  ;;  %2485 = vmatprep.mubr.bf16.mxu1 %v6275_v51  ;;  %v6307_v57 = vcombine.high %v917_v12, %v921_v61 }
  0xd0   : > { %3101 = vmatprep.mubr.bf16.mxu0 %v6207_v10  ;;  %3377 = vmatpush1.bf16.msra.mxu0 %v749_v8  ;;  %v8075_v51 = vpop.permute.xlu0 %3776  ;;  %v6239_v10 = vcombine.high %v847_v46, %v851_v63 }
  0xd1   : > { %4428 = vperm.xlu1 %6914, %v4246_v6   ;;  %v6238_v6 = vcombine.low %v847_v46, %v851_v63  ;;  %v6331_v46 = vcombine.high %v941_v28, %v945_v20 }
  0xd2   : > { %3921 = vperm.xlu0 %6913, %v3735_v21   ;;  %v4254_v21 = vld [vmem:[%s9950_s3 + $0x128] sm:$0xff] }
  0xd5   : > { %3926 = vperm.xlu1 %6914, %v3736_v33   ;;  %v6247_v33 = vcombine.high %v855_v0, %v859_v37 }
  0xd6   : > { %2486 = vmatmul.mubr.bf16.gmra.mrb[64].mxu1 %v6274_v42  ;;  %4433 = vperm.xlu0 %6913, %v4247_v43   ;;  %v752_v42 = vpack.c.bf16 %v620_v3, %v618_v29  ;;  %v937_v43 = vld [vmem:[%s9948_s1 + $0x5a0] sm:$0xff]  ;;  %v6330_v29 = vcombine.low %v941_v28, %v945_v20  ;;  %v4259_v3 = vld [vmem:[%s9950_s3 + $0x150] sm:$0xff] }
  0xd7   : > { %3102 = vmatmul.mubr.bf16.gmra.mrb[28].mxu0 %v6206_v18  ;;  %2495 = vmatprep.mubr.bf16.mxu1 %v6283_v1  ;;  %v6306_v18 = vcombine.low %v917_v12, %v921_v61  ;;  %v4253_v1 = vld [vmem:[%s9950_s3 + $0x120] sm:$0xff]  ;;  %v3751_v20 = vld [vmem:[%s9949_s2 + $0x170] sm:$0xff] }
  0xd8   : > { %3111 = vmatprep.mubr.bf16.mxu0 %v6215_v49  ;;  %v6315_v49 = vcombine.high %v925_v35, %v929_v15  ;;  %3378 = vmatprep.subr.bf16.mxu0 %v752_v42  ;;  %v4257_v12 = vld [vmem:[%s9950_s3 + $0x140] sm:$0xff] }
  0xd9   : > { %4438 = vperm.xlu1 %6914, %v4248_v32   ;;  %v8083_v11 = vpop.permute.xlu1 %4288  ;;  %3379 = vmatpush1.bf16.msra.mxu0 %v751_v48  ;;  %v6314_v32 = vcombine.low %v925_v35, %v929_v15  ;;  %v953_v35 = vld [vmem:[%s9948_s1 + $0x620] sm:$0xff]  ;;  %v883_v15 = vld [vmem:[%s9948_s1 + $0x3f0] sm:$0xff] }
  0xda   : > { %3931 = vperm.xlu0 %6913, %v3737_v62   ;;  %v6246_v62 = vcombine.low %v855_v0, %v859_v37  ;;  %v4260_v0 = vld [vmem:[%s9950_s3 + $0x158] sm:$0xff]  ;;  %v957_v48 = vld [vmem:[%s9948_s1 + $0x640] sm:$0xff] }
  0xdd   : > { %3936 = vperm.xlu1 %6914, %v3738_v58   ;;  %v4256_v58 = vld [vmem:[%s9950_s3 + $0x138] sm:$0xff] }
  0xde   : > { %2496 = vmatmul.mubr.bf16.gmra.mrb[68].mxu1 %v6282_v27  ;;  %4443 = vperm.xlu0 %6913, %v4249_v34   ;;  %v933_v27 = vld [vmem:[%s9948_s1 + $0x580] sm:$0xff] }
  0xdf   : > { %3112 = vmatmul.mubr.bf16.gmra.mrb[32].mxu0 %v6214_v44  ;;  %2505 = vmatprep.mubr.bf16.mxu1 %v6291_v30  ;;  %v863_v44 = vld [vmem:[%s9948_s1 + $0x350] sm:$0xff]  ;;  %v6323_v45 = vcombine.high %v933_v27, %v937_v43  ;;  %v621_v34 = vld [vmem:[%s7092_s24 + $0x7c0] sm:$0xff] }
  0xe0   : > { %3121 = vmatprep.mubr.bf16.mxu0 %v6223_v56  ;;  %v8104_v5 = vpop.permute.xlu0 %3781  ;;  %v867_v30 = vld [vmem:[%s9948_s1 + $0x370] sm:$0xff] }
  0xe1   : > { %4448 = vperm.xlu1 %6914, %v4250_v17   ;;  %v8112_v55 = vpop.permute.xlu1 %3786  ;;  %v6255_v59 = vcombine.high %v863_v44, %v867_v30  ;;  %v875_v17 = vld [vmem:[%s9948_s1 + $0x3b0] sm:$0xff]  ;;  %v6254_v61 = vcombine.low %v863_v44, %v867_v30 }
  0xe2   : > { %3941 = vperm.xlu0 %6913, %v3739_v22  }
  0xe4   : > { %v8117_v24 = vpop.permute.xlu0 %4293 }
  0xe5   : > { %3946 = vperm.xlu1 %6914, %v3740_v60   ;;  %v8134_v56 = vpop.permute.xlu1 %4298  ;;  %v6322_v60 = vcombine.low %v933_v27, %v937_v43  ;;  %v887_v27 = vld [vmem:[%s9948_s1 + $0x410] sm:$0xff] }
  0xe6   : > { %2506 = vmatmul.mubr.bf16.gmra.mrb[72].mxu1 %v6290_v14  ;;  %4453 = vperm.xlu0 %6913, %v4251_v31   ;;  %v624_v14 = vld [vmem:[%s7092_s24 + $0x7d8] sm:$0xff]  ;;  %v891_v43 = vld [vmem:[%s9948_s1 + $0x430] sm:$0xff] }
  0xe7   : > { %3122 = vmatmul.mubr.bf16.gmra.mrb[36].mxu0 %v6222_v53  ;;  %2515 = vmatprep.mubr.bf16.mxu1 %v6299_v54  ;;  %v623_v53 = vld [vmem:[%s7092_s24 + $0x7d0] sm:$0xff]  ;;  %v6279_v28 = vcombine.high %v887_v27, %v891_v43 }
  0xe8   : > { %3131 = vmatprep.mubr.bf16.mxu0 %v6231_v25  ;;  %v8142_v4 = vpop.permute.xlu0 %3791  ;;  %v871_v54 = vld [vmem:[%s9948_s1 + $0x390] sm:$0xff]  ;;  %v754_v25 = vpack.c.bf16 %v624_v14, %v622_v40  ;;  %v753_v22 = vpack.c.bf16 %v623_v53, %v621_v34  ;;  %v965_v40 = vld [vmem:[%s9948_s1 + $0x680] sm:$0xff] }
  0xe9   : > { %4458 = vperm.xlu1 %6914, %v4252_v7   ;;  %v8157_v8 = vpop.permute.xlu1 %3796  ;;  %v6263_v31 = vcombine.high %v871_v54, %v875_v17  ;;  %v3748_v7 = vld [vmem:[%s9949_s2 + $0x158] sm:$0xff]  ;;  %v6262_v19 = vcombine.low %v871_v54, %v875_v17  ;;  %v969_v14 = vld [vmem:[%s9948_s1 + $0x6a0] sm:$0xff]  ;;  %v895_v53 = vld [vmem:[%s9948_s1 + $0x450] sm:$0xff] }
  0xea   : > { %3951 = vperm.xlu0 %6913, %v3741_v13   ;;  %3380 = vmatprep.subr.bf16.mxu0 %v754_v25  ;;  %v879_v13 = vld [vmem:[%s9948_s1 + $0x3d0] sm:$0xff] }
  0xeb   : > { %3381 = vmatpush1.bf16.msra.mxu0 %v753_v22  ;;  %v6271_v37 = vcombine.high %v879_v13, %v883_v15  ;;  %v899_v54 = vld [vmem:[%s9948_s1 + $0x470] sm:$0xff]  ;;  %v6278_v22 = vcombine.low %v887_v27, %v891_v43 }
  0xec   : > { %v8171_v63 = vpop.permute.xlu0 %4303  ;;  %v4263_v25 = vld [vmem:[%s9950_s3 + $0x170] sm:$0xff] }
  0xed   : > { %3956 = vperm.xlu1 %6914, %v3742_v2  }
  0xee   : > { %2516 = vmatmul.mubr.bf16.gmra.mrb[76].mxu1 %v6298_v47  ;;  %4463 = vperm.xlu0 %6913, %v4253_v1   ;;  %v4258_v47 = vld [vmem:[%s9950_s3 + $0x148] sm:$0xff]  ;;  %v961_v1 = vld [vmem:[%s9948_s1 + $0x660] sm:$0xff] }
  0xef   : > { %3132 = vmatmul.mubr.bf16.gmra.mrb[40].mxu0 %v6230_v39  ;;  %2525 = vmatprep.mubr.bf16.mxu1 %v6307_v57  ;;  %v8176_v39 = vpop.permute.xlu1 %4308  ;;  %v3747_v57 = vld [vmem:[%s9949_s2 + $0x150] sm:$0xff]  ;;  %v6346_v17 = vcombine.low %v957_v48, %v961_v1 }
  0xf0   : > { %3141 = vmatprep.mubr.bf16.mxu0 %v6239_v10  ;;  %v949_v10 = vld [vmem:[%s9948_s1 + $0x600] sm:$0xff]  ;;  %v8196_v2 = vpop.permute.xlu0 %3801 }
  0xf1   : > { %4468 = vperm.xlu1 %6914, %v4254_v21   ;;  %v6339_v16 = vcombine.high %v949_v10, %v953_v35  ;;  %v626_v21 = vld [vmem:[%s7092_s24 + $0x7e8] sm:$0xff] }
  0xf2   : > { %3961 = vperm.xlu0 %6913, %v3743_v38   ;;  %v625_v38 = vld [vmem:[%s7092_s24 + $0x7e0] sm:$0xff] }
  0xf3   : > { %v8204_v42 = vpop.permute.xlu1 %3806 }
  0xf5   : > { %3966 = vperm.xlu1 %6914, %v3744_v26   ;;  %v627_v26 = vld [vmem:[%s7092_s24 + $0x7f0] sm:$0xff] }
  0xf6   : > { %2526 = vmatmul.mubr.bf16.gmra.mrb[80].mxu1 %v6306_v18  ;;  %4473 = vperm.xlu0 %6913, %v4255_v50   ;;  %v3749_v18 = vld [vmem:[%s9949_s2 + $0x160] sm:$0xff]  ;;  %v755_v30 = vpack.c.bf16 %v627_v26, %v625_v38  ;;  %v911_v38 = vld [vmem:[%s9948_s1 + $0x4d0] sm:$0xff] }
  0xf7   : > { %3142 = vmatmul.mubr.bf16.gmra.mrb[44].mxu0 %v6238_v6  ;;  %2535 = vmatprep.mubr.bf16.mxu1 %v6315_v49  ;;  %v8215_v6 = vpop.permute.xlu0 %4313  ;;  %v3750_v49 = vld [vmem:[%s9949_s2 + $0x168] sm:$0xff]  ;;  %v8230_v50 = vpop.permute.xlu1 %4318  ;;  %v915_v26 = vld [vmem:[%s9948_s1 + $0x4f0] sm:$0xff] }
  0xf8   : > { %3151 = vmatprep.mubr.bf16.mxu0 %v6247_v33  ;;  %v628_v33 = vld [vmem:[%s7092_s24 + $0x7f8] sm:$0xff] }
  0xf9   : > { %4478 = vperm.xlu1 %6914, %v4256_v58   ;;  %v756_v44 = vpack.c.bf16 %v628_v33, %v626_v21  ;;  %v6347_v58 = vcombine.high %v957_v48, %v961_v1  ;;  %v981_v21 = vld [vmem:[%s9948_s1 + $0x700] sm:$0xff] }
  0xfa   : > { %3971 = vperm.xlu0 %6913, %v3745_v52   ;;  %v985_v33 = vld [vmem:[%s9948_s1 + $0x720] sm:$0xff] }
  0xfb   : > { %3382 = vmatprep.subr.bf16.mxu0 %v756_v44  ;;  %v8238_v52 = vpop.permute.xlu0 %3811  ;;  %v8252_v34 = vpop.permute.xlu1 %3816  ;;  %v4267_v44 = vld [vmem:[%s9950_s3 + $0x190] sm:$0xff] }
  0xfc   : > { %3383 = vmatpush1.bf16.msra.mxu0 %v755_v30 }
  0xfd   : > { %3976 = vperm.xlu1 %6914, %v3746_v36   ;;  %v3752_v36 = vld [vmem:[%s9949_s2 + $0x178] sm:$0xff] }
  0xfe   : > { %2536 = vmatmul.mubr.bf16.gmra.mrb[84].mxu1 %v6314_v32  ;;  %4483 = vperm.xlu0 %6913, %v4257_v12   ;;  %v6338_v32 = vcombine.low %v949_v10, %v953_v35  ;;  %v977_v10 = vld [vmem:[%s9948_s1 + $0x6e0] sm:$0xff]  ;;  %v903_v35 = vld [vmem:[%s9948_s1 + $0x490] sm:$0xff] }
  0xff   : > { %3152 = vmatmul.mubr.bf16.gmra.mrb[48].mxu0 %v6246_v62  ;;  %2545 = vmatprep.mubr.bf16.mxu1 %v6323_v45  ;;  %v4261_v62 = vld [vmem:[%s9950_s3 + $0x160] sm:$0xff]  ;;  %v6270_v45 = vcombine.low %v879_v13, %v883_v15  ;;  %v8263_v12 = vpop.permute.xlu0 %4323  ;;  %v907_v13 = vld [vmem:[%s9948_s1 + $0x4b0] sm:$0xff] }
 0x100   : > { %3161 = vmatprep.mubr.bf16.mxu0 %v6255_v59  ;;  %v4262_v59 = vld [vmem:[%s9950_s3 + $0x168] sm:$0xff]  ;;  %v6294_v30 = vcombine.low %v903_v35, %v907_v13 }
 0x101   : > { %4488 = vperm.xlu1 %6914, %v4258_v47   ;;  %v8268_v47 = vpop.permute.xlu1 %4328 }
 0x102   : > { %3981 = vperm.xlu0 %6913, %v3747_v57   ;;  %v3754_v57 = vld [vmem:[%s9949_s2 + $0x188] sm:$0xff] }
 0x103   : > { %v8288_v15 = vpop.permute.xlu0 %3821 }
 0x105   : > { %3986 = vperm.xlu1 %6914, %v3748_v7   ;;  %v973_v7 = vld [vmem:[%s9948_s1 + $0x6c0] sm:$0xff]  ;;  %v8296_v48 = vpop.permute.xlu1 %3826 }
 0x106   : > { %2546 = vmatmul.mubr.bf16.gmra.mrb[88].mxu1 %v6322_v60  ;;  %4493 = vperm.xlu0 %6913, %v4259_v3   ;;  %v6355_v60 = vcombine.high %v965_v40, %v969_v14  ;;  %v4265_v3 = vld [vmem:[%s9950_s3 + $0x180] sm:$0xff]  ;;  %10003 = vst [vmem:[#allocation2_spill] sm:$0xff] %v8296_v48  ;;  %v6362_v27 = vcombine.low %v973_v7, %v977_v10 }
 0x107   : > { %3162 = vmatmul.mubr.bf16.gmra.mrb[52].mxu0 %v6254_v61  ;;  %2555 = vmatprep.mubr.bf16.mxu1 %v6331_v46  ;;  %v4264_v61 = vld [vmem:[%s9950_s3 + $0x178] sm:$0xff]  ;;  %v6287_v46 = vcombine.high %v895_v53, %v899_v54  ;;  %v8301_v1 = vpop.permute.xlu0 %4333 }
 0x108   : > { %3171 = vmatprep.mubr.bf16.mxu0 %v6263_v31  ;;  %v3753_v31 = vld [vmem:[%s9949_s2 + $0x180] sm:$0xff]  ;;  %10004 = vst [vmem:[#allocation3_spill] sm:$0xff] %v8301_v1 }
 0x109   : > { %4498 = vperm.xlu1 %6914, %v4260_v0   ;;  %v4266_v0 = vld [vmem:[%s9950_s3 + $0x188] sm:$0xff]  ;;  %v8318_v43 = vpop.permute.xlu1 %4338 }
 0x10a   : > { %3991 = vperm.xlu0 %6913, %v3749_v18   ;;  %v3755_v18 = vld [vmem:[%s9949_s2 + $0x190] sm:$0xff]  ;;  %10005 = vst [vmem:[#allocation4_spill] sm:$0xff] %v8318_v43  ;;  %v5724_v43 = vld [vmem:[%s9953_s6 + $0x8] sm:$0xff] }
 0x10d   : > { %3996 = vperm.xlu1 %6914, %v3750_v49   ;;  %v3756_v49 = vld [vmem:[%s9949_s2 + $0x198] sm:$0xff] }
 0x10e   : > { %2556 = vmatmul.mubr.bf16.gmra.mrb[92].mxu1 %v6330_v29  ;;  %4503 = vperm.xlu0 %6913, %v4261_v62   ;;  %v6354_v29 = vcombine.low %v965_v40, %v969_v14  ;;  %v4268_v62 = vld [vmem:[%s9950_s3 + $0x198] sm:$0xff]  ;;  %v8340_v40 = vpop.permute.xlu1 %3836 }
 0x10f   : > { %3172 = vmatmul.mubr.bf16.gmra.mrb[56].mxu0 %v6262_v19  ;;  %2565 = vmatprep.mubr.bf16.mxu1 %v6339_v16  ;;  %v6286_v19 = vcombine.low %v895_v53, %v899_v54  ;;  %v6363_v16 = vcombine.high %v973_v7, %v977_v10  ;;  %10007 = vst [vmem:[#allocation6_spill] sm:$0xff] %v8340_v40  ;;  %v919_v53 = vld [vmem:[%s9948_s1 + $0x510] sm:$0xff]  ;;  %v3760_v10 = vld [vmem:[%s9949_s2 + $0x1b8] sm:$0xff] }
 0x110   : > { %3181 = vmatprep.mubr.bf16.mxu0 %v6271_v37  ;;  %v6295_v37 = vcombine.high %v903_v35, %v907_v13  ;;  %v923_v54 = vld [vmem:[%s9948_s1 + $0x530] sm:$0xff]  ;;  %v997_v13 = vld [vmem:[%s9948_s1 + $0x780] sm:$0xff] }
 0x111   : > { %4508 = vperm.xlu1 %6914, %v4262_v59   ;;  %v3757_v59 = vld [vmem:[%s9949_s2 + $0x1a0] sm:$0xff]  ;;  %v3759_v7 = vld [vmem:[%s9949_s2 + $0x1b0] sm:$0xff] }
 0x112   : > { %4001 = vperm.xlu0 %6913, %v3751_v20   ;;  %v989_v20 = vld [vmem:[%s9948_s1 + $0x740] sm:$0xff] }
 0x115   : > { %4006 = vperm.xlu1 %6914, %v3752_v36   ;;  %v993_v36 = vld [vmem:[%s9948_s1 + $0x760] sm:$0xff] }
 0x116   : > { %2566 = vmatmul.mubr.bf16.gmra.mrb[96].mxu1 %v6338_v32  ;;  %4513 = vperm.xlu0 %6913, %v4263_v25   ;;  %v6371_v32 = vcombine.high %v981_v21, %v985_v33  ;;  %v4269_v25 = vld [vmem:[%s9950_s3 + $0x1a0] sm:$0xff] }
 0x117   : > { %3182 = vmatmul.mubr.bf16.gmra.mrb[60].mxu0 %v6270_v45  ;;  %2575 = vmatprep.mubr.bf16.mxu1 %v6347_v58  ;;  %v6303_v45 = vcombine.high %v911_v38, %v915_v26  ;;  %v8326_v58 = vpop.permute.xlu0 %3831 }
 0x118   : > { %3191 = vmatprep.mubr.bf16.mxu0 %v6279_v28  ;;  %10006 = vst [vmem:[#allocation5_spill] sm:$0xff] %v8326_v58  ;;  %v3758_v28 = vld [vmem:[%s9949_s2 + $0x1a8] sm:$0xff] }
 0x119   : > { %4518 = vperm.xlu1 %6914, %v4264_v61  }
 0x11a   : > { %4011 = vperm.xlu0 %6913, %v3753_v31   ;;  %v6311_v31 = vcombine.high %v919_v53, %v923_v54 }
 0x11b   : > { %v8353_v61 = vpop.permute.xlu0 %4343 }
 0x11c   : > { %10008 = vst [vmem:[#allocation7_spill] sm:$0xff] %v8353_v61 }
 0x11d   : > { %4016 = vperm.xlu1 %6914, %v3754_v57   ;;  %v8358_v57 = vpop.permute.xlu1 %4348 }
 0x11e   : > { %2576 = vmatmul.mubr.bf16.gmra.mrb[100].mxu1 %v6346_v17  ;;  %4523 = vperm.xlu0 %6913, %v4265_v3   ;;  %v6370_v17 = vcombine.low %v981_v21, %v985_v33  ;;  %10009 = vst [vmem:[#allocation8_spill] sm:$0xff] %v8358_v57  ;;  %v6310_v33 = vcombine.low %v919_v53, %v923_v54  ;;  %v939_v53 = vld [vmem:[%s9948_s1 + $0x5b0] sm:$0xff]  ;;  %v4280_v57 = vld [vmem:[%s9950_s3 + $0x1f8] sm:$0xff] }
 0x11f   : > { %3192 = vmatmul.mubr.bf16.gmra.mrb[64].mxu0 %v6278_v22  ;;  %2585 = vmatprep.mubr.bf16.mxu1 %v6355_v60  ;;  %v6302_v22 = vcombine.low %v911_v38, %v915_v26  ;;  %v6379_v60 = vcombine.high %v989_v20, %v993_v36  ;;  %v4272_v26 = vld [vmem:[%s9950_s3 + $0x1b8] sm:$0xff] }
 0x120   : > { %3201 = vmatprep.mubr.bf16.mxu0 %v6287_v46  ;;  %v4270_v46 = vld [vmem:[%s9950_s3 + $0x1a8] sm:$0xff] }
 0x121   : > { %4528 = vperm.xlu1 %6914, %v4266_v0   ;;  %v8382_v0 = vpop.permute.xlu0 %3841 }
 0x122   : > { %4021 = vperm.xlu0 %6913, %v3755_v18   ;;  %10010 = vst [vmem:[#allocation9_spill] sm:$0xff] %v8382_v0  ;;  %v6378_v18 = vcombine.low %v989_v20, %v993_v36  ;;  %v935_v36 = vld [vmem:[%s9948_s1 + $0x590] sm:$0xff] }
 0x125   : > { %4026 = vperm.xlu1 %6914, %v3756_v49   ;;  %v4271_v49 = vld [vmem:[%s9950_s3 + $0x1b0] sm:$0xff] }
 0x126   : > { %2586 = vmatmul.mubr.bf16.gmra.mrb[104].mxu1 %v6354_v29  ;;  %4533 = vperm.xlu0 %6913, %v4267_v44   ;;  %v1001_v29 = vld [vmem:[%s9948_s1 + $0x7a0] sm:$0xff]  ;;  %v8394_v44 = vpop.permute.xlu1 %3846 }
 0x127   : > { %3202 = vmatmul.mubr.bf16.gmra.mrb[68].mxu0 %v6286_v19  ;;  %2595 = vmatprep.mubr.bf16.mxu1 %v6363_v16  ;;  %v927_v19 = vld [vmem:[%s9948_s1 + $0x550] sm:$0xff]  ;;  %v6387_v38 = vcombine.high %v997_v13, %v1001_v29  ;;  %10011 = vst [vmem:[#allocation10_spill] sm:$0xff] %v8394_v44 }
 0x128   : > { %3211 = vmatprep.mubr.bf16.mxu0 %v6295_v37  ;;  %v931_v16 = vld [vmem:[%s9948_s1 + $0x570] sm:$0xff] }
 0x129   : > { %4538 = vperm.xlu1 %6914, %v4268_v62   ;;  %v8342_v14 = vpop.f32.mrb[0].mxu1  ;;  %v3762_v62 = vld [vmem:[%s9949_s2 + $0x1c8] sm:$0xff] }
 0x12a   : > { %4031 = vperm.xlu0 %6913, %v3757_v59   ;;  %v8366_v35 = vpop.f32.mrb[1].mxu1  ;;  %v1005_v59 = vld [vmem:[%s9948_s1 + $0x7c0] sm:$0xff] }
 0x12b   : > { %v8374_v3 = vpop.f32.mrb[2].mxu1 }
 0x12c   : > { %v8384_v37 = vpop.f32.mrb[3].mxu1 }
 0x12d   : > { %4036 = vperm.xlu1 %6914, %v3758_v28   ;;  %v1009_v28 = vld [vmem:[%s9948_s1 + $0x7e0] sm:$0xff] }
 0x12e   : > { %2596 = vmatmul.mubr.bf16.gmra.mrb[108].mxu1 %v6362_v27  ;;  %4543 = vperm.xlu0 %6913, %v4269_v25   ;;  %v6319_v27 = vcombine.high %v927_v19, %v931_v16  ;;  %v8422_v25 = vpop.permute.xlu1 %4358 }
 0x12f   : > { %3212 = vmatmul.mubr.bf16.gmra.mrb[72].mxu0 %v6294_v30  ;;  %2605 = vmatprep.mubr.bf16.mxu1 %v6371_v32  ;;  %v3761_v30 = vld [vmem:[%s9949_s2 + $0x1c0] sm:$0xff]  ;;  %v8399_v32 = vpop.permute.xlu0 %4353  ;;  %10013 = vst [vmem:[#allocation12_spill] sm:$0xff] %v8422_v25  ;;  %v4278_v25 = vld [vmem:[%s9950_s3 + $0x1e8] sm:$0xff] }
 0x130   : > { %3221 = vmatprep.mubr.bf16.mxu0 %v6303_v45  ;;  %10012 = vst [vmem:[#allocation11_spill] sm:$0xff] %v8399_v32 }
 0x131   : > { %4548 = vperm.xlu1 %6914, %v4270_v46   ;;  %v8389_v21 = vpop.f32.mrb[4].mxu1  ;;  %v6318_v46 = vcombine.low %v927_v19, %v931_v16  ;;  %v830_v16 = vld [vmem:[%s9948_s1 + $0x248] sm:$0xff] }
 0x132   : > { %4041 = vperm.xlu0 %6913, %v3759_v7   ;;  %v8404_v45 = vpop.f32.mrb[5].mxu1  ;;  %v4274_v7 = vld [vmem:[%s9950_s3 + $0x1c8] sm:$0xff] }
 0x133   : > { %v8412_v20 = vpop.f32.mrb[6].mxu1 }
 0x134   : > { %v8420_v54 = vpop.f32.mrb[7].mxu1 }
 0x135   : > { %4046 = vperm.xlu1 %6914, %v3760_v10   ;;  %v6327_v10 = vcombine.high %v935_v36, %v939_v53 }
 0x136   : > { %2606 = vmatmul.mubr.bf16.gmra.mrb[112].mxu1 %v6370_v17  ;;  %4553 = vperm.xlu0 %6913, %v4271_v49   ;;  %v6386_v17 = vcombine.low %v997_v13, %v1001_v29  ;;  %v3763_v13 = vld [vmem:[%s9949_s2 + $0x1d0] sm:$0xff]  ;;  %v3764_v29 = vld [vmem:[%s9949_s2 + $0x1d8] sm:$0xff]  ;;  %v834_v49 = vld [vmem:[%s9948_s1 + $0x268] sm:$0xff] }
 0x137   : > { %3222 = vmatmul.mubr.bf16.gmra.mrb[76].mxu0 %v6302_v22  ;;  %2615 = vmatprep.mubr.bf16.mxu1 %v6379_v60  ;;  %v4273_v22 = vld [vmem:[%s9950_s3 + $0x1c0] sm:$0xff] }
 0x138   : > { %3231 = vmatprep.mubr.bf16.mxu0 %v6311_v31  ;;  %v6395_v31 = vcombine.high %v1005_v59, %v1009_v28 }
 0x139   : > { %4558 = vperm.xlu1 %6914, %v4272_v26   ;;  %v8427_v60 = vpop.f32.mrb[8].mxu1  ;;  %v943_v26 = vld [vmem:[%s9948_s1 + $0x5d0] sm:$0xff] }
 0x13a   : > { %4051 = vperm.xlu0 %6913, %v3761_v30   ;;  %v8440_v19 = vpop.f32.mrb[9].mxu1 }
 0x13d   : > { %4056 = vperm.xlu1 %6914, %v3762_v62   ;;  %v6394_v62 = vcombine.low %v1005_v59, %v1009_v28  ;;  %v3765_v59 = vld [vmem:[%s9949_s2 + $0x1e0] sm:$0xff]  ;;  %v3766_v28 = vld [vmem:[%s9949_s2 + $0x1e8] sm:$0xff] }
 0x13e   : > { %2616 = vmatmul.mubr.bf16.gmra.mrb[116].mxu1 %v6378_v18  ;;  %v8432_v18 = vpop.permute.xlu0 %3851  ;;  %4563 = vperm.xlu0 %6913, %v4273_v22  }
 0x13f   : > { %3232 = vmatmul.mubr.bf16.gmra.mrb[80].mxu0 %v6310_v33  ;;  %2625 = vmatprep.mubr.bf16.mxu1 %v6387_v38  ;;  %10014 = vst [vmem:[#allocation13_spill] sm:$0xff] %v8432_v18  ;;  %v8448_v33 = vpop.permute.xlu1 %3856  ;;  %v8450_v38 = vpop.f32.mrb[10].mxu1 }
 0x140   : > { %3241 = vmatprep.mubr.bf16.mxu0 %v6319_v27  ;;  %10015 = vst [vmem:[#allocation14_spill] sm:$0xff] %v8448_v33  ;;  %v947_v27 = vld [vmem:[%s9948_s1 + $0x5f0] sm:$0xff]  ;;  %v8458_v30 = vpop.f32.mrb[11].mxu1 }
 0x141   : > { %4568 = vperm.xlu1 %6914, %v4274_v7   ;;  %v8463_v22 = vpop.f32.mrb[12].mxu1  ;;  %v6335_v9 = vcombine.high %v943_v26, %v947_v27 }
 0x142   : > { %4061 = vperm.xlu0 %6913, %v3763_v13   ;;  %v8465_v7 = vpop.permute.xlu0 %4363 }
 0x143   : > { %10016 = vst [vmem:[#allocation15_spill] sm:$0xff] %v8465_v7  ;;  %v8470_v13 = vpop.permute.xlu1 %4368  ;;  %v6334_v7 = vcombine.low %v943_v26, %v947_v27  ;;  %v3768_v26 = vld [vmem:[%s9949_s2 + $0x1f8] sm:$0xff] }
 0x144   : > { %10017 = vst [vmem:[#allocation16_spill] sm:$0xff] %v8470_v13  ;;  %v4277_v13 = vld [vmem:[%s9950_s3 + $0x1e0] sm:$0xff] }
 0x145   : > { %4066 = vperm.xlu1 %6914, %v3764_v29   ;;  %v842_v29 = vld [vmem:[%s9948_s1 + $0x2a8] sm:$0xff] }
 0x146   : > { %2626 = vmatmul.mubr.bf16.gmra.mrb[120].mxu1 %v6386_v17  ;;  %v4275_v17 = vld [vmem:[%s9950_s3 + $0x1d0] sm:$0xff] }
 0x147   : > { %3242 = vmatmul.mubr.bf16.gmra.mrb[84].mxu0 %v6318_v46  ;;  %2635 = vmatprep.mubr.bf16.mxu1 %v6395_v31  ;;  %v6326_v46 = vcombine.low %v935_v36, %v939_v53  ;;  %v6221_v31 = vcombine.high %v830_v16, %v834_v49  ;;  %v8478_v36 = vpop.f32.mrb[13].mxu1  ;;  %v838_v53 = vld [vmem:[%s9948_s1 + $0x288] sm:$0xff]  ;;  %v8506_v32 = vpop.permute.xlu1 %3866 }
 0x148   : > { %3251 = vmatprep.mubr.bf16.mxu0 %v6327_v10  ;;  %v4276_v10 = vld [vmem:[%s9950_s3 + $0x1d8] sm:$0xff]  ;;  %4573 = vperm.xlu0 %6913, %v4275_v17   ;;  %v951_v17 = vld [vmem:[%s9948_s1 + $0x610] sm:$0xff]  ;;  %v6229_v18 = vcombine.high %v838_v53, %v842_v29  ;;  %10019 = vst [vmem:[#allocation18_spill] sm:$0xff] %v8506_v32 }
 0x149   : > { %4578 = vperm.xlu1 %6914, %v4276_v10   ;;  %v6220_v10 = vcombine.low %v830_v16, %v834_v49  ;;  %v3767_v16 = vld [vmem:[%s9949_s2 + $0x1f0] sm:$0xff] }
 0x14a   : > { %v4279_v32 = vld [vmem:[%s9950_s3 + $0x1f0] sm:$0xff] }
 0x14c   : > { %4071 = vperm.xlu0 %6913, %v3765_v59  }
 0x14d   : > { %4076 = vperm.xlu1 %6914, %v3766_v28   ;;  %v6228_v28 = vcombine.low %v838_v53, %v842_v29  ;;  %v5595_v53 = vld [vmem:[%s9952_s5] sm:$0xff]  ;;  %v5596_v29 = vld [vmem:[%s9952_s5 + $0x8] sm:$0xff] }
 0x14e   : > { %2636 = vmatmul.mubr.bf16.gmra.mrb[124].mxu1 %v6394_v62  ;;  %v8486_v62 = vpop.f32.mrb[14].mxu1 }
 0x14f   : > { %3252 = vmatmul.mubr.bf16.gmra.mrb[88].mxu0 %v6326_v46  ;;  %2768 = vmatprep.mubr.bf16.mxu1 %v6221_v31  ;;  %v955_v46 = vld [vmem:[%s9948_s1 + $0x630] sm:$0xff]  ;;  %v8494_v31 = vpop.permute.xlu0 %3861 }
 0x150   : > { %3261 = vmatprep.mubr.bf16.mxu0 %v6335_v9  ;;  %10018 = vst [vmem:[#allocation17_spill] sm:$0xff] %v8494_v31  ;;  %v8496_v9 = vpop.f32.mrb[15].mxu1  ;;  %v6343_v44 = vcombine.high %v951_v17, %v955_v46  ;;  %4583 = vperm.xlu0 %6913, %v4277_v13   ;;  %v846_v13 = vld [vmem:[%s9948_s1 + $0x2c8] sm:$0xff]  ;;  %v6342_v31 = vcombine.low %v951_v17, %v955_v46 }
 0x151   : > { %v8501_v33 = vpop.f32.mrb[16].mxu1  ;;  %4588 = vperm.xlu1 %6914, %v4278_v25   ;;  %v850_v25 = vld [vmem:[%s9948_s1 + $0x2e8] sm:$0xff] }
 0x152   : > { %v8516_v27 = vpop.f32.mrb[17].mxu1  ;;  %v6237_v0 = vcombine.high %v846_v13, %v850_v25  ;;  %v854_v46 = vld [vmem:[%s9948_s1 + $0x308] sm:$0xff] }
 0x153   : > { %v8511_v49 = vpop.permute.xlu0 %4373  ;;  %v8524_v59 = vpop.f32.mrb[18].mxu1 }
 0x154   : > { %10020 = vst [vmem:[#allocation19_spill] sm:$0xff] %v8511_v49  ;;  %4081 = vperm.xlu0 %6913, %v3767_v16  }
 0x155   : > { %4086 = vperm.xlu1 %6914, %v3768_v26  }
 0x156   : > { %2769 = vmatmul.mubr.bf16.vlgmr.msra.gmra.mrb[36].mxu1 %v6220_v10  ;;  %v8534_v10 = vpop.permute.xlu1 %4378 }
 0x157   : > { %3262 = vmatmul.mubr.bf16.gmra.mrb[92].mxu0 %v6334_v7  ;;  %2778 = vmatprep.mubr.bf16.mxu1 %v6229_v18  ;;  %v959_v18 = vld [vmem:[%s9948_s1 + $0x650] sm:$0xff]  ;;  %10021 = vst [vmem:[#allocation20_spill] sm:$0xff] %v8534_v10  ;;  %v8544_v16 = vpop.permute.xlu0 %3871 }
 0x158   : > { %3271 = vmatprep.mubr.bf16.mxu0 %v6343_v44  ;;  %v963_v7 = vld [vmem:[%s9948_s1 + $0x670] sm:$0xff]  ;;  %v8532_v44 = vpop.f32.mrb[19].mxu1  ;;  %10022 = vst [vmem:[#allocation21_spill] sm:$0xff] %v8544_v16  ;;  %4593 = vperm.xlu0 %6913, %v4279_v32   ;;  %v5723_v16 = vld [vmem:[%s9953_s6] sm:$0xff] }
 0x159   : > { %v8539_v49 = vpop.f32.mrb[20].mxu1  ;;  %v6351_v40 = vcombine.high %v959_v18, %v963_v7  ;;  %4598 = vperm.xlu1 %6914, %v4280_v57   ;;  %v858_v57 = vld [vmem:[%s9948_s1 + $0x328] sm:$0xff]  ;;  %v6350_v10 = vcombine.low %v959_v18, %v963_v7 }
 0x15a   : > { %v8552_v17 = vpop.f32.mrb[21].mxu1  ;;  %v8560_v32 = vpop.permute.xlu1 %3876  ;;  %v6245_v61 = vcombine.high %v854_v46, %v858_v57  ;;  %v862_v7 = vld [vmem:[%s9948_s1 + $0x348] sm:$0xff] }
 0x15b   : > { %10023 = vst [vmem:[#allocation22_spill] sm:$0xff] %v8560_v32  ;;  %v8562_v26 = vpop.f32.mrb[22].mxu1  ;;  %v8577_v58 = vpop.permute.xlu0 %4383 }
 0x15c   : > { %5613 = vperm.xlu0 %6913, %v5595_v53   ;;  %10026 = vst [vmem:[#allocation25_spill] sm:$0xff] %v8577_v58 }
 0x15d   : > { %5618 = vperm.xlu1 %6914, %v5596_v29  }
 0x15e   : > { %2779 = vmatmul.mubr.bf16.gmra.mrb[40].mxu1 %v6228_v28  ;;  %v6236_v28 = vcombine.low %v846_v13, %v850_v25  ;;  %v8582_v53 = vpop.permute.xlu1 %4388  ;;  %v5597_v13 = vld [vmem:[%s9952_s5 + $0x10] sm:$0xff]  ;;  %v5598_v25 = vld [vmem:[%s9952_s5 + $0x18] sm:$0xff] }
 0x15f   : > { %3272 = vmatmul.mubr.bf16.gmra.mrb[96].mxu0 %v6342_v31  ;;  %2788 = vmatprep.mubr.bf16.mxu1 %v6237_v0  ;;  %v967_v0 = vld [vmem:[%s9948_s1 + $0x690] sm:$0xff]  ;;  %v8570_v31 = vpop.f32.mrb[23].mxu1  ;;  %10027 = vst [vmem:[#allocation26_spill] sm:$0xff] %v8582_v53  ;;  %v8606_v29 = vpop.permute.xlu0 %3881 }
 0x160   : > { %3281 = vmatprep.mubr.bf16.mxu0 %v6351_v40  ;;  %v971_v40 = vld [vmem:[%s9948_s1 + $0x6b0] sm:$0xff]  ;;  %10024 = vst [vmem:[#allocation23_spill] sm:$0xff] %v8570_v31  ;;  %v8575_v32 = vpop.f32.mrb[24].mxu1  ;;  %5741 = vperm.xlu0 %6913, %v5723_v16   ;;  %10030 = vst [vmem:[#allocation29_spill] sm:$0xff] %v8606_v29 }
 0x161   : > { %10025 = vst [vmem:[#allocation24_spill] sm:$0xff] %v8575_v32  ;;  %v6359_v48 = vcombine.high %v967_v0, %v971_v40  ;;  %5746 = vperm.xlu1 %6914, %v5724_v43   ;;  %v8590_v18 = vpop.f32.mrb[25].mxu1  ;;  %v866_v43 = vld [vmem:[%s9948_s1 + $0x368] sm:$0xff]  ;;  %v5725_v53 = vld [vmem:[%s9953_s6 + $0x10] sm:$0xff]  ;;  %v5726_v32 = vld [vmem:[%s9953_s6 + $0x18] sm:$0xff] }
 0x162   : > { %10028 = vst [vmem:[#allocation27_spill] sm:$0xff] %v8590_v18  ;;  %v8598_v16 = vpop.f32.mrb[26].mxu1  ;;  %v6253_v18 = vcombine.high %v862_v7, %v866_v43  ;;  %v8618_v31 = vpop.permute.xlu1 %3886 }
 0x163   : > { %10029 = vst [vmem:[#allocation28_spill] sm:$0xff] %v8598_v16  ;;  %v6358_v16 = vcombine.low %v967_v0, %v971_v40  ;;  %10032 = vst [vmem:[#allocation31_spill] sm:$0xff] %v8618_v31  ;;  %v5600_v0 = vld [vmem:[%s9952_s5 + $0x28] sm:$0xff]  ;;  %v5727_v31 = vld [vmem:[%s9953_s6 + $0x20] sm:$0xff] }
 0x164   : > { %5623 = vperm.xlu0 %6913, %v5597_v13  }
 0x165   : > { %5628 = vperm.xlu1 %6914, %v5598_v25   ;;  %v983_v25 = vld [vmem:[%s9948_s1 + $0x710] sm:$0xff] }
 0x166   : > { %2789 = vmatmul.mubr.bf16.gmra.mrb[44].mxu1 %v6236_v28  ;;  %v6244_v28 = vcombine.low %v854_v46, %v858_v57  ;;  %v5599_v46 = vld [vmem:[%s9952_s5 + $0x20] sm:$0xff]  ;;  %v8623_v57 = vpop.permute.xlu0 %4393 }
 0x167   : > { %3282 = vmatmul.mubr.bf16.gmra.mrb[100].mxu0 %v6350_v10  ;;  %2798 = vmatprep.mubr.bf16.mxu1 %v6245_v61  ;;  %v975_v61 = vld [vmem:[%s9948_s1 + $0x6d0] sm:$0xff]  ;;  %10033 = vst [vmem:[#allocation32_spill] sm:$0xff] %v8623_v57 }
 0x168   : > { %3291 = vmatprep.mubr.bf16.mxu0 %v6359_v48  ;;  %v979_v10 = vld [vmem:[%s9948_s1 + $0x6f0] sm:$0xff]  ;;  %v8608_v48 = vpop.f32.mrb[27].mxu1  ;;  %5751 = vperm.xlu0 %6913, %v5725_v53   ;;  %v870_v53 = vld [vmem:[%s9948_s1 + $0x388] sm:$0xff] }
 0x169   : > { %v8613_v58 = vpop.f32.mrb[28].mxu1  ;;  %v6367_v1 = vcombine.high %v975_v61, %v979_v10  ;;  %5756 = vperm.xlu1 %6914, %v5726_v32   ;;  %v874_v32 = vld [vmem:[%s9948_s1 + $0x3a8] sm:$0xff]  ;;  %v6366_v29 = vcombine.low %v975_v61, %v979_v10 }
 0x16a   : > { %10031 = vst [vmem:[#allocation30_spill] sm:$0xff] %v8613_v58  ;;  %v8628_v40 = vpop.f32.mrb[29].mxu1  ;;  %v878_v10 = vld [vmem:[%s9948_s1 + $0x3c8] sm:$0xff] }
 0x16b   : > { %10034 = vst [vmem:[#allocation33_spill] sm:$0xff] %v8628_v40  ;;  %v8636_v13 = vpop.f32.mrb[30].mxu1  ;;  %v5728_v40 = vld [vmem:[%s9953_s6 + $0x28] sm:$0xff] }
 0x16c   : > { %10035 = vst [vmem:[#allocation34_spill] sm:$0xff] %v8636_v13  ;;  %5633 = vperm.xlu0 %6913, %v5599_v46   ;;  %v6261_v13 = vcombine.high %v870_v53, %v874_v32  ;;  %v8656_v46 = vpop.permute.xlu0 %3891 }
 0x16d   : > { %5638 = vperm.xlu1 %6914, %v5600_v0   ;;  %10038 = vst [vmem:[#allocation37_spill] sm:$0xff] %v8656_v46  ;;  %v5729_v46 = vld [vmem:[%s9953_s6 + $0x30] sm:$0xff] }
 0x16e   : > { %2799 = vmatmul.mubr.bf16.gmra.mrb[48].mxu1 %v6244_v28  ;;  %v8646_v28 = vpop.permute.xlu1 %4398 }
 0x16f   : > { %3292 = vmatmul.mubr.bf16.gmra.mrb[104].mxu0 %v6358_v16  ;;  %2808 = vmatprep.mubr.bf16.mxu1 %v6253_v18  ;;  %v987_v18 = vld [vmem:[%s9948_s1 + $0x730] sm:$0xff]  ;;  %v6252_v16 = vcombine.low %v862_v7, %v866_v43  ;;  %10036 = vst [vmem:[#allocation35_spill] sm:$0xff] %v8646_v28  ;;  %v5602_v43 = vld [vmem:[%s9952_s5 + $0x38] sm:$0xff] }
 0x170   : > { %3301 = vmatprep.mubr.bf16.mxu0 %v6367_v1  ;;  %v8644_v1 = vpop.f32.mrb[31].mxu1  ;;  %v6375_v58 = vcombine.high %v983_v25, %v987_v18  ;;  %5761 = vperm.xlu0 %6913, %v5727_v31   ;;  %v5601_v7 = vld [vmem:[%s9952_s5 + $0x30] sm:$0xff]  ;;  %v882_v31 = vld [vmem:[%s9948_s1 + $0x3e8] sm:$0xff] }
 0x171   : > { %v8651_v57 = vpop.f32.mrb[32].mxu1  ;;  %5766 = vperm.xlu1 %6914, %v5728_v40   ;;  %v6269_v28 = vcombine.high %v878_v10, %v882_v31 }
 0x172   : > { %10037 = vst [vmem:[#allocation36_spill] sm:$0xff] %v8651_v57  ;;  %v8664_v61 = vpop.f32.mrb[33].mxu1  ;;  %v8672_v0 = vpop.permute.xlu1 %3896 }
 0x173   : > { %10039 = vst [vmem:[#allocation38_spill] sm:$0xff] %v8664_v61  ;;  %10040 = vst [vmem:[#allocation39_spill] sm:$0xff] %v8672_v0  ;;  %v8674_v40 = vpop.f32.mrb[34].mxu1  ;;  %v6374_v0 = vcombine.low %v983_v25, %v987_v18  ;;  %v5730_v61 = vld [vmem:[%s9953_s6 + $0x38] sm:$0xff]  ;;  %v886_v25 = vld [vmem:[%s9948_s1 + $0x408] sm:$0xff] }
 0x174   : > { %10041 = vst [vmem:[#allocation40_spill] sm:$0xff] %v8674_v40  ;;  %5643 = vperm.xlu0 %6913, %v5601_v7   ;;  %v8687_v40 = vpop.permute.xlu0 %4403  ;;  %v890_v18 = vld [vmem:[%s9948_s1 + $0x428] sm:$0xff] }
 0x175   : > { %5648 = vperm.xlu1 %6914, %v5602_v43   ;;  %10043 = vst [vmem:[#allocation42_spill] sm:$0xff] %v8687_v40 }
 0x176   : > { %2809 = vmatmul.mubr.bf16.gmra.mrb[52].mxu1 %v6252_v16  ;;  %v6260_v16 = vcombine.low %v870_v53, %v874_v32  ;;  %v8692_v7 = vpop.permute.xlu1 %4408  ;;  %v5603_v53 = vld [vmem:[%s9952_s5 + $0x40] sm:$0xff]  ;;  %v5604_v32 = vld [vmem:[%s9952_s5 + $0x48] sm:$0xff] }
 0x177   : > { %3302 = vmatmul.mubr.bf16.gmra.mrb[108].mxu0 %v6366_v29  ;;  %2818 = vmatprep.mubr.bf16.mxu1 %v6261_v13  ;;  %v991_v29 = vld [vmem:[%s9948_s1 + $0x750] sm:$0xff]  ;;  %v8682_v13 = vpop.f32.mrb[35].mxu1  ;;  %10044 = vst [vmem:[#allocation43_spill] sm:$0xff] %v8692_v7  ;;  %v5732_v7 = vld [vmem:[%s9953_s6 + $0x48] sm:$0xff] }
 0x178   : > { %3311 = vmatprep.mubr.bf16.mxu0 %v6375_v58  ;;  %v995_v58 = vld [vmem:[%s9948_s1 + $0x770] sm:$0xff]  ;;  %10042 = vst [vmem:[#allocation41_spill] sm:$0xff] %v8682_v13  ;;  %5771 = vperm.xlu0 %6913, %v5729_v46   ;;  %v8712_v43 = vpop.permute.xlu0 %3901 }
 0x179   : > { %v6383_v57 = vcombine.high %v991_v29, %v995_v58  ;;  %5776 = vperm.xlu1 %6914, %v5730_v61   ;;  %v999_v46 = vld [vmem:[%s9948_s1 + $0x790] sm:$0xff]  ;;  %10045 = vst [vmem:[#allocation44_spill] sm:$0xff] %v8712_v43  ;;  %v5731_v61 = vld [vmem:[%s9953_s6 + $0x40] sm:$0xff] }
 0x17a   : > { %v8720_v13 = vpop.permute.xlu1 %3906 }
 0x17b   : > { %10046 = vst [vmem:[#allocation45_spill] sm:$0xff] %v8720_v13  ;;  %v5734_v13 = vld [vmem:[%s9953_s6 + $0x58] sm:$0xff] }
 0x17c   : > { %5653 = vperm.xlu0 %6913, %v5603_v53   ;;  %v1007_v53 = vld [vmem:[%s9948_s1 + $0x7d0] sm:$0xff] }
 0x17d   : > { %5658 = vperm.xlu1 %6914, %v5604_v32   ;;  %v1011_v32 = vld [vmem:[%s9948_s1 + $0x7f0] sm:$0xff] }
 0x17e   : > { %2819 = vmatmul.mubr.bf16.gmra.mrb[56].mxu1 %v6260_v16  ;;  %v6277_v16 = vcombine.high %v886_v25, %v890_v18 }
 0x17f   : > { %3312 = vmatmul.mubr.bf16.gmra.mrb[112].mxu0 %v6374_v0  ;;  %2828 = vmatprep.mubr.bf16.mxu1 %v6269_v28  ;;  %v1003_v28 = vld [vmem:[%s9948_s1 + $0x7b0] sm:$0xff]  ;;  %v6382_v0 = vcombine.low %v991_v29, %v995_v58  ;;  %v5606_v29 = vld [vmem:[%s9952_s5 + $0x58] sm:$0xff]  ;;  %v894_v58 = vld [vmem:[%s9948_s1 + $0x448] sm:$0xff] }
 0x180   : > { %3321 = vmatprep.mubr.bf16.mxu0 %v6383_v57  ;;  %v6268_v57 = vcombine.low %v878_v10, %v882_v31  ;;  %v6391_v40 = vcombine.high %v999_v46, %v1003_v28  ;;  %5781 = vperm.xlu0 %6913, %v5731_v61   ;;  %v5605_v10 = vld [vmem:[%s9952_s5 + $0x50] sm:$0xff]  ;;  %v8725_v31 = vpop.permute.xlu0 %4413  ;;  %v8742_v61 = vpop.permute.xlu1 %4418 }
 0x181   : > { %5786 = vperm.xlu1 %6914, %v5732_v7   ;;  %10047 = vst [vmem:[#allocation46_spill] sm:$0xff] %v8725_v31  ;;  %v898_v7 = vld [vmem:[%s9948_s1 + $0x468] sm:$0xff]  ;;  %10048 = vst [vmem:[#allocation47_spill] sm:$0xff] %v8742_v61  ;;  %v6399_v31 = vcombine.high %v1007_v53, %v1011_v32 }
 0x184   : > { %5663 = vperm.xlu0 %6913, %v5605_v10   ;;  %v8750_v43 = vpop.permute.xlu0 %3911  ;;  %v760_v10 = vld [vmem:[%s9948_s1 + $0x18] sm:$0xff] }
 0x185   : > { %5668 = vperm.xlu1 %6914, %v5606_v29   ;;  %10049 = vst [vmem:[#allocation48_spill] sm:$0xff] %v8750_v43  ;;  %v764_v29 = vld [vmem:[%s9948_s1 + $0x38] sm:$0xff] }
 0x186   : > { %2829 = vmatmul.mubr.bf16.gmra.mrb[60].mxu1 %v6268_v57  ;;  %v6276_v57 = vcombine.low %v886_v25, %v890_v18  ;;  %v5607_v25 = vld [vmem:[%s9952_s5 + $0x60] sm:$0xff]  ;;  %v5608_v18 = vld [vmem:[%s9952_s5 + $0x68] sm:$0xff]  ;;  %v6153_v43 = vcombine.high %v760_v10, %v764_v29 }
 0x187   : > { %3322 = vmatmul.mubr.bf16.gmra.mrb[116].mxu0 %v6382_v0  ;;  %2838 = vmatprep.mubr.bf16.mxu1 %v6277_v16  ;;  %v6390_v0 = vcombine.low %v999_v46, %v1003_v28  ;;  %v6285_v16 = vcombine.high %v894_v58, %v898_v7  ;;  %v902_v46 = vld [vmem:[%s9948_s1 + $0x488] sm:$0xff] }
 0x188   : > { %3331 = vmatprep.mubr.bf16.mxu0 %v6391_v40  ;;  %v5733_v40 = vld [vmem:[%s9953_s6 + $0x50] sm:$0xff]  ;;  %v906_v28 = vld [vmem:[%s9948_s1 + $0x4a8] sm:$0xff] }
 0x189   : > { %5791 = vperm.xlu0 %6913, %v5733_v40   ;;  %5796 = vperm.xlu1 %6914, %v5734_v13   ;;  %v8764_v13 = vpop.permute.xlu1 %3916  ;;  %v6398_v40 = vcombine.low %v1007_v53, %v1011_v32  ;;  %v910_v53 = vld [vmem:[%s9948_s1 + $0x4c8] sm:$0xff] }
 0x18a   : > { %10050 = vst [vmem:[#allocation49_spill] sm:$0xff] %v8764_v13  ;;  %v5736_v13 = vld [vmem:[%s9953_s6 + $0x68] sm:$0xff] }
 0x18b   : > { %v914_v32 = vld [vmem:[%s9948_s1 + $0x4e8] sm:$0xff] }
 0x18d   : > { %5673 = vperm.xlu0 %6913, %v5607_v25   ;;  %5678 = vperm.xlu1 %6914, %v5608_v18   ;;  %v8780_v61 = vpop.permute.xlu1 %4428  ;;  %v768_v25 = vld [vmem:[%s9948_s1 + $0x58] sm:$0xff] }
 0x18e   : > { %2839 = vmatmul.mubr.bf16.gmra.mrb[64].mxu1 %v6276_v57  ;;  %v5735_v57 = vld [vmem:[%s9953_s6 + $0x60] sm:$0xff]  ;;  %10052 = vst [vmem:[#allocation51_spill] sm:$0xff] %v8780_v61  ;;  %v772_v18 = vld [vmem:[%s9948_s1 + $0x78] sm:$0xff] }
 0x18f   : > { %3332 = vmatmul.mubr.bf16.gmra.mrb[120].mxu0 %v6390_v0  ;;  %2848 = vmatprep.mubr.bf16.mxu1 %v6285_v16  ;;  %v6293_v0 = vcombine.high %v902_v46, %v906_v28  ;;  %v8775_v16 = vpop.permute.xlu0 %4423  ;;  %v6161_v61 = vcombine.high %v768_v25, %v772_v18 }
 0x190   : > { %3341 = vmatprep.mubr.bf16.mxu0 %v6399_v31  ;;  %v6284_v31 = vcombine.low %v894_v58, %v898_v7  ;;  %10051 = vst [vmem:[#allocation50_spill] sm:$0xff] %v8775_v16  ;;  %v5609_v58 = vld [vmem:[%s9952_s5 + $0x70] sm:$0xff]  ;;  %v5610_v7 = vld [vmem:[%s9952_s5 + $0x78] sm:$0xff] }
 0x191   : > { %5801 = vperm.xlu0 %6913, %v5735_v57   ;;  %5806 = vperm.xlu1 %6914, %v5736_v13   ;;  %v6152_v57 = vcombine.low %v760_v10, %v764_v29  ;;  %v8808_v16 = vpop.permute.xlu1 %3926  ;;  %v5967_v10 = vld [vmem:[%s9955_s8 + $0x8] sm:$0xff] }
 0x192   : > { %10054 = vst [vmem:[#allocation53_spill] sm:$0xff] %v8808_v16  ;;  %v918_v29 = vld [vmem:[%s9948_s1 + $0x508] sm:$0xff] }
 0x193   : > { %v8800_v13 = vpop.permute.xlu0 %3921 }
 0x194   : > { %10053 = vst [vmem:[#allocation52_spill] sm:$0xff] %v8800_v13 }
 0x195   : > { %5683 = vperm.xlu0 %6913, %v5609_v58   ;;  %5688 = vperm.xlu1 %6914, %v5610_v7   ;;  %v922_v58 = vld [vmem:[%s9948_s1 + $0x528] sm:$0xff]  ;;  %v776_v7 = vld [vmem:[%s9948_s1 + $0x98] sm:$0xff] }
 0x196   : > { %2849 = vmatmul.mubr.bf16.gmra.mrb[68].mxu1 %v6284_v31  ;;  %v5737_v31 = vld [vmem:[%s9953_s6 + $0x70] sm:$0xff] }
 0x197   : > { %3342 = vmatmul.mubr.bf16.gmra.mrb[124].mxu0 %v6398_v40  ;;  %2858 = vmatprep.mubr.bf16.mxu1 %v6293_v0  ;;  %v6301_v40 = vcombine.high %v910_v53, %v914_v32  ;;  %v5738_v0 = vld [vmem:[%s9953_s6 + $0x78] sm:$0xff] }
 0x198   : > { %3384 = vmatprep.mubr.bf16.mxu0 %v6153_v43  ;;  %v6292_v43 = vcombine.low %v902_v46, %v906_v28  ;;  %v5966_v46 = vld [vmem:[%s9955_s8] sm:$0xff]  ;;  %v8813_v28 = vpop.permute.xlu0 %4433 }
 0x199   : > { %5811 = vperm.xlu0 %6913, %v5737_v31   ;;  %5816 = vperm.xlu1 %6914, %v5738_v0   ;;  %10055 = vst [vmem:[#allocation54_spill] sm:$0xff] %v8813_v28  ;;  %v6300_v31 = vcombine.low %v910_v53, %v914_v32  ;;  %v6309_v0 = vcombine.high %v918_v29, %v922_v58  ;;  %v926_v53 = vld [vmem:[%s9948_s1 + $0x548] sm:$0xff] }
 0x19a   : > { %v930_v32 = vld [vmem:[%s9948_s1 + $0x568] sm:$0xff] }
 0x19c   : > { %v8835_v28 = vpop.permute.xlu0 %3931 }
 0x19d   : > { %5971 = vperm.xlu0 %6913, %v5966_v46   ;;  %10057 = vst [vmem:[#allocation56_spill] sm:$0xff] %v8835_v28  ;;  %v6308_v46 = vcombine.low %v918_v29, %v922_v58  ;;  %v796_v29 = vld [vmem:[%s9948_s1 + $0x138] sm:$0xff]  ;;  %v6316_v58 = vcombine.low %v926_v53, %v930_v32 }
 0x19e   : > { %2859 = vmatmul.mubr.bf16.gmra.mrb[72].mxu1 %v6292_v43  ;;  %v780_v43 = vld [vmem:[%s9948_s1 + $0xb8] sm:$0xff] }
 0x19f   : > { %3385 = vmatmul.mubr.bf16.vlgmr.msra.gmra.mrb[0].mxu0 %v6152_v57  ;;  %2868 = vmatprep.mubr.bf16.mxu1 %v6301_v40  ;;  %v8830_v57 = vpop.permute.xlu1 %4438  ;;  %v6160_v40 = vcombine.low %v768_v25, %v772_v18  ;;  %v6169_v16 = vcombine.high %v776_v7, %v780_v43  ;;  %v784_v25 = vld [vmem:[%s9948_s1 + $0xd8] sm:$0xff] }
 0x1a0   : > { %3394 = vmatprep.mubr.bf16.mxu0 %v6161_v61  ;;  %10056 = vst [vmem:[#allocation55_spill] sm:$0xff] %v8830_v57  ;;  %5976 = vperm.xlu1 %6914, %v5967_v10   ;;  %v5968_v61 = vld [vmem:[%s9955_s8 + $0x10] sm:$0xf]  ;;  %v788_v18 = vld [vmem:[%s9948_s1 + $0xf8] sm:$0xff]  ;;  %v6168_v10 = vcombine.low %v776_v7, %v780_v43 }
 0x1a1   : > { %5981 = vperm.xlu0 %6913, %v5968_v61   ;;  %v934_v61 = vld [vmem:[%s9948_s1 + $0x588] sm:$0xff]  ;;  %v6176_v7 = vcombine.low %v784_v25, %v788_v18 }
 0x1a6   : > { %2869 = vmatmul.mubr.bf16.gmra.mrb[76].mxu1 %v6300_v31  ;;  %v6317_v31 = vcombine.high %v926_v53, %v930_v32  ;;  %v804_v53 = vld [vmem:[%s9948_s1 + $0x178] sm:$0xff] }
 0x1a7   : > { %3395 = vmatmul.mubr.bf16.gmra.mrb[4].mxu0 %v6160_v40  ;;  %2878 = vmatprep.mubr.bf16.mxu1 %v6309_v0  ;;  %v938_v40 = vld [vmem:[%s9948_s1 + $0x5a8] sm:$0xff]  ;;  %v792_v0 = vld [vmem:[%s9948_s1 + $0x118] sm:$0xff] }
 0x1a8   : > { %3404 = vmatprep.mubr.bf16.mxu0 %v6169_v16  ;;  %v6177_v16 = vcombine.high %v784_v25, %v788_v18  ;;  %v6325_v43 = vcombine.high %v934_v61, %v938_v40  ;;  %v6324_v32 = vcombine.low %v934_v61, %v938_v40  ;;  %v6184_v25 = vcombine.low %v792_v0, %v796_v29  ;;  %v812_v61 = vld [vmem:[%s9948_s1 + $0x1b8] sm:$0xff] }
 0x1ae   : > { %2879 = vmatmul.mubr.bf16.gmra.mrb[80].mxu1 %v6308_v46  ;;  %v6185_v46 = vcombine.high %v792_v0, %v796_v29 }
 0x1af   : > { %3405 = vmatmul.mubr.bf16.gmra.mrb[8].mxu0 %v6168_v10  ;;  %2888 = vmatprep.mubr.bf16.mxu1 %v6317_v31  ;;  %v942_v10 = vld [vmem:[%s9948_s1 + $0x5c8] sm:$0xff] }
 0x1b0   : > { %3414 = vmatprep.mubr.bf16.mxu0 %v6177_v16  ;;  %v946_v31 = vld [vmem:[%s9948_s1 + $0x5e8] sm:$0xff]  ;;  %v800_v16 = vld [vmem:[%s9948_s1 + $0x158] sm:$0xff] }
 0x1b1   : > { %v6333_v18 = vcombine.high %v942_v10, %v946_v31  ;;  %v6332_v40 = vcombine.low %v942_v10, %v946_v31  ;;  %v6192_v0 = vcombine.low %v800_v16, %v804_v53  ;;  %v820_v10 = vld [vmem:[%s9948_s1 + $0x1f8] sm:$0xff] }
 0x1b6   : > { %2889 = vmatmul.mubr.bf16.gmra.mrb[84].mxu1 %v6316_v58  ;;  %v6193_v58 = vcombine.high %v800_v16, %v804_v53 }
 0x1b7   : > { %3415 = vmatmul.mubr.bf16.gmra.mrb[12].mxu0 %v6176_v7  ;;  %2898 = vmatprep.mubr.bf16.mxu1 %v6325_v43  ;;  %v950_v7 = vld [vmem:[%s9948_s1 + $0x608] sm:$0xff] }
 0x1b8   : > { %3424 = vmatprep.mubr.bf16.mxu0 %v6185_v46  ;;  %v954_v43 = vld [vmem:[%s9948_s1 + $0x628] sm:$0xff]  ;;  %v808_v46 = vld [vmem:[%s9948_s1 + $0x198] sm:$0xff] }
 0x1b9   : > { %v6341_v29 = vcombine.high %v950_v7, %v954_v43  ;;  %v6340_v31 = vcombine.low %v950_v7, %v954_v43  ;;  %v6200_v16 = vcombine.low %v808_v46, %v812_v61  ;;  %v828_v7 = vld [vmem:[%s9948_s1 + $0x238] sm:$0xff] }
 0x1be   : > { %2899 = vmatmul.mubr.bf16.gmra.mrb[88].mxu1 %v6324_v32  ;;  %v6201_v32 = vcombine.high %v808_v46, %v812_v61 }
 0x1bf   : > { %3425 = vmatmul.mubr.bf16.gmra.mrb[16].mxu0 %v6184_v25  ;;  %2908 = vmatprep.mubr.bf16.mxu1 %v6333_v18  ;;  %v958_v25 = vld [vmem:[%s9948_s1 + $0x648] sm:$0xff] }
 0x1c0   : > { %3434 = vmatprep.mubr.bf16.mxu0 %v6193_v58  ;;  %v962_v18 = vld [vmem:[%s9948_s1 + $0x668] sm:$0xff]  ;;  %v816_v58 = vld [vmem:[%s9948_s1 + $0x1d8] sm:$0xff] }
 0x1c1   : > { %v6349_v53 = vcombine.high %v958_v25, %v962_v18  ;;  %v6348_v43 = vcombine.low %v958_v25, %v962_v18  ;;  %v6208_v46 = vcombine.low %v816_v58, %v820_v10  ;;  %v836_v25 = vld [vmem:[%s9948_s1 + $0x278] sm:$0xff] }
 0x1c6   : > { %2909 = vmatmul.mubr.bf16.gmra.mrb[92].mxu1 %v6332_v40  ;;  %v6209_v40 = vcombine.high %v816_v58, %v820_v10 }
 0x1c7   : > { %3435 = vmatmul.mubr.bf16.gmra.mrb[20].mxu0 %v6192_v0  ;;  %2918 = vmatprep.mubr.bf16.mxu1 %v6341_v29  ;;  %v966_v0 = vld [vmem:[%s9948_s1 + $0x688] sm:$0xff] }
 0x1c8   : > { %3444 = vmatprep.mubr.bf16.mxu0 %v6201_v32  ;;  %v970_v29 = vld [vmem:[%s9948_s1 + $0x6a8] sm:$0xff]  ;;  %v824_v32 = vld [vmem:[%s9948_s1 + $0x218] sm:$0xff] }
 0x1c9   : > { %v6357_v61 = vcombine.high %v966_v0, %v970_v29  ;;  %v6356_v18 = vcombine.low %v966_v0, %v970_v29  ;;  %v6216_v58 = vcombine.low %v824_v32, %v828_v7  ;;  %v844_v0 = vld [vmem:[%s9948_s1 + $0x2b8] sm:$0xff] }
 0x1ce   : > { %2919 = vmatmul.mubr.bf16.gmra.mrb[96].mxu1 %v6340_v31  ;;  %v6217_v31 = vcombine.high %v824_v32, %v828_v7 }
 0x1cf   : > { %3445 = vmatmul.mubr.bf16.gmra.mrb[24].mxu0 %v6200_v16  ;;  %2928 = vmatprep.mubr.bf16.mxu1 %v6349_v53  ;;  %v974_v16 = vld [vmem:[%s9948_s1 + $0x6c8] sm:$0xff] }
 0x1d0   : > { %3454 = vmatprep.mubr.bf16.mxu0 %v6209_v40  ;;  %v978_v53 = vld [vmem:[%s9948_s1 + $0x6e8] sm:$0xff]  ;;  %v832_v40 = vld [vmem:[%s9948_s1 + $0x258] sm:$0xff] }
 0x1d1   : > { %v6365_v10 = vcombine.high %v974_v16, %v978_v53  ;;  %v6364_v29 = vcombine.low %v974_v16, %v978_v53  ;;  %v6224_v32 = vcombine.low %v832_v40, %v836_v25  ;;  %v852_v16 = vld [vmem:[%s9948_s1 + $0x2f8] sm:$0xff] }
 0x1d6   : > { %2929 = vmatmul.mubr.bf16.gmra.mrb[100].mxu1 %v6348_v43  ;;  %v6225_v43 = vcombine.high %v832_v40, %v836_v25 }
 0x1d7   : > { %3455 = vmatmul.mubr.bf16.gmra.mrb[28].mxu0 %v6208_v46  ;;  %2938 = vmatprep.mubr.bf16.mxu1 %v6357_v61  ;;  %v982_v46 = vld [vmem:[%s9948_s1 + $0x708] sm:$0xff] }
 0x1d8   : > { %3464 = vmatprep.mubr.bf16.mxu0 %v6217_v31  ;;  %v986_v61 = vld [vmem:[%s9948_s1 + $0x728] sm:$0xff]  ;;  %v840_v31 = vld [vmem:[%s9948_s1 + $0x298] sm:$0xff] }
 0x1d9   : > { %v6373_v7 = vcombine.high %v982_v46, %v986_v61  ;;  %v6372_v53 = vcombine.low %v982_v46, %v986_v61  ;;  %v6232_v40 = vcombine.low %v840_v31, %v844_v0  ;;  %v860_v46 = vld [vmem:[%s9948_s1 + $0x338] sm:$0xff] }
 0x1de   : > { %2939 = vmatmul.mubr.bf16.gmra.mrb[104].mxu1 %v6356_v18  ;;  %v6233_v18 = vcombine.high %v840_v31, %v844_v0 }
 0x1df   : > { %3465 = vmatmul.mubr.bf16.gmra.mrb[32].mxu0 %v6216_v58  ;;  %2948 = vmatprep.mubr.bf16.mxu1 %v6365_v10  ;;  %v990_v58 = vld [vmem:[%s9948_s1 + $0x748] sm:$0xff] }
 0x1e0   : > { %3474 = vmatprep.mubr.bf16.mxu0 %v6225_v43  ;;  %v994_v10 = vld [vmem:[%s9948_s1 + $0x768] sm:$0xff]  ;;  %v848_v43 = vld [vmem:[%s9948_s1 + $0x2d8] sm:$0xff] }
 0x1e1   : > { %v6381_v25 = vcombine.high %v990_v58, %v994_v10  ;;  %v6380_v61 = vcombine.low %v990_v58, %v994_v10  ;;  %v6240_v31 = vcombine.low %v848_v43, %v852_v16  ;;  %v868_v58 = vld [vmem:[%s9948_s1 + $0x378] sm:$0xff] }
 0x1e6   : > { %2949 = vmatmul.mubr.bf16.gmra.mrb[108].mxu1 %v6364_v29  ;;  %v6241_v29 = vcombine.high %v848_v43, %v852_v16 }
 0x1e7   : > { %3475 = vmatmul.mubr.bf16.gmra.mrb[36].mxu0 %v6224_v32  ;;  %2958 = vmatprep.mubr.bf16.mxu1 %v6373_v7  ;;  %v998_v32 = vld [vmem:[%s9948_s1 + $0x788] sm:$0xff] }
 0x1e8   : > { %3484 = vmatprep.mubr.bf16.mxu0 %v6233_v18  ;;  %v1002_v7 = vld [vmem:[%s9948_s1 + $0x7a8] sm:$0xff]  ;;  %v856_v18 = vld [vmem:[%s9948_s1 + $0x318] sm:$0xff] }
 0x1e9   : > { %v6389_v0 = vcombine.high %v998_v32, %v1002_v7  ;;  %v6388_v10 = vcombine.low %v998_v32, %v1002_v7  ;;  %v6248_v43 = vcombine.low %v856_v18, %v860_v46  ;;  %v880_v32 = vld [vmem:[%s9948_s1 + $0x3d8] sm:$0xff] }
 0x1ea   : > { %v884_v7 = vld [vmem:[%s9948_s1 + $0x3f8] sm:$0xff] }
 0x1ee   : > { %2959 = vmatmul.mubr.bf16.gmra.mrb[112].mxu1 %v6372_v53  ;;  %v6249_v53 = vcombine.high %v856_v18, %v860_v46  ;;  %v6273_v46 = vcombine.high %v880_v32, %v884_v7 }
 0x1ef   : > { %3485 = vmatmul.mubr.bf16.gmra.mrb[40].mxu0 %v6232_v40  ;;  %2968 = vmatprep.mubr.bf16.mxu1 %v6381_v25  ;;  %v1006_v40 = vld [vmem:[%s9948_s1 + $0x7c8] sm:$0xff] }
 0x1f0   : > { %3494 = vmatprep.mubr.bf16.mxu0 %v6241_v29  ;;  %v1010_v25 = vld [vmem:[%s9948_s1 + $0x7e8] sm:$0xff]  ;;  %v864_v29 = vld [vmem:[%s9948_s1 + $0x358] sm:$0xff] }
 0x1f1   : > { %v6397_v16 = vcombine.high %v1006_v40, %v1010_v25  ;;  %v6256_v28 = vcombine.low %v864_v29, %v868_v58 }
 0x1f6   : > { %2969 = vmatmul.mubr.bf16.gmra.mrb[116].mxu1 %v6380_v61  ;;  %v6257_v61 = vcombine.high %v864_v29, %v868_v58  ;;  %v896_v29 = vld [vmem:[%s9948_s1 + $0x458] sm:$0xff] }
 0x1f7   : > { %3495 = vmatmul.mubr.bf16.gmra.mrb[44].mxu0 %v6240_v31  ;;  %2978 = vmatprep.mubr.bf16.mxu1 %v6389_v0  ;;  %v872_v31 = vld [vmem:[%s9948_s1 + $0x398] sm:$0xff] }
 0x1f8   : > { %3504 = vmatprep.mubr.bf16.mxu0 %v6249_v53  ;;  %v876_v0 = vld [vmem:[%s9948_s1 + $0x3b8] sm:$0xff]  ;;  %v6396_v53 = vcombine.low %v1006_v40, %v1010_v25 }
 0x1f9   : > { %v6265_v57 = vcombine.high %v872_v31, %v876_v0  ;;  %v6264_v18 = vcombine.low %v872_v31, %v876_v0  ;;  %v888_v40 = vld [vmem:[%s9948_s1 + $0x418] sm:$0xff] }
 0x1fa   : > { %v900_v58 = vld [vmem:[%s9948_s1 + $0x478] sm:$0xff] }
 0x1fb   : > { %v6288_v31 = vcombine.low %v896_v29, %v900_v58 }
 0x1fe   : > { %2979 = vmatmul.mubr.bf16.gmra.mrb[120].mxu1 %v6388_v10 }
 0x1ff   : > { %3505 = vmatmul.mubr.bf16.gmra.mrb[48].mxu0 %v6248_v43  ;;  %2988 = vmatprep.mubr.bf16.mxu1 %v6397_v16  ;;  %v6289_v43 = vcombine.high %v896_v29, %v900_v58  ;;  %v904_v16 = vld [vmem:[%s9948_s1 + $0x498] sm:$0xff] }
 0x200   : > { %3514 = vmatprep.mubr.bf16.mxu0 %v6257_v61  ;;  %v908_v61 = vld [vmem:[%s9948_s1 + $0x4b8] sm:$0xff] }
 0x201   : > { %v6297_v0 = vcombine.high %v904_v16, %v908_v61  ;;  %v920_v29 = vld [vmem:[%s9948_s1 + $0x518] sm:$0xff] }
 0x202   : > { %v924_v58 = vld [vmem:[%s9948_s1 + $0x538] sm:$0xff] }
 0x206   : > { %2989 = vmatmul.mubr.bf16.gmra.mrb[124].mxu1 %v6396_v53 }
 0x207   : > { %3515 = vmatmul.mubr.bf16.gmra.mrb[52].mxu0 %v6256_v28  ;;  %v892_v28 = vld [vmem:[%s9948_s1 + $0x438] sm:$0xff] }
 0x208   : > { %3524 = vmatprep.mubr.bf16.mxu0 %v6265_v57  ;;  %v6272_v57 = vcombine.low %v880_v32, %v884_v7  ;;  %v6281_v25 = vcombine.high %v888_v40, %v892_v28  ;;  %v6280_v10 = vcombine.low %v888_v40, %v892_v28  ;;  %v912_v32 = vld [vmem:[%s9948_s1 + $0x4d8] sm:$0xff]  ;;  %v6296_v40 = vcombine.low %v904_v16, %v908_v61 }
 0x209   : > { %v916_v7 = vld [vmem:[%s9948_s1 + $0x4f8] sm:$0xff] }
 0x20a   : > { %v6304_v16 = vcombine.low %v912_v32, %v916_v7 }
 0x20f   : > { %3525 = vmatmul.mubr.bf16.gmra.mrb[56].mxu0 %v6264_v18 }
 0x210   : > { %3534 = vmatprep.mubr.bf16.mxu0 %v6273_v46 }
 0x217   : > { %3535 = vmatmul.mubr.bf16.gmra.mrb[60].mxu0 %v6272_v57  ;;  %v6305_v57 = vcombine.high %v912_v32, %v916_v7  ;;  %v6312_v32 = vcombine.low %v920_v29, %v924_v58 }
 0x218   : > { %3544 = vmatprep.mubr.bf16.mxu0 %v6281_v25 }
 0x21f   : > { %3545 = vmatmul.mubr.bf16.gmra.mrb[64].mxu0 %v6280_v10 }
 0x220   : > { %3554 = vmatprep.mubr.bf16.mxu0 %v6289_v43 }
 0x227   : > { %3555 = vmatmul.mubr.bf16.gmra.mrb[68].mxu0 %v6288_v31  ;;  %v6313_v31 = vcombine.high %v920_v29, %v924_v58 }
 0x228   : > { %3564 = vmatprep.mubr.bf16.mxu0 %v6297_v0 }
 0x229   : > { %v8999_v53 = vpop.f32.mrb[36].mxu1 }
 0x22a   : > { %10058 = vst [vmem:[#allocation57_spill] sm:$0xff] %v8999_v53  ;;  %v9007_v18 = vpop.f32.mrb[37].mxu1 }
 0x22b   : > { %10059 = vst [vmem:[#allocation58_spill] sm:$0xff] %v9007_v18  ;;  %v9009_v46 = vpop.f32.mrb[38].mxu1 }
 0x22c   : > { %10060 = vst [vmem:[#allocation59_spill] sm:$0xff] %v9009_v46  ;;  %v9011_v28 = vpop.f32.mrb[39].mxu1 }
 0x22d   : > { %10061 = vst [vmem:[#allocation60_spill] sm:$0xff] %v9011_v28 }
 0x22f   : > { %3565 = vmatmul.mubr.bf16.gmra.mrb[72].mxu0 %v6296_v40  ;;  %v928_v40 = vld [vmem:[%s9948_s1 + $0x558] sm:$0xff] }
 0x230   : > { %3574 = vmatprep.mubr.bf16.mxu0 %v6305_v57  ;;  %v932_v57 = vld [vmem:[%s9948_s1 + $0x578] sm:$0xff] }
 0x231   : > { %v9013_v25 = vpop.f32.mrb[40].mxu1  ;;  %v6320_v29 = vcombine.low %v928_v40, %v932_v57 }
 0x232   : > { %10062 = vst [vmem:[#allocation61_spill] sm:$0xff] %v9013_v25  ;;  %v9021_v10 = vpop.f32.mrb[41].mxu1 }
 0x233   : > { %10063 = vst [vmem:[#allocation62_spill] sm:$0xff] %v9021_v10  ;;  %v9023_v43 = vpop.f32.mrb[42].mxu1 }
 0x234   : > { %10064 = vst [vmem:[#allocation63_spill] sm:$0xff] %v9023_v43  ;;  %v9025_v61 = vpop.f32.mrb[43].mxu1 }
 0x235   : > { %10065 = vst [vmem:[#allocation64_spill] sm:$0xff] %v9025_v61  ;;  %v6321_v61 = vcombine.high %v928_v40, %v932_v57 }
 0x237   : > { %3575 = vmatmul.mubr.bf16.gmra.mrb[76].mxu0 %v6304_v16 }
 0x238   : > { %3584 = vmatprep.mubr.bf16.mxu0 %v6313_v31  ;;  %v936_v31 = vld [vmem:[%s9948_s1 + $0x598] sm:$0xff] }
 0x239   : > { %v9027_v0 = vpop.f32.mrb[44].mxu1 }
 0x23a   : > { %10066 = vst [vmem:[#allocation65_spill] sm:$0xff] %v9027_v0  ;;  %v9035_v13 = vpop.f32.mrb[45].mxu1  ;;  %v940_v0 = vld [vmem:[%s9948_s1 + $0x5b8] sm:$0xff] }
 0x23b   : > { %10067 = vst [vmem:[#allocation66_spill] sm:$0xff] %v9035_v13  ;;  %v9037_v10 = vpop.f32.mrb[46].mxu1  ;;  %v6328_v40 = vcombine.low %v936_v31, %v940_v0 }
 0x23c   : > { %10068 = vst [vmem:[#allocation67_spill] sm:$0xff] %v9037_v10  ;;  %v9039_v7 = vpop.f32.mrb[47].mxu1 }
 0x23d   : > { %10069 = vst [vmem:[#allocation68_spill] sm:$0xff] %v9039_v7  ;;  %v6329_v7 = vcombine.high %v936_v31, %v940_v0 }
 0x23f   : > { %3585 = vmatmul.mubr.bf16.gmra.mrb[80].mxu0 %v6312_v32  ;;  %v944_v32 = vld [vmem:[%s9948_s1 + $0x5d8] sm:$0xff] }
 0x240   : > { %3594 = vmatprep.mubr.bf16.mxu0 %v6321_v61 }
 0x241   : > { %v9041_v16 = vpop.f32.mrb[48].mxu1 }
 0x242   : > { %10070 = vst [vmem:[#allocation69_spill] sm:$0xff] %v9041_v16  ;;  %v9049_v43 = vpop.f32.mrb[49].mxu1  ;;  %v948_v16 = vld [vmem:[%s9948_s1 + $0x5f8] sm:$0xff] }
 0x243   : > { %10071 = vst [vmem:[#allocation70_spill] sm:$0xff] %v9049_v43  ;;  %v9051_v13 = vpop.f32.mrb[50].mxu1  ;;  %v6336_v0 = vcombine.low %v944_v32, %v948_v16 }
 0x244   : > { %10072 = vst [vmem:[#allocation71_spill] sm:$0xff] %v9051_v13  ;;  %v9053_v58 = vpop.f32.mrb[51].mxu1 }
 0x245   : > { %10073 = vst [vmem:[#allocation72_spill] sm:$0xff] %v9053_v58  ;;  %v6337_v58 = vcombine.high %v944_v32, %v948_v16 }
 0x247   : > { %3595 = vmatmul.mubr.bf16.gmra.mrb[84].mxu0 %v6320_v29  ;;  %v952_v29 = vld [vmem:[%s9948_s1 + $0x618] sm:$0xff] }
 0x248   : > { %3604 = vmatprep.mubr.bf16.mxu0 %v6329_v7 }
 0x249   : > { %v9055_v61 = vpop.f32.mrb[52].mxu1 }
 0x24a   : > { %10074 = vst [vmem:[#allocation73_spill] sm:$0xff] %v9055_v61  ;;  %v9063_v10 = vpop.f32.mrb[53].mxu1  ;;  %v956_v61 = vld [vmem:[%s9948_s1 + $0x638] sm:$0xff] }
 0x24b   : > { %10075 = vst [vmem:[#allocation74_spill] sm:$0xff] %v9063_v10  ;;  %v9065_v43 = vpop.f32.mrb[54].mxu1  ;;  %v6344_v16 = vcombine.low %v952_v29, %v956_v61 }
 0x24c   : > { %10076 = vst [vmem:[#allocation75_spill] sm:$0xff] %v9065_v43  ;;  %v9067_v57 = vpop.f32.mrb[55].mxu1 }
 0x24d   : > { %10077 = vst [vmem:[#allocation76_spill] sm:$0xff] %v9067_v57  ;;  %v6345_v57 = vcombine.high %v952_v29, %v956_v61 }
 0x24f   : > { %3605 = vmatmul.mubr.bf16.gmra.mrb[88].mxu0 %v6328_v40  ;;  %v960_v40 = vld [vmem:[%s9948_s1 + $0x658] sm:$0xff] }
 0x250   : > { %3614 = vmatprep.mubr.bf16.mxu0 %v6337_v58 }
 0x251   : > { %v9069_v7 = vpop.f32.mrb[56].mxu1 }
 0x252   : > { %10078 = vst [vmem:[#allocation77_spill] sm:$0xff] %v9069_v7  ;;  %v9077_v13 = vpop.f32.mrb[57].mxu1  ;;  %v964_v7 = vld [vmem:[%s9948_s1 + $0x678] sm:$0xff] }
 0x253   : > { %10079 = vst [vmem:[#allocation78_spill] sm:$0xff] %v9077_v13  ;;  %v9079_v10 = vpop.f32.mrb[58].mxu1  ;;  %v6352_v61 = vcombine.low %v960_v40, %v964_v7 }
 0x254   : > { %10080 = vst [vmem:[#allocation79_spill] sm:$0xff] %v9079_v10  ;;  %v9081_v31 = vpop.f32.mrb[59].mxu1 }
 0x255   : > { %10081 = vst [vmem:[#allocation80_spill] sm:$0xff] %v9081_v31  ;;  %v6353_v31 = vcombine.high %v960_v40, %v964_v7 }
 0x257   : > { %3615 = vmatmul.mubr.bf16.gmra.mrb[92].mxu0 %v6336_v0  ;;  %v968_v0 = vld [vmem:[%s9948_s1 + $0x698] sm:$0xff] }
 0x258   : > { %3624 = vmatprep.mubr.bf16.mxu0 %v6345_v57 }
 0x259   : > { %v9083_v58 = vpop.f32.mrb[60].mxu1 }
 0x25a   : > { %10082 = vst [vmem:[#allocation81_spill] sm:$0xff] %v9083_v58  ;;  %v9091_v43 = vpop.f32.mrb[61].mxu1  ;;  %v972_v58 = vld [vmem:[%s9948_s1 + $0x6b8] sm:$0xff] }
 0x25b   : > { %10083 = vst [vmem:[#allocation82_spill] sm:$0xff] %v9091_v43  ;;  %v9093_v13 = vpop.f32.mrb[62].mxu1  ;;  %v6360_v7 = vcombine.low %v968_v0, %v972_v58 }
 0x25c   : > { %10084 = vst [vmem:[#allocation83_spill] sm:$0xff] %v9093_v13  ;;  %v9095_v32 = vpop.f32.mrb[63].mxu1 }
 0x25d   : > { %10085 = vst [vmem:[#allocation84_spill] sm:$0xff] %v9095_v32  ;;  %v6361_v32 = vcombine.high %v968_v0, %v972_v58 }
 0x25f   : > { %3625 = vmatmul.mubr.bf16.gmra.mrb[96].mxu0 %v6344_v16  ;;  %v976_v16 = vld [vmem:[%s9948_s1 + $0x6d8] sm:$0xff] }
 0x260   : > { %3634 = vmatprep.mubr.bf16.mxu0 %v6353_v31 }
 0x261   : > { %v9097_v57 = vpop.f32.mrb[64].mxu1 }
 0x262   : > { %10086 = vst [vmem:[#allocation85_spill] sm:$0xff] %v9097_v57  ;;  %v9105_v10 = vpop.f32.mrb[65].mxu1  ;;  %v980_v57 = vld [vmem:[%s9948_s1 + $0x6f8] sm:$0xff] }
 0x263   : > { %10087 = vst [vmem:[#allocation86_spill] sm:$0xff] %v9105_v10  ;;  %v9107_v43 = vpop.f32.mrb[66].mxu1 }
 0x264   : > { %10088 = vst [vmem:[#allocation87_spill] sm:$0xff] %v9107_v43  ;;  %v9109_v29 = vpop.f32.mrb[67].mxu1 }
 0x265   : > { %10089 = vst [vmem:[#allocation88_spill] sm:$0xff] %v9109_v29  ;;  %v6369_v29 = vcombine.high %v976_v16, %v980_v57 }
 0x267   : > { %3635 = vmatmul.mubr.bf16.gmra.mrb[100].mxu0 %v6352_v61  ;;  %v984_v61 = vld [vmem:[%s9948_s1 + $0x718] sm:$0xff] }
 0x268   : > { %3644 = vmatprep.mubr.bf16.mxu0 %v6361_v32 }
 0x269   : > { %v9111_v31 = vpop.f32.mrb[68].mxu1 }
 0x26a   : > { %10090 = vst [vmem:[#allocation89_spill] sm:$0xff] %v9111_v31  ;;  %v9119_v13 = vpop.f32.mrb[69].mxu1  ;;  %v988_v31 = vld [vmem:[%s9948_s1 + $0x738] sm:$0xff] }
 0x26b   : > { %10091 = vst [vmem:[#allocation90_spill] sm:$0xff] %v9119_v13  ;;  %v9121_v10 = vpop.f32.mrb[70].mxu1  ;;  %v6377_v25 = vcombine.high %v984_v61, %v988_v31 }
 0x26c   : > { %10092 = vst [vmem:[#allocation91_spill] sm:$0xff] %v9121_v10  ;;  %v9123_v40 = vpop.f32.mrb[71].mxu1 }
 0x26d   : > { %10093 = vst [vmem:[#allocation92_spill] sm:$0xff] %v9123_v40 }
 0x26f   : > { %3645 = vmatmul.mubr.bf16.gmra.mrb[104].mxu0 %v6360_v7  ;;  %v6368_v7 = vcombine.low %v976_v16, %v980_v57  ;;  %v9152_v16 = vld [vmem:[%s9948_s1 + $0x758] sm:$0xff] }
 0x270   : > { %3654 = vmatprep.mubr.bf16.mxu0 %v6369_v29 }
 0x271   : > { %v9125_v32 = vpop.f32.mrb[72].mxu1 }
 0x272   : > { %10094 = vst [vmem:[#allocation93_spill] sm:$0xff] %v9125_v32  ;;  %v3386_v43 = vpop.f32.mrb[0].mxu0  ;;  %v9133_v13 = vpop.f32.mrb[73].mxu1 }
 0x273   : > { %10095 = vst [vmem:[#allocation94_spill] sm:$0xff] %v9133_v13  ;;  %v6471_v58 = vadd.f32 %v3386_v43, %v8342_v14  ;;  %v3388_v0 = vpop.f32.mrb[1].mxu0  ;;  %v9136_v40 = vpop.f32.mrb[74].mxu1 }
 0x274   : > { %v6472_v29 = vadd.f32 %v3388_v0, %v8366_v35  ;;  %v3390_v32 = vpop.f32.mrb[2].mxu0  ;;  %v9139_v10 = vpop.f32.mrb[75].mxu1 }
 0x275   : > { %10096 = vst [vmem:[#allocation95_spill] sm:$0xff] %v9139_v10  ;;  %v4089_v28 = vmul.f32 %v6471_v58, %v8050_v41  ;;  %v6473_v46 = vadd.f32 %v3390_v32, %v8374_v3  ;;  %v3392_v18 = vpop.f32.mrb[3].mxu0 }
 0x276   : > { %v4090_v53 = vmul.f32 %v6472_v29, %v8050_v41  ;;  %v6474_v13 = vadd.f32 %v3392_v18, %v8384_v37  ;;  %v9157_v41 = vld [vmem:[%s9948_s1 + $0x778] sm:$0xff] }
 0x277   : > { %v4601_v14 = vadd.f32 %v8064_v23, %v4089_v28  ;;  %v4091_v43 = vmul.f32 %v6473_v46, %v8075_v51  ;;  %3655 = vmatmul.mubr.bf16.gmra.mrb[108].mxu0 %v6368_v7  ;;  %v6376_v46 = vcombine.low %v984_v61, %v988_v31  ;;  %v6385_v0 = vcombine.high %v9152_v16, %v9157_v41 }
 0x278   : > { %v4602_v35 = vadd.f32 %v8064_v23, %v4090_v53  ;;  %v4092_v57 = vmul.f32 %v6474_v13, %v8075_v51  ;;  %3664 = vmatprep.mubr.bf16.mxu0 %v6377_v25 }
 0x279   : > { %vm4729_vm0 = vcmp.gt.f32.partialorder %v4601_v14, 0.0  ;;  %v4857_v3 = vmul.f32 0.01, %v4601_v14  ;;  %v4603_v37 = vadd.f32 %v8083_v11, %v4091_v43  ;;  %v9160_v18 = vpop.f32.mrb[76].mxu1 }
 0x27a   : > { %10097 = vst [vmem:[#allocation96_spill] sm:$0xff] %v9160_v18  ;;  %v4858_v23 = vmul.f32 0.01, %v4602_v35  ;;  %v4604_v51 = vadd.f32 %v8083_v11, %v4092_v57  ;;  %v3396_v13 = vpop.f32.mrb[4].mxu0  ;;  %v9163_v53 = vpop.f32.mrb[77].mxu1  ;;  %vm4730_vm1 = vcmp.gt.f32.partialorder %v4602_v35, 0.0 }
 0x27b   : > { %10098 = vst [vmem:[#allocation97_spill] sm:$0xff] %v9163_v53  ;;  %vm4731_vm2 = vcmp.gt.f32.partialorder %v4603_v37, 0.0  ;;  %v4859_v28 = vmul.f32 0.01, %v4603_v37  ;;  %v6475_v25 = vadd.f32 %v3396_v13, %v8389_v21  ;;  %v3398_v32 = vpop.f32.mrb[5].mxu0  ;;  %v9166_v58 = vpop.f32.mrb[78].mxu1  ;;  %v4985_v31 = vsel %vm4729_vm0, %v4601_v14, %v4857_v3 }
 0x27c   : > { %10099 = vst [vmem:[#allocation98_spill] sm:$0xff] %v9166_v58  ;;  %v4860_v7 = vmul.f32 0.01, %v4604_v51  ;;  %v6476_v29 = vadd.f32 %v3398_v32, %v8404_v45  ;;  %v3400_v43 = vpop.f32.mrb[6].mxu0  ;;  %v9171_v11 = vpop.f32.mrb[79].mxu1  ;;  %vm4732_vm3 = vcmp.gt.f32.partialorder %v4604_v51, 0.0  ;;  %v4986_v13 = vsel %vm4730_vm1, %v4602_v35, %v4858_v23 }
 0x27d   : > { %10100 = vst [vmem:[#allocation99_spill] sm:$0xff] %v9171_v11  ;;  %v4093_v61 = vmul.f32 %v6475_v25, %v8104_v5  ;;  %v6477_v57 = vadd.f32 %v3400_v43, %v8412_v20  ;;  %v3402_v21 = vpop.f32.mrb[7].mxu0  ;;  %v4987_v58 = vsel %vm4731_vm2, %v4603_v37, %v4859_v28  ;;  %v6917_v20 = vld [vmem:[%s9951_s4 + $0x4] ss:$16 sps:$4 sm:$0xff]  }
 0x27e   : > { %v4094_v53 = vmul.f32 %v6476_v29, %v8104_v5  ;;  %v6478_v18 = vadd.f32 %v3402_v21, %v8420_v54  ;;  %v4988_v45 = vsel %vm4732_vm3, %v4604_v51, %v4860_v7  ;;  %v5145_v32 = vpack.c.bf16 %v4987_v58, %v4985_v31  ;;  %v9190_v5 = vld [vmem:[%s9948_s1 + $0x798] sm:$0xff]  ;;  %5401 = vmatprep.mubr.bf16.mxu1 %v6917_v20 }
 0x27f   : > { %v4605_v11 = vadd.f32 %v8117_v24, %v4093_v61  ;;  %v4095_v10 = vmul.f32 %v6477_v57, %v8112_v55  ;;  %3665 = vmatmul.mubr.bf16.gmra.mrb[112].mxu0 %v6376_v46  ;;  %v5146_v14 = vpack.c.bf16 %v4988_v45, %v4986_v13  ;;  %v9195_v54 = vld [vmem:[%s9948_s1 + $0x7b8] sm:$0xff]  ;;  %v6384_v46 = vcombine.low %v9152_v16, %v9157_v41 }
 0x280   : > { %v4606_v35 = vadd.f32 %v8117_v24, %v4094_v53  ;;  %v4096_v3 = vmul.f32 %v6478_v18, %v8112_v55  ;;  %3674 = vmatprep.mubr.bf16.mxu0 %v6385_v0  ;;  %v6393_v0 = vcombine.high %v9190_v5, %v9195_v54 }
 0x281   : > { %vm4733_vm4 = vcmp.gt.f32.partialorder %v4605_v11, 0.0  ;;  %v4861_v37 = vmul.f32 0.01, %v4605_v11  ;;  %v4607_v23 = vadd.f32 %v8134_v56, %v4095_v10  ;;  %5369 = vmatprep.subr.bf16.mxu1 %v5146_v14  ;;  %v9198_v51 = vpop.f32.mrb[80].mxu1 }
 0x282   : > { %v4862_v55 = vmul.f32 0.01, %v4606_v35  ;;  %v4608_v24 = vadd.f32 %v8134_v56, %v4096_v3  ;;  %v3406_v18 = vpop.f32.mrb[8].mxu0  ;;  %5370 = vmatpush1.bf16.msra.mxu1 %v5145_v32  ;;  %v9201_v53 = vpop.f32.mrb[81].mxu1  ;;  %vm4734_vm5 = vcmp.gt.f32.partialorder %v4606_v35, 0.0 }
 0x283   : > { %vm4735_vm6 = vcmp.gt.f32.partialorder %v4607_v23, 0.0  ;;  %v4863_v28 = vmul.f32 0.01, %v4607_v23  ;;  %v6479_v25 = vadd.f32 %v3406_v18, %v8427_v60  ;;  %v3408_v10 = vpop.f32.mrb[9].mxu0  ;;  %v9206_v58 = vpop.f32.mrb[82].mxu1  ;;  %v4989_v16 = vsel %vm4733_vm4, %v4605_v11, %v4861_v37 }
 0x284   : > { %v4864_v7 = vmul.f32 0.01, %v4608_v24  ;;  %v6480_v56 = vadd.f32 %v3408_v10, %v8440_v19  ;;  %v3410_v29 = vpop.f32.mrb[10].mxu0  ;;  %v9211_v43 = vpop.f32.mrb[83].mxu1  ;;  %vm4736_vm7 = vcmp.gt.f32.partialorder %v4608_v24, 0.0  ;;  %v4990_v61 = vsel %vm4734_vm5, %v4606_v35, %v4862_v55  ;;  %v9227_v35 = vld [vmem:[%s9948_s1 + $0x7d8] sm:$0xff] }
 0x285   : > { %v4097_v41 = vmul.f32 %v6479_v25, %v8142_v4  ;;  %v6481_v31 = vadd.f32 %v3410_v29, %v8450_v38  ;;  %v3412_v60 = vpop.f32.mrb[11].mxu0  ;;  %v4991_v57 = vsel %vm4735_vm6, %v4607_v23, %v4863_v28 }
 0x286   : > { %v4098_v21 = vmul.f32 %v6480_v56, %v8142_v4  ;;  %v6482_v13 = vadd.f32 %v3412_v60, %v8458_v30  ;;  %v4992_v19 = vsel %vm4736_vm7, %v4608_v24, %v4864_v7  ;;  %v5147_v45 = vpack.c.bf16 %v4991_v57, %v4989_v16  ;;  %v9232_v4 = vld [vmem:[%s9948_s1 + $0x7f8] sm:$0xff] }
 0x287   : > { %v4609_v32 = vadd.f32 %v8171_v63, %v4097_v41  ;;  %v4099_v14 = vmul.f32 %v6481_v31, %v8157_v8  ;;  %3675 = vmatmul.mubr.bf16.gmra.mrb[116].mxu0 %v6384_v46  ;;  %v5148_v11 = vpack.c.bf16 %v4992_v19, %v4990_v61  ;;  %v6392_v24 = vcombine.low %v9190_v5, %v9195_v54 }
 0x288   : > { %v4610_v20 = vadd.f32 %v8171_v63, %v4098_v21  ;;  %v4100_v38 = vmul.f32 %v6482_v13, %v8157_v8  ;;  %3684 = vmatprep.mubr.bf16.mxu0 %v6393_v0  ;;  %v6401_v10 = vcombine.high %v9227_v35, %v9232_v4 }
 0x289   : > { %vm4737_vm8 = vcmp.gt.f32.partialorder %v4609_v32, 0.0  ;;  %v4865_v30 = vmul.f32 0.01, %v4609_v32  ;;  %v4611_v3 = vadd.f32 %v8176_v39, %v4099_v14  ;;  %5371 = vmatprep.subr.bf16.mxu1 %v5148_v11  ;;  %v9235_v37 = vpop.f32.mrb[84].mxu1 }
 0x28a   : > { %v4866_v63 = vmul.f32 0.01, %v4610_v20  ;;  %v4612_v8 = vadd.f32 %v8176_v39, %v4100_v38  ;;  %v3416_v23 = vpop.f32.mrb[12].mxu0  ;;  %5372 = vmatpush1.bf16.msra.mxu1 %v5147_v45  ;;  %v9238_v55 = vpop.f32.mrb[85].mxu1  ;;  %vm4738_vm9 = vcmp.gt.f32.partialorder %v4610_v20, 0.0 }
 0x28b   : > { %vm4739_vm10 = vcmp.gt.f32.partialorder %v4611_v3, 0.0  ;;  %v4867_v18 = vmul.f32 0.01, %v4611_v3  ;;  %v6483_v46 = vadd.f32 %v3416_v23, %v8463_v22  ;;  %v3418_v28 = vpop.f32.mrb[13].mxu0  ;;  %v9243_v25 = vpop.f32.mrb[86].mxu1  ;;  %v4993_v5 = vsel %vm4737_vm8, %v4609_v32, %v4865_v30 }
 0x28c   : > { %v4868_v0 = vmul.f32 0.01, %v4612_v8  ;;  %v6484_v39 = vadd.f32 %v3418_v28, %v8478_v36  ;;  %v3420_v7 = vpop.f32.mrb[14].mxu0  ;;  %v9248_v56 = vpop.f32.mrb[87].mxu1  ;;  %vm4740_vm11 = vcmp.gt.f32.partialorder %v4612_v8, 0.0  ;;  %v4994_v16 = vsel %vm4738_vm9, %v4610_v20, %v4866_v63 }
 0x28d   : > { %v4101_v54 = vmul.f32 %v6483_v46, %v8196_v2  ;;  %v6485_v29 = vadd.f32 %v3420_v7, %v8486_v62  ;;  %v3422_v22 = vpop.f32.mrb[15].mxu0  ;;  %v4995_v41 = vsel %vm4739_vm10, %v4611_v3, %v4867_v18  ;;  %v6400_v3 = vcombine.low %v9227_v35, %v9232_v4 }
 0x28e   : > { %v4102_v31 = vmul.f32 %v6484_v39, %v8196_v2  ;;  %v6486_v60 = vadd.f32 %v3422_v22, %v8496_v9  ;;  %v4996_v36 = vsel %vm4740_vm11, %v4612_v8, %v4868_v0  ;;  %v5149_v61 = vpack.c.bf16 %v4995_v41, %v4993_v5 }
 0x28f   : > { %v4613_v57 = vadd.f32 %v8215_v6, %v4101_v54  ;;  %v4103_v21 = vmul.f32 %v6485_v29, %v8204_v42  ;;  %3685 = vmatmul.mubr.bf16.gmra.mrb[120].mxu0 %v6392_v24  ;;  %v5150_v13 = vpack.c.bf16 %v4996_v36, %v4994_v16 }
 0x290   : > { %v4614_v19 = vadd.f32 %v8215_v6, %v4102_v31  ;;  %v4104_v62 = vmul.f32 %v6486_v60, %v8204_v42  ;;  %3694 = vmatprep.mubr.bf16.mxu0 %v6401_v10 }
 0x291   : > { %vm4741_vm12 = vcmp.gt.f32.partialorder %v4613_v57, 0.0  ;;  %v4869_v45 = vmul.f32 0.01, %v4613_v57  ;;  %v4615_v32 = vadd.f32 %v8230_v50, %v4103_v21  ;;  %5373 = vmatprep.subr.bf16.mxu1 %v5150_v13  ;;  %v9262_v2 = vpop.f32.mrb[88].mxu1 }
 0x292   : > { %v4870_v9 = vmul.f32 0.01, %v4614_v19  ;;  %v4616_v14 = vadd.f32 %v8230_v50, %v4104_v62  ;;  %v3426_v11 = vpop.f32.mrb[16].mxu0  ;;  %5374 = vmatpush1.bf16.msra.mxu1 %v5149_v61  ;;  %v9265_v20 = vpop.f32.mrb[89].mxu1  ;;  %vm4742_vm13 = vcmp.gt.f32.partialorder %v4614_v19, 0.0 }
 0x293   : > { %vm4743_vm14 = vcmp.gt.f32.partialorder %v4615_v32, 0.0  ;;  %v4871_v6 = vmul.f32 0.01, %v4615_v32  ;;  %v6487_v42 = vadd.f32 %v3426_v11, %v8501_v33  ;;  %v3428_v38 = vpop.f32.mrb[17].mxu0  ;;  %v9268_v30 = vpop.f32.mrb[90].mxu1  ;;  %v4997_v24 = vsel %vm4741_vm12, %v4613_v57, %v4869_v45 }
 0x294   : > { %v4872_v63 = vmul.f32 0.01, %v4616_v14  ;;  %v6488_v8 = vadd.f32 %v3428_v38, %v8516_v27  ;;  %v3430_v23 = vpop.f32.mrb[18].mxu0  ;;  %v9273_v50 = vpop.f32.mrb[91].mxu1  ;;  %vm4744_vm15 = vcmp.gt.f32.partialorder %v4616_v14, 0.0  ;;  %v4998_v28 = vsel %vm4742_vm13, %v4614_v19, %v4870_v9 }
 0x295   : > { %v4105_v18 = vmul.f32 %v6487_v42, %v8238_v52  ;;  %v6489_v46 = vadd.f32 %v3430_v23, %v8524_v59  ;;  %v3432_v33 = vpop.f32.mrb[19].mxu0  ;;  %v4999_v10 = vsel %vm4743_vm14, %v4615_v32, %v4871_v6 }
 0x296   : > { %v4106_v35 = vmul.f32 %v6488_v8, %v8238_v52  ;;  %v6490_v4 = vadd.f32 %v3432_v33, %v8532_v44  ;;  %v5000_v27 = vsel %vm4744_vm15, %v4616_v14, %v4872_v63  ;;  %v5151_v0 = vpack.c.bf16 %v4999_v10, %v4997_v24  ;;  %v10103_v14 = vld [vmem:[#allocation23_spill] sm:$0xff] }
 0x297   : > { %v4617_v39 = vadd.f32 %v8263_v12, %v4105_v18  ;;  %v4107_v7 = vmul.f32 %v6489_v46, %v8252_v34  ;;  %3695 = vmatmul.mubr.bf16.gmra.mrb[124].mxu0 %v6400_v3  ;;  %v5152_v5 = vpack.c.bf16 %v5000_v27, %v4998_v28  ;;  %v10105_v3 = vld [vmem:[#allocation2_spill] sm:$0xff]  ;;  %v10106_v18 = vld [vmem:[#allocation4_spill] sm:$0xff] }
 0x298   : > { %v4618_v54 = vadd.f32 %v8263_v12, %v4106_v35  ;;  %v4108_v59 = vmul.f32 %v6490_v4, %v8252_v34  ;;  %v10109_v27 = vld [vmem:[#allocation24_spill] sm:$0xff] }
 0x299   : > { %vm4745_vm0 = vcmp.gt.f32.partialorder %v4617_v39, 0.0  ;;  %v4873_v29 = vmul.f32 0.01, %v4617_v39  ;;  %v4619_v22 = vadd.f32 %v8268_v47, %v4107_v7  ;;  %5375 = vmatprep.subr.bf16.mxu1 %v5152_v5  ;;  %v9287_v52 = vpop.f32.mrb[92].mxu1 }
 0x29a   : > { %v4874_v44 = vmul.f32 0.01, %v4618_v54  ;;  %v4620_v16 = vadd.f32 %v8268_v47, %v4108_v59  ;;  %v3436_v41 = vpop.f32.mrb[20].mxu0  ;;  %5376 = vmatpush1.bf16.msra.mxu1 %v5151_v0  ;;  %v9290_v31 = vpop.f32.mrb[93].mxu1  ;;  %vm4746_vm1 = vcmp.gt.f32.partialorder %v4618_v54, 0.0 }
 0x29b   : > { %vm4747_vm2 = vcmp.gt.f32.partialorder %v4619_v22, 0.0  ;;  %v4875_v60 = vmul.f32 0.01, %v4619_v22  ;;  %v6491_v12 = vadd.f32 %v3436_v41, %v8539_v49  ;;  %v3438_v34 = vpop.f32.mrb[21].mxu0  ;;  %v9293_v36 = vpop.f32.mrb[94].mxu1  ;;  %v5001_v47 = vsel %vm4745_vm0, %v4617_v39, %v4873_v29 }
 0x29c   : > { %10101 = vst [vmem:[#allocation100_spill] sm:$0xff] %v9293_v36  ;;  %v4876_v61 = vmul.f32 0.01, %v4620_v16  ;;  %v6492_v57 = vadd.f32 %v3438_v34, %v8552_v17  ;;  %v3440_v21 = vpop.f32.mrb[22].mxu0  ;;  %v9296_v13 = vpop.f32.mrb[95].mxu1  ;;  %vm4748_vm3 = vcmp.gt.f32.partialorder %v4620_v16, 0.0  ;;  %v5002_v32 = vsel %vm4746_vm1, %v4618_v54, %v4874_v44 }
 0x29d   : > { %10102 = vst [vmem:[#allocation101_spill] sm:$0xff] %v9296_v13  ;;  %v4109_v19 = vmul.f32 %v6491_v12, %v8288_v15  ;;  %v6493_v62 = vadd.f32 %v3440_v21, %v8562_v26  ;;  %v3442_v45 = vpop.f32.mrb[23].mxu0  ;;  %v5003_v9 = vsel %vm4747_vm2, %v4619_v22, %v4875_v60  ;;  %v10104_v17 = vld [vmem:[#allocation3_spill] sm:$0xff]  ;;  %v10114_v60 = vld [vmem:[#allocation28_spill] sm:$0xff] }
 0x29e   : > { %v4110_v49 = vmul.f32 %v6492_v57, %v8288_v15  ;;  %v6494_v11 = vadd.f32 %v3442_v45, %v10103_v14  ;;  %v5004_v6 = vsel %vm4748_vm3, %v4620_v16, %v4876_v61  ;;  %v5153_v42 = vpack.c.bf16 %v5003_v9, %v5001_v47  ;;  %v10111_v54 = vld [vmem:[#allocation27_spill] sm:$0xff]  ;;  %v10113_v16 = vld [vmem:[#allocation5_spill] sm:$0xff]  ;;  %v10116_v9 = vld [vmem:[#allocation6_spill] sm:$0xff] }
 0x29f   : > { %v4621_v38 = vadd.f32 %v10104_v17, %v4109_v19  ;;  %v4111_v63 = vmul.f32 %v6493_v62, %v10105_v3  ;;  %v5154_v8 = vpack.c.bf16 %v5004_v6, %v5002_v32  ;;  %v10115_v45 = vld [vmem:[#allocation7_spill] sm:$0xff] }
 0x2a0   : > { %v4622_v23 = vadd.f32 %v10104_v17, %v4110_v49  ;;  %v4112_v24 = vmul.f32 %v6494_v11, %v10105_v3 }
 0x2a1   : > { %vm4749_vm4 = vcmp.gt.f32.partialorder %v4621_v38, 0.0  ;;  %v4877_v26 = vmul.f32 0.01, %v4621_v38  ;;  %v4623_v46 = vadd.f32 %v10106_v18, %v4111_v63  ;;  %5377 = vmatprep.subr.bf16.mxu1 %v5154_v8  ;;  %v9308_v33 = vpop.f32.mrb[96].mxu1 }
 0x2a2   : > { %10107 = vst [vmem:[#allocation23_spill] sm:$0xff] %v9308_v33  ;;  %v4878_v15 = vmul.f32 0.01, %v4622_v23  ;;  %v4624_v28 = vadd.f32 %v10106_v18, %v4112_v24  ;;  %v3446_v10 = vpop.f32.mrb[24].mxu0  ;;  %5378 = vmatpush1.bf16.msra.mxu1 %v5153_v42  ;;  %v9311_v35 = vpop.f32.mrb[97].mxu1  ;;  %vm4750_vm5 = vcmp.gt.f32.partialorder %v4622_v23, 0.0 }
 0x2a3   : > { %10108 = vst [vmem:[#allocation3_spill] sm:$0xff] %v9311_v35  ;;  %vm4751_vm6 = vcmp.gt.f32.partialorder %v4623_v46, 0.0  ;;  %v4879_v4 = vmul.f32 0.01, %v4623_v46  ;;  %v6495_v0 = vadd.f32 %v3446_v10, %v10109_v27  ;;  %v3448_v39 = vpop.f32.mrb[25].mxu0  ;;  %v9314_v7 = vpop.f32.mrb[98].mxu1  ;;  %v5005_v44 = vsel %vm4749_vm4, %v4621_v38, %v4877_v26 }
 0x2a4   : > { %10110 = vst [vmem:[#allocation2_spill] sm:$0xff] %v9314_v7  ;;  %v4880_v5 = vmul.f32 0.01, %v4624_v28  ;;  %v6496_v59 = vadd.f32 %v3448_v39, %v10111_v54  ;;  %v3450_v29 = vpop.f32.mrb[26].mxu0  ;;  %v9317_v22 = vpop.f32.mrb[99].mxu1  ;;  %vm4752_vm7 = vcmp.gt.f32.partialorder %v4624_v28, 0.0  ;;  %v5006_v61 = vsel %vm4750_vm5, %v4622_v23, %v4878_v15 }
 0x2a5   : > { %10112 = vst [vmem:[#allocation4_spill] sm:$0xff] %v9317_v22  ;;  %v4113_v41 = vmul.f32 %v6495_v0, %v10113_v16  ;;  %v6497_v12 = vadd.f32 %v3450_v29, %v10114_v60  ;;  %v3452_v34 = vpop.f32.mrb[27].mxu0  ;;  %v5007_v57 = vsel %vm4751_vm6, %v4623_v46, %v4879_v4  ;;  %v9328_v42 = vpop.permute.xlu1 %3936  ;;  %v10117_v38 = vld [vmem:[#allocation8_spill] sm:$0xff]  ;;  %v10120_v18 = vld [vmem:[#allocation30_spill] sm:$0xff]  ;;  %v10122_v4 = vld [vmem:[#allocation33_spill] sm:$0xff] }
 0x2a6   : > { %v4114_v21 = vmul.f32 %v6496_v59, %v10113_v16  ;;  %v6498_v47 = vadd.f32 %v3452_v34, %v8608_v48  ;;  %v5008_v19 = vsel %vm4752_vm7, %v4624_v28, %v4880_v5  ;;  %v5155_v62 = vpack.c.bf16 %v5007_v57, %v5005_v44  ;;  %v10124_v54 = vld [vmem:[#allocation9_spill] sm:$0xff]  ;;  %v10125_v29 = vld [vmem:[#allocation34_spill] sm:$0xff] }
 0x2a7   : > { %v4625_v32 = vadd.f32 %v10115_v45, %v4113_v41  ;;  %v4115_v49 = vmul.f32 %v6497_v12, %v10116_v9  ;;  %v5156_v14 = vpack.c.bf16 %v5008_v19, %v5006_v61  ;;  %v10127_v19 = vld [vmem:[#allocation10_spill] sm:$0xff]  ;;  %v10207_v22 = vld [vmem:[#allocation49_spill] sm:$0xff] }
 0x2a8   : > { %v4626_v11 = vadd.f32 %v10115_v45, %v4114_v21  ;;  %v4116_v6 = vmul.f32 %v6498_v47, %v10116_v9  ;;  %v10126_v21 = vld [vmem:[#allocation11_spill] sm:$0xff]  ;;  %v9349_v9 = vpop.permute.xlu0 %4443  ;;  %v10214_v35 = vld [vmem:[#allocation54_spill] sm:$0xff] }
 0x2a9   : > { %vm4753_vm8 = vcmp.gt.f32.partialorder %v4625_v32, 0.0  ;;  %v4881_v17 = vmul.f32 0.01, %v4625_v32  ;;  %v4627_v3 = vadd.f32 %v10117_v38, %v4115_v49  ;;  %5379 = vmatprep.subr.bf16.mxu1 %v5156_v14  ;;  %v9331_v63 = vpop.f32.mrb[100].mxu1  ;;  %v9353_v14 = vpop.permute.xlu1 %4448 }
 0x2aa   : > { %10118 = vst [vmem:[#allocation24_spill] sm:$0xff] %v9331_v63  ;;  %v4882_v48 = vmul.f32 0.01, %v4626_v11  ;;  %v4628_v8 = vadd.f32 %v10117_v38, %v4116_v6  ;;  %v3456_v23 = vpop.f32.mrb[28].mxu0  ;;  %5380 = vmatpush1.bf16.msra.mxu1 %v5155_v62  ;;  %v9334_v24 = vpop.f32.mrb[101].mxu1  ;;  %vm4754_vm9 = vcmp.gt.f32.partialorder %v4626_v11, 0.0 }
 0x2ab   : > { %10119 = vst [vmem:[#allocation27_spill] sm:$0xff] %v9334_v24  ;;  %vm4755_vm10 = vcmp.gt.f32.partialorder %v4627_v3, 0.0  ;;  %v4883_v26 = vmul.f32 0.01, %v4627_v3  ;;  %v6499_v46 = vadd.f32 %v3456_v23, %v10120_v18  ;;  %v3458_v15 = vpop.f32.mrb[29].mxu0  ;;  %v9337_v28 = vpop.f32.mrb[102].mxu1  ;;  %v5009_v5 = vsel %vm4753_vm8, %v4625_v32, %v4881_v17 }
 0x2ac   : > { %10121 = vst [vmem:[#allocation5_spill] sm:$0xff] %v9337_v28  ;;  %v4884_v10 = vmul.f32 0.01, %v4628_v8  ;;  %v6500_v27 = vadd.f32 %v3458_v15, %v10122_v4  ;;  %v3460_v0 = vpop.f32.mrb[30].mxu0  ;;  %v9340_v39 = vpop.f32.mrb[103].mxu1  ;;  %vm4756_vm11 = vcmp.gt.f32.partialorder %v4628_v8, 0.0  ;;  %v5010_v41 = vsel %vm4754_vm9, %v4626_v11, %v4882_v48 }
 0x2ad   : > { %10123 = vst [vmem:[#allocation28_spill] sm:$0xff] %v9340_v39  ;;  %v4117_v59 = vmul.f32 %v6499_v46, %v10124_v54  ;;  %v6501_v44 = vadd.f32 %v3460_v0, %v10125_v29  ;;  %v3462_v16 = vpop.f32.mrb[31].mxu0  ;;  %v5011_v60 = vsel %vm4755_vm10, %v4627_v3, %v4883_v26  ;;  %v10128_v6 = vld [vmem:[#allocation12_spill] sm:$0xff]  ;;  %v10133_v4 = vld [vmem:[#allocation38_spill] sm:$0xff] }
 0x2ae   : > { %v4118_v12 = vmul.f32 %v6500_v27, %v10124_v54  ;;  %v6502_v34 = vadd.f32 %v3462_v16, %v8644_v1  ;;  %v5012_v61 = vsel %vm4756_vm11, %v4628_v8, %v4884_v10  ;;  %v5157_v57 = vpack.c.bf16 %v5011_v60, %v5009_v5  ;;  %v10131_v26 = vld [vmem:[#allocation36_spill] sm:$0xff] }
 0x2af   : > { %v4629_v47 = vadd.f32 %v10126_v21, %v4117_v59  ;;  %v4119_v62 = vmul.f32 %v6501_v44, %v10127_v19  ;;  %v5158_v45 = vpack.c.bf16 %v5012_v61, %v5010_v41  ;;  %v10135_v59 = vld [vmem:[#allocation13_spill] sm:$0xff]  ;;  %v10136_v44 = vld [vmem:[#allocation40_spill] sm:$0xff] }
 0x2b0   : > { %v4630_v32 = vadd.f32 %v10126_v21, %v4118_v12  ;;  %v4120_v49 = vmul.f32 %v6502_v34, %v10127_v19  ;;  %v10137_v61 = vld [vmem:[#allocation41_spill] sm:$0xff] }
 0x2b1   : > { %vm4757_vm12 = vcmp.gt.f32.partialorder %v4629_v47, 0.0  ;;  %v4885_v11 = vmul.f32 0.01, %v4629_v47  ;;  %v4631_v17 = vadd.f32 %v10128_v6, %v4119_v62  ;;  %5381 = vmatprep.subr.bf16.mxu1 %v5158_v45  ;;  %v9356_v1 = vpop.f32.mrb[104].mxu1  ;;  %v10138_v62 = vld [vmem:[#allocation15_spill] sm:$0xff] }
 0x2b2   : > { %10129 = vst [vmem:[#allocation7_spill] sm:$0xff] %v9356_v1  ;;  %v4886_v38 = vmul.f32 0.01, %v4630_v32  ;;  %v4632_v3 = vadd.f32 %v10128_v6, %v4120_v49  ;;  %v3466_v48 = vpop.f32.mrb[32].mxu0  ;;  %5382 = vmatpush1.bf16.msra.mxu1 %v5157_v57  ;;  %v9359_v8 = vpop.f32.mrb[105].mxu1  ;;  %vm4758_vm13 = vcmp.gt.f32.partialorder %v4630_v32, 0.0 }
 0x2b3   : > { %10130 = vst [vmem:[#allocation6_spill] sm:$0xff] %v9359_v8  ;;  %vm4759_vm14 = vcmp.gt.f32.partialorder %v4631_v17, 0.0  ;;  %v4887_v23 = vmul.f32 0.01, %v4631_v17  ;;  %v6503_v18 = vadd.f32 %v3466_v48, %v10131_v26  ;;  %v3468_v46 = vpop.f32.mrb[33].mxu0  ;;  %v9362_v15 = vpop.f32.mrb[106].mxu1  ;;  %v5013_v54 = vsel %vm4757_vm12, %v4629_v47, %v4885_v11 }
 0x2b4   : > { %10132 = vst [vmem:[#allocation8_spill] sm:$0xff] %v9362_v15  ;;  %v4888_v10 = vmul.f32 0.01, %v4632_v3  ;;  %v6504_v27 = vadd.f32 %v3468_v46, %v10133_v4  ;;  %v3470_v0 = vpop.f32.mrb[34].mxu0  ;;  %v9365_v5 = vpop.f32.mrb[107].mxu1  ;;  %vm4760_vm15 = vcmp.gt.f32.partialorder %v4632_v3, 0.0  ;;  %v5014_v60 = vsel %vm4758_vm13, %v4630_v32, %v4886_v38 }
 0x2b5   : > { %10134 = vst [vmem:[#allocation30_spill] sm:$0xff] %v9365_v5  ;;  %v4121_v29 = vmul.f32 %v6503_v18, %v10135_v59  ;;  %v6505_v16 = vadd.f32 %v3470_v0, %v10136_v44  ;;  %v3472_v41 = vpop.f32.mrb[35].mxu0  ;;  %v5015_v12 = vsel %vm4759_vm14, %v4631_v17, %v4887_v23  ;;  %v10139_v49 = vld [vmem:[#allocation14_spill] sm:$0xff]  ;;  %v9374_v26 = vpop.permute.xlu0 %3941  ;;  %v10140_v17 = vld [vmem:[#allocation16_spill] sm:$0xff]  ;;  %v10143_v0 = vld [vmem:[#allocation57_spill] sm:$0xff] }
 0x2b6   : > { %v4122_v34 = vmul.f32 %v6504_v27, %v10135_v59  ;;  %v6506_v57 = vadd.f32 %v3472_v41, %v10137_v61  ;;  %v5016_v21 = vsel %vm4760_vm15, %v4632_v3, %v4888_v10  ;;  %v5159_v19 = vpack.c.bf16 %v5015_v12, %v5013_v54  ;;  %v9378_v18 = vpop.permute.xlu1 %3946  ;;  %v10147_v61 = vld [vmem:[#allocation17_spill] sm:$0xff] }
 0x2b7   : > { %v4633_v45 = vadd.f32 %v10138_v62, %v4121_v29  ;;  %v4123_v6 = vmul.f32 %v6505_v16, %v10139_v49  ;;  %v5160_v48 = vpack.c.bf16 %v5016_v21, %v5014_v60  ;;  %v10145_v16 = vld [vmem:[#allocation58_spill] sm:$0xff]  ;;  %v10148_v21 = vld [vmem:[#allocation59_spill] sm:$0xff] }
 0x2b8   : > { %v4634_v47 = vadd.f32 %v10138_v62, %v4122_v34  ;;  %v4124_v11 = vmul.f32 %v6506_v57, %v10139_v49 }
 0x2b9   : > { %vm4761_vm0 = vcmp.gt.f32.partialorder %v4633_v45, 0.0  ;;  %v4889_v32 = vmul.f32 0.01, %v4633_v45  ;;  %v4635_v38 = vadd.f32 %v10140_v17, %v4123_v6  ;;  %5383 = vmatprep.subr.bf16.mxu1 %v5160_v48  ;;  %v9381_v3 = vpop.f32.mrb[108].mxu1 }
 0x2ba   : > { %10141 = vst [vmem:[#allocation33_spill] sm:$0xff] %v9381_v3  ;;  %v4890_v23 = vmul.f32 0.01, %v4634_v47  ;;  %v4636_v46 = vadd.f32 %v10140_v17, %v4124_v11  ;;  %v3476_v10 = vpop.f32.mrb[36].mxu0  ;;  %5384 = vmatpush1.bf16.msra.mxu1 %v5159_v19  ;;  %v9384_v4 = vpop.f32.mrb[109].mxu1  ;;  %vm4762_vm1 = vcmp.gt.f32.partialorder %v4634_v47, 0.0 }
 0x2bb   : > { %10142 = vst [vmem:[#allocation9_spill] sm:$0xff] %v9384_v4  ;;  %vm4763_vm2 = vcmp.gt.f32.partialorder %v4635_v38, 0.0  ;;  %v4891_v27 = vmul.f32 0.01, %v4635_v38  ;;  %v6507_v54 = vadd.f32 %v3476_v10, %v10143_v0  ;;  %v3478_v59 = vpop.f32.mrb[37].mxu0  ;;  %v9387_v29 = vpop.f32.mrb[110].mxu1  ;;  %v5017_v34 = vsel %vm4761_vm0, %v4633_v45, %v4889_v32 }
 0x2bc   : > { %10144 = vst [vmem:[#allocation34_spill] sm:$0xff] %v9387_v29  ;;  %v4892_v44 = vmul.f32 0.01, %v4636_v46  ;;  %v6508_v41 = vadd.f32 %v3478_v59, %v10145_v16  ;;  %v3480_v60 = vpop.f32.mrb[38].mxu0  ;;  %v9390_v12 = vpop.f32.mrb[111].mxu1  ;;  %vm4764_vm3 = vcmp.gt.f32.partialorder %v4636_v46, 0.0  ;;  %v5018_v49 = vsel %vm4762_vm1, %v4634_v47, %v4890_v23 }
 0x2bd   : > { %10146 = vst [vmem:[#allocation11_spill] sm:$0xff] %v9390_v12  ;;  %v4125_v57 = vmul.f32 %v6507_v54, %v10147_v61  ;;  %v6509_v19 = vadd.f32 %v3480_v60, %v10148_v21  ;;  %v3482_v62 = vpop.f32.mrb[39].mxu0  ;;  %v5019_v6 = vsel %vm4763_vm2, %v4635_v38, %v4891_v27  ;;  %v10149_v11 = vld [vmem:[#allocation60_spill] sm:$0xff]  ;;  %v10150_v59 = vld [vmem:[#allocation19_spill] sm:$0xff]  ;;  %v10151_v29 = vld [vmem:[#allocation18_spill] sm:$0xff]  ;;  %v9399_v3 = vpop.permute.xlu0 %4453 }
 0x2be   : > { %v4126_v48 = vmul.f32 %v6508_v41, %v10147_v61  ;;  %v6510_v17 = vadd.f32 %v3482_v62, %v10149_v11  ;;  %v5020_v10 = vsel %vm4764_vm3, %v4636_v46, %v4892_v44  ;;  %v5161_v0 = vpack.c.bf16 %v5019_v6, %v5017_v34  ;;  %v9403_v54 = vpop.permute.xlu1 %4458  ;;  %v10152_v38 = vld [vmem:[#allocation20_spill] sm:$0xff] }
 0x2bf   : > { %v4637_v16 = vadd.f32 %v10150_v59, %v4125_v57  ;;  %v4127_v12 = vmul.f32 %v6509_v19, %v10151_v29  ;;  %v5162_v4 = vpack.c.bf16 %v5020_v10, %v5018_v49 }
 0x2c0   : > { %v4638_v45 = vadd.f32 %v10150_v59, %v4126_v48  ;;  %v4128_v32 = vmul.f32 %v6510_v17, %v10151_v29  ;;  %v10155_v29 = vld [vmem:[#allocation61_spill] sm:$0xff]  ;;  %v10160_v17 = vld [vmem:[#allocation63_spill] sm:$0xff] }
 0x2c1   : > { %vm4765_vm4 = vcmp.gt.f32.partialorder %v4637_v16, 0.0  ;;  %v4893_v47 = vmul.f32 0.01, %v4637_v16  ;;  %v4639_v23 = vadd.f32 %v10152_v38, %v4127_v12  ;;  %5385 = vmatprep.subr.bf16.mxu1 %v5162_v4  ;;  %v9406_v46 = vpop.f32.mrb[112].mxu1  ;;  %v10157_v12 = vld [vmem:[#allocation62_spill] sm:$0xff]  ;;  %v10159_v48 = vld [vmem:[#allocation21_spill] sm:$0xff]  ;;  %v9424_v15 = vpop.permute.xlu0 %3951 }
 0x2c2   : > { %10153 = vst [vmem:[#allocation10_spill] sm:$0xff] %v9406_v46  ;;  %v4894_v27 = vmul.f32 0.01, %v4638_v45  ;;  %v4640_v44 = vadd.f32 %v10152_v38, %v4128_v32  ;;  %v3486_v41 = vpop.f32.mrb[40].mxu0  ;;  %5386 = vmatpush1.bf16.msra.mxu1 %v5161_v0  ;;  %v9409_v60 = vpop.f32.mrb[113].mxu1  ;;  %vm4766_vm5 = vcmp.gt.f32.partialorder %v4638_v45, 0.0 }
 0x2c3   : > { %10154 = vst [vmem:[#allocation12_spill] sm:$0xff] %v9409_v60  ;;  %vm4767_vm6 = vcmp.gt.f32.partialorder %v4639_v23, 0.0  ;;  %v4895_v34 = vmul.f32 0.01, %v4639_v23  ;;  %v6511_v61 = vadd.f32 %v3486_v41, %v10155_v29  ;;  %v3488_v57 = vpop.f32.mrb[41].mxu0  ;;  %v9412_v21 = vpop.f32.mrb[114].mxu1  ;;  %v5021_v6 = vsel %vm4765_vm4, %v4637_v16, %v4893_v47 }
 0x2c4   : > { %10156 = vst [vmem:[#allocation36_spill] sm:$0xff] %v9412_v21  ;;  %v4896_v19 = vmul.f32 0.01, %v4640_v44  ;;  %v6512_v4 = vadd.f32 %v3488_v57, %v10157_v12  ;;  %v3490_v62 = vpop.f32.mrb[42].mxu0  ;;  %v9415_v49 = vpop.f32.mrb[115].mxu1  ;;  %vm4768_vm7 = vcmp.gt.f32.partialorder %v4640_v44, 0.0  ;;  %v5022_v59 = vsel %vm4766_vm5, %v4638_v45, %v4894_v27 }
 0x2c5   : > { %10158 = vst [vmem:[#allocation38_spill] sm:$0xff] %v9415_v49  ;;  %v4129_v11 = vmul.f32 %v6511_v61, %v10159_v48  ;;  %v6513_v10 = vadd.f32 %v3490_v62, %v10160_v17  ;;  %v3492_v0 = vpop.f32.mrb[43].mxu0  ;;  %v5023_v32 = vsel %vm4767_vm6, %v4639_v23, %v4895_v34  ;;  %v10161_v41 = vld [vmem:[#allocation64_spill] sm:$0xff]  ;;  %v10162_v57 = vld [vmem:[#allocation25_spill] sm:$0xff]  ;;  %v10163_v46 = vld [vmem:[#allocation22_spill] sm:$0xff]  ;;  %v9428_v61 = vpop.permute.xlu1 %3956 }
 0x2c6   : > { %v4130_v38 = vmul.f32 %v6512_v4, %v10159_v48  ;;  %v6514_v29 = vadd.f32 %v3492_v0, %v10161_v41  ;;  %v5024_v21 = vsel %vm4768_vm7, %v4640_v44, %v4896_v19  ;;  %v5163_v60 = vpack.c.bf16 %v5023_v32, %v5021_v6  ;;  %v10164_v23 = vld [vmem:[#allocation26_spill] sm:$0xff]  ;;  %v9449_v1 = vpop.permute.xlu0 %4463 }
 0x2c7   : > { %v4641_v12 = vadd.f32 %v10162_v57, %v4129_v11  ;;  %v4131_v49 = vmul.f32 %v6513_v10, %v10163_v46  ;;  %v5164_v5 = vpack.c.bf16 %v5024_v21, %v5022_v59 }
 0x2c8   : > { %v4642_v16 = vadd.f32 %v10162_v57, %v4130_v38  ;;  %v4132_v47 = vmul.f32 %v6514_v29, %v10163_v46  ;;  %v10167_v46 = vld [vmem:[#allocation65_spill] sm:$0xff]  ;;  %v10172_v38 = vld [vmem:[#allocation67_spill] sm:$0xff] }
 0x2c9   : > { %vm4769_vm8 = vcmp.gt.f32.partialorder %v4641_v12, 0.0  ;;  %v4897_v45 = vmul.f32 0.01, %v4641_v12  ;;  %v4643_v27 = vadd.f32 %v10164_v23, %v4131_v49  ;;  %5387 = vmatprep.subr.bf16.mxu1 %v5164_v5  ;;  %v9431_v44 = vpop.f32.mrb[116].mxu1  ;;  %v10169_v49 = vld [vmem:[#allocation66_spill] sm:$0xff] }
 0x2ca   : > { %10165 = vst [vmem:[#allocation13_spill] sm:$0xff] %v9431_v44  ;;  %v4898_v34 = vmul.f32 0.01, %v4642_v16  ;;  %v4644_v19 = vadd.f32 %v10164_v23, %v4132_v47  ;;  %v3496_v4 = vpop.f32.mrb[44].mxu0  ;;  %5388 = vmatpush1.bf16.msra.mxu1 %v5163_v60  ;;  %v9434_v21 = vpop.f32.mrb[117].mxu1  ;;  %vm4770_vm9 = vcmp.gt.f32.partialorder %v4642_v16, 0.0 }
 0x2cb   : > { %10166 = vst [vmem:[#allocation40_spill] sm:$0xff] %v9434_v21  ;;  %vm4771_vm10 = vcmp.gt.f32.partialorder %v4643_v27, 0.0  ;;  %v4899_v62 = vmul.f32 0.01, %v4643_v27  ;;  %v6515_v6 = vadd.f32 %v3496_v4, %v10167_v46  ;;  %v3498_v48 = vpop.f32.mrb[45].mxu0  ;;  %v9437_v11 = vpop.f32.mrb[118].mxu1  ;;  %v5025_v59 = vsel %vm4769_vm8, %v4641_v12, %v4897_v45 }
 0x2cc   : > { %10168 = vst [vmem:[#allocation41_spill] sm:$0xff] %v9437_v11  ;;  %v4900_v17 = vmul.f32 0.01, %v4644_v19  ;;  %v6516_v5 = vadd.f32 %v3498_v48, %v10169_v49  ;;  %v3500_v10 = vpop.f32.mrb[46].mxu0  ;;  %v9440_v0 = vpop.f32.mrb[119].mxu1  ;;  %vm4772_vm11 = vcmp.gt.f32.partialorder %v4644_v19, 0.0  ;;  %v5026_v57 = vsel %vm4770_vm9, %v4642_v16, %v4898_v34 }
 0x2cd   : > { %10170 = vst [vmem:[#allocation15_spill] sm:$0xff] %v9440_v0  ;;  %v10171_v60 = vld [vmem:[#allocation29_spill] sm:$0xff]  ;;  %v6517_v41 = vadd.f32 %v3500_v10, %v10172_v38  ;;  %v3502_v29 = vpop.f32.mrb[47].mxu0  ;;  %v5027_v47 = vsel %vm4771_vm10, %v4643_v27, %v4899_v62  ;;  %v10173_v4 = vld [vmem:[#allocation68_spill] sm:$0xff]  ;;  %v10175_v44 = vld [vmem:[#allocation31_spill] sm:$0xff]  ;;  %v9474_v28 = vpop.permute.xlu0 %3961 }
 0x2ce   : > { %v4133_v32 = vmul.f32 %v6515_v6, %v10171_v60  ;;  %v4134_v23 = vmul.f32 %v6516_v5, %v10171_v60  ;;  %v6518_v46 = vadd.f32 %v3502_v29, %v10173_v4  ;;  %v5028_v11 = vsel %vm4772_vm11, %v4644_v19, %v4900_v17  ;;  %v10174_v48 = vld [vmem:[#allocation32_spill] sm:$0xff]  ;;  %v9453_v6 = vpop.permute.xlu1 %4468  ;;  %v10176_v27 = vld [vmem:[#allocation35_spill] sm:$0xff] }
 0x2cf   : > { %v5165_v21 = vpack.c.bf16 %v5027_v47, %v5025_v59  ;;  %v4135_v0 = vmul.f32 %v6517_v41, %v10175_v44  ;;  %v5166_v8 = vpack.c.bf16 %v5028_v11, %v5026_v57 }
 0x2d0   : > { %v4645_v49 = vadd.f32 %v10174_v48, %v4133_v32  ;;  %v4646_v12 = vadd.f32 %v10174_v48, %v4134_v23  ;;  %v4136_v45 = vmul.f32 %v6518_v46, %v10175_v44  ;;  %v10179_v44 = vld [vmem:[#allocation69_spill] sm:$0xff]  ;;  %v10184_v23 = vld [vmem:[#allocation71_spill] sm:$0xff] }
 0x2d1   : > { %v4647_v34 = vadd.f32 %v10176_v27, %v4135_v0  ;;  %5389 = vmatprep.subr.bf16.mxu1 %v5166_v8  ;;  %v9456_v19 = vpop.f32.mrb[120].mxu1  ;;  %v10181_v0 = vld [vmem:[#allocation70_spill] sm:$0xff] }
 0x2d2   : > { %vm4773_vm12 = vcmp.gt.f32.partialorder %v4645_v49, 0.0  ;;  %v4901_v16 = vmul.f32 0.01, %v4645_v49  ;;  %10177 = vst [vmem:[#allocation14_spill] sm:$0xff] %v9456_v19  ;;  %v4902_v62 = vmul.f32 0.01, %v4646_v12  ;;  %v4648_v17 = vadd.f32 %v10176_v27, %v4136_v45  ;;  %5390 = vmatpush1.bf16.msra.mxu1 %v5165_v21 }
 0x2d3   : > { %v3506_v5 = vpop.f32.mrb[48].mxu0  ;;  %v9459_v11 = vpop.f32.mrb[121].mxu1  ;;  %vm4774_vm13 = vcmp.gt.f32.partialorder %v4646_v12, 0.0  ;;  %vm4775_vm14 = vcmp.gt.f32.partialorder %v4647_v34, 0.0  ;;  %v4903_v10 = vmul.f32 0.01, %v4647_v34 }
 0x2d4   : > { %10178 = vst [vmem:[#allocation16_spill] sm:$0xff] %v9459_v11  ;;  %v6519_v59 = vadd.f32 %v3506_v5, %v10179_v44  ;;  %v3508_v60 = vpop.f32.mrb[49].mxu0  ;;  %v9462_v32 = vpop.f32.mrb[122].mxu1  ;;  %v4904_v38 = vmul.f32 0.01, %v4648_v17  ;;  %vm4776_vm15 = vcmp.gt.f32.partialorder %v4648_v17, 0.0  ;;  %v5029_v57 = vsel %vm4773_vm12, %v4645_v49, %v4901_v16 }
 0x2d5   : > { %10180 = vst [vmem:[#allocation57_spill] sm:$0xff] %v9462_v32  ;;  %v6520_v8 = vadd.f32 %v3508_v60, %v10181_v0  ;;  %v3510_v41 = vpop.f32.mrb[50].mxu0  ;;  %v9465_v29 = vpop.f32.mrb[123].mxu1  ;;  %v10183_v21 = vld [vmem:[#allocation37_spill] sm:$0xff]  ;;  %v5030_v48 = vsel %vm4774_vm13, %v4646_v12, %v4902_v62  ;;  %v5031_v45 = vsel %vm4775_vm14, %v4647_v34, %v4903_v10  ;;  %v10185_v5 = vld [vmem:[#allocation72_spill] sm:$0xff]  ;;  %v10186_v60 = vld [vmem:[#allocation42_spill] sm:$0xff] }
 0x2d6   : > { %10182 = vst [vmem:[#allocation58_spill] sm:$0xff] %v9465_v29  ;;  %v4137_v47 = vmul.f32 %v6519_v59, %v10183_v21  ;;  %v6521_v4 = vadd.f32 %v3510_v41, %v10184_v23  ;;  %v3512_v46 = vpop.f32.mrb[51].mxu0  ;;  %v5032_v32 = vsel %vm4776_vm15, %v4648_v17, %v4904_v38  ;;  %v5167_v11 = vpack.c.bf16 %v5031_v45, %v5029_v57  ;;  %v10187_v19 = vld [vmem:[#allocation39_spill] sm:$0xff]  ;;  %v9478_v59 = vpop.permute.xlu1 %3966 }
 0x2d7   : > { %v4138_v27 = vmul.f32 %v6520_v8, %v10183_v21  ;;  %v6522_v44 = vadd.f32 %v3512_v46, %v10185_v5  ;;  %v5168_v39 = vpack.c.bf16 %v5032_v32, %v5030_v48  ;;  %v10188_v34 = vld [vmem:[#allocation43_spill] sm:$0xff] }
 0x2d8   : > { %v4649_v0 = vadd.f32 %v10186_v60, %v4137_v47  ;;  %v4139_v29 = vmul.f32 %v6521_v4, %v10187_v19 }
 0x2d9   : > { %v4650_v49 = vadd.f32 %v10186_v60, %v4138_v27  ;;  %v4140_v16 = vmul.f32 %v6522_v44, %v10187_v19  ;;  %5391 = vmatprep.subr.bf16.mxu1 %v5168_v39  ;;  %v9481_v17 = vpop.f32.mrb[124].mxu1  ;;  %v10191_v19 = vld [vmem:[#allocation73_spill] sm:$0xff]  ;;  %v10196_v27 = vld [vmem:[#allocation75_spill] sm:$0xff] }
 0x2da   : > { %vm4777_vm0 = vcmp.gt.f32.partialorder %v4649_v0, 0.0  ;;  %v4905_v12 = vmul.f32 0.01, %v4649_v0  ;;  %v4651_v62 = vadd.f32 %v10188_v34, %v4139_v29  ;;  %10189 = vst [vmem:[#allocation17_spill] sm:$0xff] %v9481_v17  ;;  %v3516_v8 = vpop.f32.mrb[52].mxu0  ;;  %5392 = vmatpush1.bf16.msra.mxu1 %v5167_v11  ;;  %v9484_v32 = vpop.f32.mrb[125].mxu1 }
 0x2db   : > { %v4906_v10 = vmul.f32 0.01, %v4650_v49  ;;  %v4652_v38 = vadd.f32 %v10188_v34, %v4140_v16  ;;  %10190 = vst [vmem:[#allocation59_spill] sm:$0xff] %v9484_v32  ;;  %vm4778_vm1 = vcmp.gt.f32.partialorder %v4650_v49, 0.0  ;;  %v6523_v57 = vadd.f32 %v3516_v8, %v10191_v19  ;;  %v3518_v21 = vpop.f32.mrb[53].mxu0  ;;  %v9487_v47 = vpop.f32.mrb[126].mxu1 }
 0x2dc   : > { %vm4779_vm2 = vcmp.gt.f32.partialorder %v4651_v62, 0.0  ;;  %v4907_v41 = vmul.f32 0.01, %v4651_v62  ;;  %10192 = vst [vmem:[#allocation60_spill] sm:$0xff] %v9487_v47  ;;  %v10193_v29 = vld [vmem:[#allocation74_spill] sm:$0xff]  ;;  %v3520_v4 = vpop.f32.mrb[54].mxu0  ;;  %v5033_v48 = vsel %vm4777_vm0, %v4649_v0, %v4905_v12  ;;  %v9495_v34 = vpop.permute.xlu0 %4473 }
 0x2dd   : > { %v4908_v23 = vmul.f32 0.01, %v4652_v38  ;;  %v6524_v39 = vadd.f32 %v3518_v21, %v10193_v29  ;;  %v9490_v46 = vpop.f32.mrb[127].mxu1  ;;  %vm4780_vm3 = vcmp.gt.f32.partialorder %v4652_v38, 0.0  ;;  %v10195_v11 = vld [vmem:[#allocation44_spill] sm:$0xff]  ;;  %v6525_v5 = vadd.f32 %v3520_v4, %v10196_v27  ;;  %v3522_v44 = vpop.f32.mrb[55].mxu0 }
 0x2de   : > { %10194 = vst [vmem:[#allocation19_spill] sm:$0xff] %v9490_v46  ;;  %v4141_v45 = vmul.f32 %v6523_v57, %v10195_v11  ;;  %v5034_v60 = vsel %vm4778_vm1, %v4650_v49, %v4906_v10  ;;  %v5035_v16 = vsel %vm4779_vm2, %v4651_v62, %v4907_v41  ;;  %v10197_v19 = vld [vmem:[#allocation76_spill] sm:$0xff]  ;;  %v10198_v32 = vld [vmem:[#allocation46_spill] sm:$0xff]  ;;  %v10199_v17 = vld [vmem:[#allocation45_spill] sm:$0xff]  ;;  %v9501_v12 = vpop.permute.xlu1 %4478 }
 0x2df   : > { %v4142_v8 = vmul.f32 %v6524_v39, %v10195_v11  ;;  %v6526_v47 = vadd.f32 %v3522_v44, %v10197_v19  ;;  %v5036_v21 = vsel %vm4780_vm3, %v4652_v38, %v4908_v23  ;;  %v5169_v29 = vpack.c.bf16 %v5035_v16, %v5033_v48  ;;  %v10200_v10 = vld [vmem:[#allocation47_spill] sm:$0xff]  ;;  %v10201_v48 = vld [vmem:[#allocation77_spill] sm:$0xff]  ;;  %v10203_v44 = vld [vmem:[#allocation48_spill] sm:$0xff] }
 0x2e0   : > { %v4653_v46 = vadd.f32 %v10198_v32, %v4141_v45  ;;  %v4143_v24 = vmul.f32 %v6525_v5, %v10199_v17  ;;  %v5170_v0 = vpack.c.bf16 %v5036_v21, %v5034_v60  ;;  %v9508_v27 = vpop.permute.xlu0 %3971  ;;  %v10204_v16 = vld [vmem:[#allocation79_spill] sm:$0xff] }
 0x2e1   : > { %v4654_v57 = vadd.f32 %v10198_v32, %v4142_v8  ;;  %v4144_v49 = vmul.f32 %v6526_v47, %v10199_v17  ;;  %v10202_v17 = vld [vmem:[#allocation78_spill] sm:$0xff] }
 0x2e2   : > { %vm4781_vm4 = vcmp.gt.f32.partialorder %v4653_v46, 0.0  ;;  %v4909_v62 = vmul.f32 0.01, %v4653_v46  ;;  %v4655_v41 = vadd.f32 %v10200_v10, %v4143_v24  ;;  %5393 = vmatprep.subr.bf16.mxu1 %v5170_v0  ;;  %v3526_v23 = vpop.f32.mrb[56].mxu0  ;;  %v9514_v0 = vpop.permute.xlu1 %3976 }
 0x2e3   : > { %v4910_v39 = vmul.f32 0.01, %v4654_v57  ;;  %v4656_v38 = vadd.f32 %v10200_v10, %v4144_v49  ;;  %5394 = vmatpush1.bf16.msra.mxu1 %v5169_v29  ;;  %vm4782_vm5 = vcmp.gt.f32.partialorder %v4654_v57, 0.0  ;;  %v6527_v11 = vadd.f32 %v3526_v23, %v10201_v48  ;;  %v3528_v45 = vpop.f32.mrb[57].mxu0  ;;  %v10205_v10 = vld [vmem:[#allocation80_spill] sm:$0xff] }
 0x2e4   : > { %vm4783_vm6 = vcmp.gt.f32.partialorder %v4655_v41, 0.0  ;;  %v4911_v4 = vmul.f32 0.01, %v4655_v41  ;;  %v6528_v47 = vadd.f32 %v3528_v45, %v10202_v17  ;;  %v3530_v5 = vpop.f32.mrb[58].mxu0  ;;  %v5037_v24 = vsel %vm4781_vm4, %v4653_v46, %v4909_v62  ;;  %v10206_v45 = vld [vmem:[#allocation50_spill] sm:$0xff] }
 0x2e5   : > { %v4912_v32 = vmul.f32 0.01, %v4656_v38  ;;  %vm4784_vm7 = vcmp.gt.f32.partialorder %v4656_v38, 0.0  ;;  %v4145_v60 = vmul.f32 %v6527_v11, %v10203_v44  ;;  %v6529_v8 = vadd.f32 %v3530_v5, %v10204_v16  ;;  %v3532_v19 = vpop.f32.mrb[59].mxu0 }
 0x2e6   : > { %v5038_v21 = vsel %vm4782_vm5, %v4654_v57, %v4910_v39  ;;  %v5039_v29 = vsel %vm4783_vm6, %v4655_v41, %v4911_v4  ;;  %v4146_v49 = vmul.f32 %v6528_v47, %v10203_v44  ;;  %v6530_v23 = vadd.f32 %v3532_v19, %v10205_v10  ;;  %v10208_v41 = vld [vmem:[#allocation51_spill] sm:$0xff]  ;;  %v9523_v4 = vpop.permute.xlu0 %4483  ;;  %v9527_v16 = vpop.permute.xlu1 %4488 }
 0x2e7   : > { %v5040_v48 = vsel %vm4784_vm7, %v4656_v38, %v4912_v32  ;;  %v5171_v63 = vpack.c.bf16 %v5039_v29, %v5037_v24  ;;  %v4657_v17 = vadd.f32 %v10206_v45, %v4145_v60  ;;  %v4147_v7 = vmul.f32 %v6529_v8, %v10207_v22  ;;  %v10209_v24 = vld [vmem:[#allocation81_spill] sm:$0xff]  ;;  %v10210_v8 = vld [vmem:[#allocation82_spill] sm:$0xff]  ;;  %v10211_v29 = vld [vmem:[#allocation52_spill] sm:$0xff] }
 0x2e8   : > { %v5172_v46 = vpack.c.bf16 %v5040_v48, %v5038_v21  ;;  %v4658_v62 = vadd.f32 %v10206_v45, %v4146_v49  ;;  %v4148_v11 = vmul.f32 %v6530_v23, %v10207_v22  ;;  %v10212_v10 = vld [vmem:[#allocation83_spill] sm:$0xff] }
 0x2e9   : > { %vm4785_vm8 = vcmp.gt.f32.partialorder %v4657_v17, 0.0  ;;  %v4913_v57 = vmul.f32 0.01, %v4657_v17  ;;  %v4659_v39 = vadd.f32 %v10208_v41, %v4147_v7 }
 0x2ea   : > { %5395 = vmatprep.subr.bf16.mxu1 %v5172_v46  ;;  %v4914_v47 = vmul.f32 0.01, %v4658_v62  ;;  %v4660_v38 = vadd.f32 %v10208_v41, %v4148_v11  ;;  %v3536_v32 = vpop.f32.mrb[60].mxu0  ;;  %vm4786_vm9 = vcmp.gt.f32.partialorder %v4658_v62, 0.0  ;;  %v10213_v11 = vld [vmem:[#allocation84_spill] sm:$0xff]  ;;  %v9537_v36 = vpop.permute.xlu0 %3981 }
 0x2eb   : > { %5396 = vmatpush1.bf16.msra.mxu1 %v5171_v63  ;;  %vm4787_vm10 = vcmp.gt.f32.partialorder %v4659_v39, 0.0  ;;  %v4915_v5 = vmul.f32 0.01, %v4659_v39  ;;  %v6531_v44 = vadd.f32 %v3536_v32, %v10209_v24  ;;  %v3538_v60 = vpop.f32.mrb[61].mxu0  ;;  %v5041_v21 = vsel %vm4785_vm8, %v4657_v17, %v4913_v57 }
 0x2ec   : > { %v4916_v22 = vmul.f32 0.01, %v4660_v38  ;;  %v6532_v19 = vadd.f32 %v3538_v60, %v10210_v8  ;;  %v3540_v7 = vpop.f32.mrb[62].mxu0  ;;  %vm4788_vm11 = vcmp.gt.f32.partialorder %v4660_v38, 0.0  ;;  %v5042_v48 = vsel %vm4786_vm9, %v4658_v62, %v4914_v47  ;;  %v10215_v60 = vld [vmem:[#allocation53_spill] sm:$0xff] }
 0x2ed   : > { %v4149_v49 = vmul.f32 %v6531_v44, %v10211_v29  ;;  %v6533_v23 = vadd.f32 %v3540_v7, %v10212_v10  ;;  %v3542_v63 = vpop.f32.mrb[63].mxu0  ;;  %v5043_v45 = vsel %vm4787_vm10, %v4659_v39, %v4915_v5  ;;  %v10216_v39 = vld [vmem:[#allocation55_spill] sm:$0xff]  ;;  %v9542_v5 = vpop.permute.xlu1 %3986  ;;  %v10217_v7 = vld [vmem:[#allocation85_spill] sm:$0xff] }
 0x2ee   : > { %v4150_v46 = vmul.f32 %v6532_v19, %v10211_v29  ;;  %v6534_v41 = vadd.f32 %v3542_v63, %v10213_v11  ;;  %v5044_v32 = vsel %vm4788_vm11, %v4660_v38, %v4916_v22  ;;  %v5173_v24 = vpack.c.bf16 %v5043_v45, %v5041_v21  ;;  %v10219_v63 = vld [vmem:[#allocation56_spill] sm:$0xff]  ;;  %v10220_v45 = vld [vmem:[#allocation87_spill] sm:$0xff] }
 0x2ef   : > { %v4661_v33 = vadd.f32 %v10214_v35, %v4149_v49  ;;  %v4151_v8 = vmul.f32 %v6533_v23, %v10215_v60  ;;  %v5174_v13 = vpack.c.bf16 %v5044_v32, %v5042_v48  ;;  %v10218_v49 = vld [vmem:[#allocation86_spill] sm:$0xff] }
 0x2f0   : > { %v4662_v17 = vadd.f32 %v10214_v35, %v4150_v46  ;;  %v4152_v57 = vmul.f32 %v6534_v41, %v10215_v60 }
 0x2f1   : > { %vm4789_vm12 = vcmp.gt.f32.partialorder %v4661_v33, 0.0  ;;  %v4917_v62 = vmul.f32 0.01, %v4661_v33  ;;  %v4663_v47 = vadd.f32 %v10216_v39, %v4151_v8  ;;  %5397 = vmatprep.subr.bf16.mxu1 %v5174_v13  ;;  %v10221_v8 = vld [vmem:[#allocation88_spill] sm:$0xff] }
 0x2f2   : > { %v4918_v38 = vmul.f32 0.01, %v4662_v17  ;;  %v4664_v44 = vadd.f32 %v10216_v39, %v4152_v57  ;;  %v3546_v22 = vpop.f32.mrb[64].mxu0  ;;  %5398 = vmatpush1.bf16.msra.mxu1 %v5173_v24  ;;  %vm4790_vm13 = vcmp.gt.f32.partialorder %v4662_v17, 0.0  ;;  %v9550_v24 = vpop.permute.xlu0 %4493 }
 0x2f3   : > { %vm4791_vm14 = vcmp.gt.f32.partialorder %v4663_v47, 0.0  ;;  %v4919_v19 = vmul.f32 0.01, %v4663_v47  ;;  %v6535_v21 = vadd.f32 %v3546_v22, %v10217_v7  ;;  %v3548_v35 = vpop.f32.mrb[65].mxu0  ;;  %v5045_v13 = vsel %vm4789_vm12, %v4661_v33, %v4917_v62  ;;  %v9556_v62 = vpop.permute.xlu1 %4498 }
 0x2f4   : > { %v4920_v29 = vmul.f32 0.01, %v4664_v44  ;;  %v6536_v10 = vadd.f32 %v3548_v35, %v10218_v49  ;;  %v3550_v23 = vpop.f32.mrb[66].mxu0  ;;  %vm4792_vm15 = vcmp.gt.f32.partialorder %v4664_v44, 0.0  ;;  %v5046_v41 = vsel %vm4790_vm13, %v4662_v17, %v4918_v38 }
 0x2f5   : > { %v4153_v48 = vmul.f32 %v6535_v21, %v10219_v63  ;;  %v6537_v46 = vadd.f32 %v3550_v23, %v10220_v45  ;;  %v3552_v11 = vpop.f32.mrb[67].mxu0  ;;  %v5047_v32 = vsel %vm4791_vm14, %v4663_v47, %v4919_v19  ;;  %v10223_v45 = vld [vmem:[#allocation90_spill] sm:$0xff] }
 0x2f6   : > { %v4154_v60 = vmul.f32 %v6536_v10, %v10219_v63  ;;  %v6538_v57 = vadd.f32 %v3552_v11, %v10221_v8  ;;  %v5048_v39 = vsel %vm4792_vm15, %v4664_v44, %v4920_v29  ;;  %v5175_v22 = vpack.c.bf16 %v5047_v32, %v5045_v13  ;;  %v6915_v44 = vld [vmem:[%s9951_s4] ss:$16 sps:$4 sm:$0xff]   ;;  %v10222_v10 = vld [vmem:[#allocation89_spill] sm:$0xff]  ;;  %v9569_v63 = vpop.permute.xlu0 %3991  ;;  %v10224_v32 = vld [vmem:[#allocation91_spill] sm:$0xff] }
 0x2f7   : > { %v4665_v7 = vadd.f32 %v9349_v9, %v4153_v48  ;;  %v4155_v35 = vmul.f32 %v6537_v46, %v9328_v42  ;;  %v5176_v33 = vpack.c.bf16 %v5048_v39, %v5046_v41 }
 0x2f8   : > { %v4666_v21 = vadd.f32 %v9349_v9, %v4154_v60  ;;  %v4156_v17 = vmul.f32 %v6538_v57, %v9328_v42  ;;  %v6918_v9 = vld [vmem:[%s9951_s4 + $0x24] ss:$16 sps:$4 sm:$0xff]  }
 0x2f9   : > { %vm4793_vm0 = vcmp.gt.f32.partialorder %v4665_v7, 0.0  ;;  %v4921_v47 = vmul.f32 0.01, %v4665_v7  ;;  %v4667_v38 = vadd.f32 %v9353_v14, %v4155_v35  ;;  %5399 = vmatprep.subr.bf16.mxu1 %v5176_v33  ;;  %v10225_v33 = vld [vmem:[#allocation92_spill] sm:$0xff] }
 0x2fa   : > { %v4922_v19 = vmul.f32 0.01, %v4666_v21  ;;  %v4668_v29 = vadd.f32 %v9353_v14, %v4156_v17  ;;  %v3556_v49 = vpop.f32.mrb[68].mxu0  ;;  %5400 = vmatpush1.bf16.msra.mxu1 %v5175_v22  ;;  %vm4794_vm1 = vcmp.gt.f32.partialorder %v4666_v21, 0.0  ;;  %v9575_v22 = vpop.permute.xlu1 %3996 }
 0x2fb   : > { %vm4795_vm2 = vcmp.gt.f32.partialorder %v4667_v38, 0.0  ;;  %v4923_v42 = vmul.f32 0.01, %v4667_v38  ;;  %v6539_v23 = vadd.f32 %v3556_v49, %v10222_v10  ;;  %v3558_v13 = vpop.f32.mrb[69].mxu0  ;;  %v5049_v14 = vsel %vm4793_vm0, %v4665_v7, %v4921_v47 }
 0x2fc   : > { %v4924_v48 = vmul.f32 0.01, %v4668_v29  ;;  %v6540_v46 = vadd.f32 %v3558_v13, %v10223_v45  ;;  %v3560_v11 = vpop.f32.mrb[70].mxu0  ;;  %vm4796_vm3 = vcmp.gt.f32.partialorder %v4668_v29, 0.0  ;;  %v5050_v57 = vsel %vm4794_vm1, %v4666_v21, %v4922_v19  ;;  %v9587_v19 = vpop.permute.xlu0 %4503 }
 0x2fd   : > { %v4157_v41 = vmul.f32 %v6539_v23, %v9374_v26  ;;  %v6541_v60 = vadd.f32 %v3560_v11, %v10224_v32  ;;  %v3562_v8 = vpop.f32.mrb[71].mxu0  ;;  %5402 = vmatmul.mubr.bf16.vlgmr.msra.gmra.mrb[128].mxu1 %v6915_v44  ;;  %v5051_v39 = vsel %vm4795_vm2, %v4667_v38, %v4923_v42 }
 0x2fe   : > { %v4158_v35 = vmul.f32 %v6540_v46, %v9374_v26  ;;  %v6542_v17 = vadd.f32 %v3562_v8, %v10225_v33  ;;  %v5052_v49 = vsel %vm4796_vm3, %v4668_v29, %v4924_v48  ;;  %v5177_v10 = vpack.c.bf16 %v5051_v39, %v5049_v14  ;;  %5411 = vmatprep.mubr.bf16.mxu1 %v6918_v9  ;;  %v6920_v26 = vld [vmem:[%s9951_s4 + $0x20] ss:$16 sps:$4 sm:$0xff]   ;;  %v10226_v48 = vld [vmem:[#allocation93_spill] sm:$0xff]  ;;  %v9594_v11 = vpop.permute.xlu1 %4508 }
 0x2ff   : > { %v4669_v13 = vadd.f32 %v9399_v3, %v4157_v41  ;;  %v4159_v7 = vmul.f32 %v6541_v60, %v9378_v18  ;;  %v5178_v47 = vpack.c.bf16 %v5052_v49, %v5050_v57  ;;  %v10227_v41 = vld [vmem:[#allocation94_spill] sm:$0xff]  ;;  %v10228_v49 = vld [vmem:[#allocation95_spill] sm:$0xff] }
 0x300   : > { %v4670_v23 = vadd.f32 %v9399_v3, %v4158_v35  ;;  %v4160_v21 = vmul.f32 %v6542_v17, %v9378_v18  ;;  %v6921_v18 = vld [vmem:[%s9951_s4 + $0x44] ss:$16 sps:$4 sm:$0xff]  }
 0x301   : > { %vm4797_vm4 = vcmp.gt.f32.partialorder %v4669_v13, 0.0  ;;  %v4925_v38 = vmul.f32 0.01, %v4669_v13  ;;  %v4671_v44 = vadd.f32 %v9403_v54, %v4159_v7  ;;  %5482 = vmatprep.subr.bf16.mxu1 %v5178_v47 }
 0x302   : > { %v4926_v29 = vmul.f32 0.01, %v4670_v23  ;;  %v4672_v9 = vadd.f32 %v9403_v54, %v4160_v21  ;;  %v3566_v42 = vpop.f32.mrb[72].mxu0  ;;  %5483 = vmatpush1.bf16.msra.mxu1 %v5177_v10  ;;  %vm4798_vm5 = vcmp.gt.f32.partialorder %v4670_v23, 0.0 }
 0x303   : > { %vm4799_vm6 = vcmp.gt.f32.partialorder %v4671_v44, 0.0  ;;  %v4927_v3 = vmul.f32 0.01, %v4671_v44  ;;  %v6543_v45 = vadd.f32 %v3566_v42, %v10226_v48  ;;  %v3568_v46 = vpop.f32.mrb[73].mxu0  ;;  %v5053_v54 = vsel %vm4797_vm4, %v4669_v13, %v4925_v38  ;;  %v9604_v38 = vpop.permute.xlu0 %4001  ;;  %v10229_v48 = vld [vmem:[#allocation96_spill] sm:$0xff] }
 0x304   : > { %v4928_v14 = vmul.f32 0.01, %v4672_v9  ;;  %v6544_v32 = vadd.f32 %v3568_v46, %v10227_v41  ;;  %v3570_v60 = vpop.f32.mrb[74].mxu0  ;;  %vm4800_vm7 = vcmp.gt.f32.partialorder %v4672_v9, 0.0  ;;  %v5054_v35 = vsel %vm4798_vm5, %v4670_v23, %v4926_v29  ;;  %v9612_v29 = vpop.permute.xlu1 %4006  ;;  %v10230_v41 = vld [vmem:[#allocation97_spill] sm:$0xff] }
 0x305   : > { %v4161_v8 = vmul.f32 %v6543_v45, %v9424_v15  ;;  %v6545_v57 = vadd.f32 %v3570_v60, %v9136_v40  ;;  %v3572_v39 = vpop.f32.mrb[75].mxu0  ;;  %v5055_v33 = vsel %vm4799_vm6, %v4671_v44, %v4927_v3  ;;  %5412 = vmatmul.mubr.bf16.gmra.mrb[132].mxu1 %v6920_v26  ;;  %v6923_v26 = vld [vmem:[%s9951_s4 + $0x40] ss:$16 sps:$4 sm:$0xff]  }
 0x306   : > { %v4162_v17 = vmul.f32 %v6544_v32, %v9424_v15  ;;  %v6546_v10 = vadd.f32 %v3572_v39, %v10228_v49  ;;  %v5056_v7 = vsel %vm4800_vm7, %v4672_v9, %v4928_v14  ;;  %v5179_v47 = vpack.c.bf16 %v5055_v33, %v5053_v54  ;;  %5421 = vmatprep.mubr.bf16.mxu1 %v6921_v18 }
 0x307   : > { %v4673_v21 = vadd.f32 %v9449_v1, %v4161_v8  ;;  %v4163_v42 = vmul.f32 %v6545_v57, %v9428_v61  ;;  %v5180_v13 = vpack.c.bf16 %v5056_v7, %v5054_v35  ;;  %v10231_v8 = vld [vmem:[#allocation98_spill] sm:$0xff] }
 0x308   : > { %v4674_v40 = vadd.f32 %v9449_v1, %v4162_v17  ;;  %v4164_v23 = vmul.f32 %v6546_v10, %v9428_v61  ;;  %v6924_v1 = vld [vmem:[%s9951_s4 + $0x64] ss:$16 sps:$4 sm:$0xff]   ;;  %v9623_v17 = vpop.permute.xlu0 %4513  ;;  %v10232_v10 = vld [vmem:[#allocation99_spill] sm:$0xff] }
 0x309   : > { %vm4801_vm8 = vcmp.gt.f32.partialorder %v4673_v21, 0.0  ;;  %v4929_v44 = vmul.f32 0.01, %v4673_v21  ;;  %v4675_v15 = vadd.f32 %v9453_v6, %v4163_v42  ;;  %5484 = vmatprep.subr.bf16.mxu1 %v5180_v13 }
 0x30a   : > { %v4930_v9 = vmul.f32 0.01, %v4674_v40  ;;  %v4676_v18 = vadd.f32 %v9453_v6, %v4164_v23  ;;  %v3576_v3 = vpop.f32.mrb[76].mxu0  ;;  %5485 = vmatpush1.bf16.msra.mxu1 %v5179_v47  ;;  %vm4802_vm9 = vcmp.gt.f32.partialorder %v4674_v40, 0.0 }
 0x30b   : > { %vm4803_vm10 = vcmp.gt.f32.partialorder %v4675_v15, 0.0  ;;  %v4931_v61 = vmul.f32 0.01, %v4675_v15  ;;  %v6547_v45 = vadd.f32 %v3576_v3, %v10229_v48  ;;  %v3578_v46 = vpop.f32.mrb[77].mxu0  ;;  %v5057_v54 = vsel %vm4801_vm8, %v4673_v21, %v4929_v44  ;;  %v9629_v44 = vpop.permute.xlu1 %4518 }
 0x30c   : > { %v4932_v14 = vmul.f32 0.01, %v4676_v18  ;;  %v6548_v32 = vadd.f32 %v3578_v46, %v10230_v41  ;;  %v3580_v60 = vpop.f32.mrb[78].mxu0  ;;  %vm4804_vm11 = vcmp.gt.f32.partialorder %v4676_v18, 0.0  ;;  %v5058_v35 = vsel %vm4802_vm9, %v4674_v40, %v4930_v9  ;;  %v6926_v9 = vld [vmem:[%s9951_s4 + $0x60] ss:$16 sps:$4 sm:$0xff]  }
 0x30d   : > { %v4165_v6 = vmul.f32 %v6547_v45, %v9474_v28  ;;  %v6549_v57 = vadd.f32 %v3580_v60, %v10231_v8  ;;  %v3582_v39 = vpop.f32.mrb[79].mxu0  ;;  %v5059_v33 = vsel %vm4803_vm10, %v4675_v15, %v4931_v61  ;;  %5422 = vmatmul.mubr.bf16.gmra.mrb[136].mxu1 %v6923_v26  ;;  %v9642_v45 = vpop.permute.xlu0 %4011 }
 0x30e   : > { %v4166_v49 = vmul.f32 %v6548_v32, %v9474_v28  ;;  %v6550_v7 = vadd.f32 %v3582_v39, %v10232_v10  ;;  %v5060_v47 = vsel %vm4804_vm11, %v4676_v18, %v4932_v14  ;;  %v5181_v42 = vpack.c.bf16 %v5059_v33, %v5057_v54  ;;  %5431 = vmatprep.mubr.bf16.mxu1 %v6924_v1 }
 0x30f   : > { %v4677_v13 = vadd.f32 %v9495_v34, %v4165_v6  ;;  %v4167_v21 = vmul.f32 %v6549_v57, %v9478_v59  ;;  %v5182_v23 = vpack.c.bf16 %v5060_v47, %v5058_v35  ;;  %v9648_v57 = vpop.permute.xlu1 %4016 }
 0x310   : > { %v4678_v40 = vadd.f32 %v9495_v34, %v4166_v49  ;;  %v4168_v15 = vmul.f32 %v6550_v7, %v9478_v59  ;;  %v6927_v34 = vld [vmem:[%s9951_s4 + $0x84] ss:$16 sps:$4 sm:$0xff]  }
 0x311   : > { %vm4805_vm12 = vcmp.gt.f32.partialorder %v4677_v13, 0.0  ;;  %v4933_v26 = vmul.f32 0.01, %v4677_v13  ;;  %v4679_v28 = vadd.f32 %v9501_v12, %v4167_v21  ;;  %5486 = vmatprep.subr.bf16.mxu1 %v5182_v23 }
 0x312   : > { %v4934_v18 = vmul.f32 0.01, %v4678_v40  ;;  %v4680_v3 = vadd.f32 %v9501_v12, %v4168_v15  ;;  %v3586_v1 = vpop.f32.mrb[80].mxu0  ;;  %5487 = vmatpush1.bf16.msra.mxu1 %v5181_v42  ;;  %vm4806_vm13 = vcmp.gt.f32.partialorder %v4678_v40, 0.0 }
 0x313   : > { %vm4807_vm14 = vcmp.gt.f32.partialorder %v4679_v28, 0.0  ;;  %v4935_v59 = vmul.f32 0.01, %v4679_v28  ;;  %v6551_v61 = vadd.f32 %v3586_v1, %v9198_v51  ;;  %v3588_v48 = vpop.f32.mrb[81].mxu0  ;;  %v5061_v12 = vsel %vm4805_vm12, %v4677_v13, %v4933_v26  ;;  %v9667_v26 = vpop.permute.xlu1 %4528 }
 0x314   : > { %v4936_v46 = vmul.f32 0.01, %v4680_v3  ;;  %v6552_v14 = vadd.f32 %v3588_v48, %v9201_v53  ;;  %v3590_v41 = vpop.f32.mrb[82].mxu0  ;;  %vm4808_vm15 = vcmp.gt.f32.partialorder %v4680_v3, 0.0  ;;  %v5062_v6 = vsel %vm4806_vm13, %v4678_v40, %v4934_v18 }
 0x315   : > { %v4169_v32 = vmul.f32 %v6551_v61, %v9508_v27  ;;  %v6553_v60 = vadd.f32 %v3590_v41, %v9206_v58  ;;  %v3592_v54 = vpop.f32.mrb[83].mxu0  ;;  %v5063_v8 = vsel %vm4807_vm14, %v4679_v28, %v4935_v59  ;;  %5432 = vmatmul.mubr.bf16.gmra.mrb[140].mxu1 %v6926_v9 }
 0x316   : > { %v4170_v51 = vmul.f32 %v6552_v14, %v9508_v27  ;;  %v6554_v39 = vadd.f32 %v3592_v54, %v9211_v43  ;;  %v5064_v35 = vsel %vm4808_vm15, %v4680_v3, %v4936_v46  ;;  %v5183_v53 = vpack.c.bf16 %v5063_v8, %v5061_v12  ;;  %5441 = vmatprep.mubr.bf16.mxu1 %v6927_v34  ;;  %v6929_v43 = vld [vmem:[%s9951_s4 + $0x80] ss:$16 sps:$4 sm:$0xff]   ;;  %v9660_v27 = vpop.permute.xlu0 %4523 }
 0x317   : > { %v4681_v33 = vadd.f32 %v9523_v4, %v4169_v32  ;;  %v4171_v49 = vmul.f32 %v6553_v60, %v9514_v0  ;;  %v5184_v10 = vpack.c.bf16 %v5064_v35, %v5062_v6  ;;  %v9685_v6 = vpop.permute.xlu1 %4026 }
 0x318   : > { %v4682_v58 = vadd.f32 %v9523_v4, %v4170_v51  ;;  %v4172_v7 = vmul.f32 %v6554_v39, %v9514_v0  ;;  %v6930_v0 = vld [vmem:[%s9951_s4 + $0xa4] ss:$16 sps:$4 sm:$0xff]  }
 0x319   : > { %vm4809_vm0 = vcmp.gt.f32.partialorder %v4681_v33, 0.0  ;;  %v4937_v47 = vmul.f32 0.01, %v4681_v33  ;;  %v4683_v42 = vadd.f32 %v9527_v16, %v4171_v49  ;;  %5488 = vmatprep.subr.bf16.mxu1 %v5184_v10 }
 0x31a   : > { %v4938_v13 = vmul.f32 0.01, %v4682_v58  ;;  %v4684_v21 = vadd.f32 %v9527_v16, %v4172_v7  ;;  %v3596_v23 = vpop.f32.mrb[84].mxu0  ;;  %5489 = vmatpush1.bf16.msra.mxu1 %v5183_v53  ;;  %vm4810_vm1 = vcmp.gt.f32.partialorder %v4682_v58, 0.0  ;;  %v9677_v32 = vpop.permute.xlu0 %4021 }
 0x31b   : > { %vm4811_vm2 = vcmp.gt.f32.partialorder %v4683_v42, 0.0  ;;  %v4939_v4 = vmul.f32 0.01, %v4683_v42  ;;  %v6555_v40 = vadd.f32 %v3596_v23, %v9235_v37  ;;  %v3598_v15 = vpop.f32.mrb[85].mxu0  ;;  %v5065_v16 = vsel %vm4809_vm0, %v4681_v33, %v4937_v47 }
 0x31c   : > { %v4940_v28 = vmul.f32 0.01, %v4684_v21  ;;  %v6556_v9 = vadd.f32 %v3598_v15, %v9238_v55  ;;  %v3600_v18 = vpop.f32.mrb[86].mxu0  ;;  %vm4812_vm3 = vcmp.gt.f32.partialorder %v4684_v21, 0.0  ;;  %v5066_v59 = vsel %vm4810_vm1, %v4682_v58, %v4938_v13  ;;  %v9702_v15 = vpop.permute.xlu1 %4538 }
 0x31d   : > { %v4173_v3 = vmul.f32 %v6555_v40, %v9537_v36  ;;  %v6557_v1 = vadd.f32 %v3600_v18, %v9243_v25  ;;  %v3602_v34 = vpop.f32.mrb[87].mxu0  ;;  %v5067_v61 = vsel %vm4811_vm2, %v4683_v42, %v4939_v4  ;;  %5442 = vmatmul.mubr.bf16.gmra.mrb[144].mxu1 %v6929_v43 }
 0x31e   : > { %v4174_v37 = vmul.f32 %v6556_v9, %v9537_v36  ;;  %v6558_v48 = vadd.f32 %v3602_v34, %v9248_v56  ;;  %v5068_v46 = vsel %vm4812_vm3, %v4684_v21, %v4940_v28  ;;  %v5185_v14 = vpack.c.bf16 %v5067_v61, %v5065_v16  ;;  %5451 = vmatprep.mubr.bf16.mxu1 %v6930_v0  ;;  %v6932_v56 = vld [vmem:[%s9951_s4 + $0xa0] ss:$16 sps:$4 sm:$0xff]   ;;  %v9696_v13 = vpop.permute.xlu0 %4533 }
 0x31f   : > { %v4685_v55 = vadd.f32 %v9550_v24, %v4173_v3  ;;  %v4175_v41 = vmul.f32 %v6557_v1, %v9542_v5  ;;  %v5186_v12 = vpack.c.bf16 %v5068_v46, %v5066_v59 }
 0x320   : > { %v4686_v25 = vadd.f32 %v9550_v24, %v4174_v37  ;;  %v4176_v60 = vmul.f32 %v6558_v48, %v9542_v5  ;;  %v6933_v5 = vld [vmem:[%s9951_s4 + $0xc4] ss:$16 sps:$4 sm:$0xff]  }
 0x321   : > { %vm4813_vm4 = vcmp.gt.f32.partialorder %v4685_v55, 0.0  ;;  %v4941_v54 = vmul.f32 0.01, %v4685_v55  ;;  %v4687_v36 = vadd.f32 %v9556_v62, %v4175_v41  ;;  %5490 = vmatprep.subr.bf16.mxu1 %v5186_v12 }
 0x322   : > { %v4942_v8 = vmul.f32 0.01, %v4686_v25  ;;  %v4688_v51 = vadd.f32 %v9556_v62, %v4176_v60  ;;  %v3606_v39 = vpop.f32.mrb[88].mxu0  ;;  %5491 = vmatpush1.bf16.msra.mxu1 %v5185_v14  ;;  %vm4814_vm5 = vcmp.gt.f32.partialorder %v4686_v25, 0.0  ;;  %v9715_v59 = vpop.permute.xlu0 %4031  ;;  %v10233_v14 = vld [vmem:[#allocation100_spill] sm:$0xff] }
 0x323   : > { %vm4815_vm6 = vcmp.gt.f32.partialorder %v4687_v36, 0.0  ;;  %v4943_v24 = vmul.f32 0.01, %v4687_v36  ;;  %v6559_v35 = vadd.f32 %v3606_v39, %v9262_v2  ;;  %v3608_v53 = vpop.f32.mrb[89].mxu0  ;;  %v5069_v58 = vsel %vm4813_vm4, %v4685_v55, %v4941_v54  ;;  %v9721_v60 = vpop.permute.xlu1 %4036  ;;  %v10234_v54 = vld [vmem:[#allocation101_spill] sm:$0xff] }
 0x324   : > { %v4944_v33 = vmul.f32 0.01, %v4688_v51  ;;  %v6560_v49 = vadd.f32 %v3608_v53, %v9265_v20  ;;  %v3610_v10 = vpop.f32.mrb[90].mxu0  ;;  %vm4816_vm7 = vcmp.gt.f32.partialorder %v4688_v51, 0.0  ;;  %v5070_v42 = vsel %vm4814_vm5, %v4686_v25, %v4942_v8 }
 0x325   : > { %v4177_v62 = vmul.f32 %v6559_v35, %v9569_v63  ;;  %v6561_v7 = vadd.f32 %v3610_v10, %v9268_v30  ;;  %v3612_v47 = vpop.f32.mrb[91].mxu0  ;;  %v5071_v43 = vsel %vm4815_vm6, %v4687_v36, %v4943_v24  ;;  %5452 = vmatmul.mubr.bf16.gmra.mrb[148].mxu1 %v6932_v56 }
 0x326   : > { %v4178_v2 = vmul.f32 %v6560_v49, %v9569_v63  ;;  %v6562_v21 = vadd.f32 %v3612_v47, %v9273_v50  ;;  %v5072_v23 = vsel %vm4816_vm7, %v4688_v51, %v4944_v33  ;;  %v5187_v20 = vpack.c.bf16 %v5071_v43, %v5069_v58  ;;  %5461 = vmatprep.mubr.bf16.mxu1 %v6933_v5  ;;  %v6935_v50 = vld [vmem:[%s9951_s4 + $0xc0] ss:$16 sps:$4 sm:$0xff]   ;;  %v9733_v33 = vpop.permute.xlu0 %4543 }
 0x327   : > { %v4689_v0 = vadd.f32 %v9587_v19, %v4177_v62  ;;  %v4179_v4 = vmul.f32 %v6561_v7, %v9575_v22  ;;  %v5188_v40 = vpack.c.bf16 %v5072_v23, %v5070_v42  ;;  %v10235_v62 = vld [vmem:[#allocation23_spill] sm:$0xff]  ;;  %v9740_v42 = vpop.permute.xlu1 %4548 }
 0x328   : > { %v4690_v30 = vadd.f32 %v9587_v19, %v4178_v2  ;;  %v4180_v28 = vmul.f32 %v6562_v21, %v9575_v22  ;;  %v6936_v19 = vld [vmem:[%s9951_s4 + $0xe4] ss:$16 sps:$4 sm:$0xff]   ;;  %v10236_v2 = vld [vmem:[#allocation3_spill] sm:$0xff] }
 0x329   : > { %vm4817_vm8 = vcmp.gt.f32.partialorder %v4689_v0, 0.0  ;;  %v4945_v9 = vmul.f32 0.01, %v4689_v0  ;;  %v4691_v63 = vadd.f32 %v9594_v11, %v4179_v4  ;;  %5492 = vmatprep.subr.bf16.mxu1 %v5188_v40 }
 0x32a   : > { %v4946_v18 = vmul.f32 0.01, %v4690_v30  ;;  %v4692_v16 = vadd.f32 %v9594_v11, %v4180_v28  ;;  %v3616_v3 = vpop.f32.mrb[92].mxu0  ;;  %5493 = vmatpush1.bf16.msra.mxu1 %v5187_v20  ;;  %vm4818_vm9 = vcmp.gt.f32.partialorder %v4690_v30, 0.0 }
 0x32b   : > { %vm4819_vm10 = vcmp.gt.f32.partialorder %v4691_v63, 0.0  ;;  %v4947_v22 = vmul.f32 0.01, %v4691_v63  ;;  %v6563_v1 = vadd.f32 %v3616_v3, %v9287_v52  ;;  %v3618_v34 = vpop.f32.mrb[93].mxu0  ;;  %v5073_v11 = vsel %vm4817_vm8, %v4689_v0, %v4945_v9  ;;  %v10237_v0 = vld [vmem:[#allocation2_spill] sm:$0xff] }
 0x32c   : > { %v4948_v61 = vmul.f32 0.01, %v4692_v16  ;;  %v6564_v37 = vadd.f32 %v3618_v34, %v9290_v31  ;;  %v3620_v48 = vpop.f32.mrb[94].mxu0  ;;  %vm4820_vm11 = vcmp.gt.f32.partialorder %v4692_v16, 0.0  ;;  %v5074_v12 = vsel %vm4818_vm9, %v4690_v30, %v4946_v18 }
 0x32d   : > { %v4181_v46 = vmul.f32 %v6563_v1, %v9604_v38  ;;  %v6565_v55 = vadd.f32 %v3620_v48, %v10233_v14  ;;  %v3622_v41 = vpop.f32.mrb[95].mxu0  ;;  %v5075_v25 = vsel %vm4819_vm10, %v4691_v63, %v4947_v22  ;;  %5462 = vmatmul.mubr.bf16.gmra.mrb[152].mxu1 %v6935_v50  ;;  %v10238_v63 = vld [vmem:[#allocation4_spill] sm:$0xff]  ;;  %v9750_v1 = vpop.permute.xlu0 %4041 }
 0x32e   : > { %v4182_v52 = vmul.f32 %v6564_v37, %v9604_v38  ;;  %v6566_v36 = vadd.f32 %v3622_v41, %v10234_v54  ;;  %v5076_v56 = vsel %vm4820_vm11, %v4692_v16, %v4948_v61  ;;  %v5189_v31 = vpack.c.bf16 %v5075_v25, %v5073_v11  ;;  %5471 = vmatprep.mubr.bf16.mxu1 %v6936_v19  ;;  %v6938_v38 = vld [vmem:[%s9951_s4 + $0xe0] ss:$16 sps:$4 sm:$0xff]   ;;  %v9755_v48 = vpop.permute.xlu1 %4046 }
 0x32f   : > { %v4693_v8 = vadd.f32 %v9623_v17, %v4181_v46  ;;  %v4183_v51 = vmul.f32 %v6565_v55, %v9612_v29  ;;  %v5190_v39 = vpack.c.bf16 %v5076_v56, %v5074_v12  ;;  %v10239_v41 = vld [vmem:[#allocation24_spill] sm:$0xff] }
 0x330   : > { %v4694_v5 = vadd.f32 %v9623_v17, %v4182_v52  ;;  %v4184_v24 = vmul.f32 %v6566_v36, %v9612_v29  ;;  %v6941_v29 = vld [vmem:[%s9951_s4 + $0xc] ss:$16 sps:$4 sm:$0xff]  }
 0x331   : > { %vm4821_vm12 = vcmp.gt.f32.partialorder %v4693_v8, 0.0  ;;  %v4949_v35 = vmul.f32 0.01, %v4693_v8  ;;  %v4695_v53 = vadd.f32 %v9629_v44, %v4183_v51  ;;  %5494 = vmatprep.subr.bf16.mxu1 %v5190_v39 }
 0x332   : > { %v4950_v49 = vmul.f32 0.01, %v4694_v5  ;;  %v4696_v10 = vadd.f32 %v9629_v44, %v4184_v24  ;;  %v3626_v58 = vpop.f32.mrb[96].mxu0  ;;  %5495 = vmatpush1.bf16.msra.mxu1 %v5189_v31  ;;  %vm4822_vm13 = vcmp.gt.f32.partialorder %v4694_v5, 0.0  ;;  %v10241_v31 = vld [vmem:[#allocation5_spill] sm:$0xff] }
 0x333   : > { %vm4823_vm14 = vcmp.gt.f32.partialorder %v4695_v53, 0.0  ;;  %v4951_v17 = vmul.f32 0.01, %v4695_v53  ;;  %v6567_v7 = vadd.f32 %v3626_v58, %v10235_v62  ;;  %v3628_v47 = vpop.f32.mrb[97].mxu0  ;;  %v5077_v44 = vsel %vm4821_vm12, %v4693_v8, %v4949_v35  ;;  %v10242_v35 = vld [vmem:[#allocation28_spill] sm:$0xff] }
 0x334   : > { %v4952_v43 = vmul.f32 0.01, %v4696_v10  ;;  %v6568_v21 = vadd.f32 %v3628_v47, %v10236_v2  ;;  %v3630_v23 = vpop.f32.mrb[98].mxu0  ;;  %vm4824_vm15 = vcmp.gt.f32.partialorder %v4696_v10, 0.0  ;;  %v5078_v30 = vsel %vm4822_vm13, %v4694_v5, %v4950_v49  ;;  %v9763_v5 = vpop.permute.xlu0 %4553 }
 0x335   : > { %v4185_v20 = vmul.f32 %v6567_v7, %v9642_v45  ;;  %v6569_v4 = vadd.f32 %v3630_v23, %v10237_v0  ;;  %v3632_v40 = vpop.f32.mrb[99].mxu0  ;;  %v5079_v28 = vsel %vm4823_vm14, %v4695_v53, %v4951_v17  ;;  %5472 = vmatmul.mubr.bf16.gmra.mrb[156].mxu1 %v6938_v38  ;;  %v9769_v17 = vpop.permute.xlu1 %4558 }
 0x336   : > { %v4186_v9 = vmul.f32 %v6568_v21, %v9642_v45  ;;  %v6570_v50 = vadd.f32 %v3632_v40, %v10238_v63  ;;  %v5080_v18 = vsel %vm4824_vm15, %v4696_v10, %v4952_v43  ;;  %v5191_v16 = vpack.c.bf16 %v5079_v28, %v5077_v44  ;;  %5514 = vmatprep.mubr.bf16.mxu1 %v6941_v29  ;;  %v10243_v44 = vld [vmem:[#allocation7_spill] sm:$0xff] }
 0x337   : > { %v4697_v3 = vadd.f32 %v9660_v27, %v4185_v20  ;;  %v4187_v19 = vmul.f32 %v6569_v4, %v9648_v57  ;;  %v5192_v22 = vpack.c.bf16 %v5080_v18, %v5078_v30 }
 0x338   : > { %v4698_v34 = vadd.f32 %v9660_v27, %v4186_v9  ;;  %v4188_v61 = vmul.f32 %v6570_v50, %v9648_v57  ;;  %v10240_v57 = vld [vmem:[#allocation27_spill] sm:$0xff]  ;;  %v9776_v4 = vpop.permute.xlu0 %4051 }
 0x339   : > { %vm4825_vm0 = vcmp.gt.f32.partialorder %v4697_v3, 0.0  ;;  %v4953_v37 = vmul.f32 0.01, %v4697_v3  ;;  %v4699_v45 = vadd.f32 %v9667_v26, %v4187_v19  ;;  %5496 = vmatprep.subr.bf16.mxu1 %v5192_v22  ;;  %v10246_v22 = vld [vmem:[#allocation30_spill] sm:$0xff] }
 0x33a   : > { %v4954_v11 = vmul.f32 0.01, %v4698_v34  ;;  %v4700_v46 = vadd.f32 %v9667_v26, %v4188_v61  ;;  %v3636_v14 = vpop.f32.mrb[100].mxu0  ;;  %5497 = vmatpush1.bf16.msra.mxu1 %v5191_v16  ;;  %vm4826_vm1 = vcmp.gt.f32.partialorder %v4698_v34, 0.0 }
 0x33b   : > { %vm4827_vm2 = vcmp.gt.f32.partialorder %v4699_v45, 0.0  ;;  %v4955_v55 = vmul.f32 0.01, %v4699_v45  ;;  %v6571_v12 = vadd.f32 %v3636_v14, %v10239_v41  ;;  %v3638_v27 = vpop.f32.mrb[101].mxu0  ;;  %v5081_v36 = vsel %vm4825_vm0, %v4697_v3, %v4953_v37  ;;  %v9782_v3 = vpop.permute.xlu1 %4056 }
 0x33c   : > { %v4956_v25 = vmul.f32 0.01, %v4700_v46  ;;  %v6572_v52 = vadd.f32 %v3638_v27, %v10240_v57  ;;  %v3640_v54 = vpop.f32.mrb[102].mxu0  ;;  %vm4828_vm3 = vcmp.gt.f32.partialorder %v4700_v46, 0.0  ;;  %v5082_v51 = vsel %vm4826_vm1, %v4698_v34, %v4954_v11  ;;  %v9791_v27 = vpop.permute.xlu0 %4563 }
 0x33d   : > { %v4189_v56 = vmul.f32 %v6571_v12, %v9677_v32  ;;  %v6573_v8 = vadd.f32 %v3640_v54, %v10241_v31  ;;  %v3642_v26 = vpop.f32.mrb[103].mxu0  ;;  %v5083_v39 = vsel %vm4827_vm2, %v4699_v45, %v4955_v55  ;;  %v10247_v54 = vld [vmem:[#allocation33_spill] sm:$0xff] }
 0x33e   : > { %v4190_v24 = vmul.f32 %v6572_v52, %v9677_v32  ;;  %v6574_v53 = vadd.f32 %v3642_v26, %v10242_v35  ;;  %v5084_v38 = vsel %vm4828_vm3, %v4700_v46, %v4956_v25  ;;  %v5193_v49 = vpack.c.bf16 %v5083_v39, %v5081_v36  ;;  %v10248_v31 = vld [vmem:[#allocation9_spill] sm:$0xff] }
 0x33f   : > { %v4701_v10 = vadd.f32 %v9696_v13, %v4189_v56  ;;  %v4191_v58 = vmul.f32 %v6573_v8, %v9685_v6  ;;  %v5194_v29 = vpack.c.bf16 %v5084_v38, %v5082_v51  ;;  %v4569_v56 = vpop.permute.xlu1 %4568 }
 0x340   : > { %v4702_v62 = vadd.f32 %v9696_v13, %v4190_v24  ;;  %v4192_v7 = vmul.f32 %v6574_v53, %v9685_v6  ;;  %v10244_v6 = vld [vmem:[#allocation6_spill] sm:$0xff] }
 0x341   : > { %vm4829_vm4 = vcmp.gt.f32.partialorder %v4701_v10, 0.0  ;;  %v4957_v47 = vmul.f32 0.01, %v4701_v10  ;;  %v4703_v43 = vadd.f32 %v9702_v15, %v4191_v58  ;;  %5498 = vmatprep.subr.bf16.mxu1 %v5194_v29  ;;  %v10249_v24 = vld [vmem:[#allocation34_spill] sm:$0xff] }
 0x342   : > { %v4958_v32 = vmul.f32 0.01, %v4702_v62  ;;  %v4704_v2 = vadd.f32 %v9702_v15, %v4192_v7  ;;  %v3646_v21 = vpop.f32.mrb[104].mxu0  ;;  %5499 = vmatpush1.bf16.msra.mxu1 %v5193_v49  ;;  %vm4830_vm5 = vcmp.gt.f32.partialorder %v4702_v62, 0.0  ;;  %v10245_v15 = vld [vmem:[#allocation8_spill] sm:$0xff] }
 0x343   : > { %vm4831_vm6 = vcmp.gt.f32.partialorder %v4703_v43, 0.0  ;;  %v4959_v23 = vmul.f32 0.01, %v4703_v43  ;;  %v6575_v20 = vadd.f32 %v3646_v21, %v10243_v44  ;;  %v3648_v0 = vpop.f32.mrb[105].mxu0  ;;  %v5085_v28 = vsel %vm4829_vm4, %v4701_v10, %v4957_v47  ;;  %v10250_v10 = vld [vmem:[#allocation11_spill] sm:$0xff] }
 0x344   : > { %v4960_v13 = vmul.f32 0.01, %v4704_v2  ;;  %v6576_v40 = vadd.f32 %v3648_v0, %v10244_v6  ;;  %v3650_v30 = vpop.f32.mrb[106].mxu0  ;;  %vm4832_vm7 = vcmp.gt.f32.partialorder %v4704_v2, 0.0  ;;  %v5086_v18 = vsel %vm4830_vm5, %v4702_v62, %v4958_v32  ;;  %v9803_v32 = vpop.permute.xlu0 %4061 }
 0x345   : > { %v4193_v9 = vmul.f32 %v6575_v20, %v9715_v59  ;;  %v6577_v63 = vadd.f32 %v3650_v30, %v10245_v15  ;;  %v3652_v50 = vpop.f32.mrb[107].mxu0  ;;  %v5087_v16 = vsel %vm4831_vm6, %v4703_v43, %v4959_v23 }
 0x346   : > { %v4194_v19 = vmul.f32 %v6576_v40, %v9715_v59  ;;  %v6578_v34 = vadd.f32 %v3652_v50, %v10246_v22  ;;  %v5088_v61 = vsel %vm4832_vm7, %v4704_v2, %v4960_v13  ;;  %v5195_v37 = vpack.c.bf16 %v5087_v16, %v5085_v28  ;;  %v10251_v40 = vld [vmem:[#allocation10_spill] sm:$0xff] }
 0x347   : > { %v4705_v45 = vadd.f32 %v9733_v33, %v4193_v9  ;;  %v4195_v11 = vmul.f32 %v6577_v63, %v9721_v60  ;;  %v5196_v46 = vpack.c.bf16 %v5088_v61, %v5086_v18  ;;  %v10253_v18 = vld [vmem:[#allocation36_spill] sm:$0xff] }
 0x348   : > { %v4706_v14 = vadd.f32 %v9733_v33, %v4194_v19  ;;  %v4196_v55 = vmul.f32 %v6578_v34, %v9721_v60  ;;  %v4574_v34 = vpop.permute.xlu0 %4573 }
 0x349   : > { %vm4833_vm8 = vcmp.gt.f32.partialorder %v4705_v45, 0.0  ;;  %v4961_v41 = vmul.f32 0.01, %v4705_v45  ;;  %v4707_v12 = vadd.f32 %v9740_v42, %v4195_v11  ;;  %5500 = vmatprep.subr.bf16.mxu1 %v5196_v46 }
 0x34a   : > { %v4962_v59 = vmul.f32 0.01, %v4706_v14  ;;  %v4708_v25 = vadd.f32 %v9740_v42, %v4196_v55  ;;  %v3656_v57 = vpop.f32.mrb[108].mxu0  ;;  %5501 = vmatpush1.bf16.msra.mxu1 %v5195_v37  ;;  %vm4834_vm9 = vcmp.gt.f32.partialorder %v4706_v14, 0.0  ;;  %v10254_v37 = vld [vmem:[#allocation38_spill] sm:$0xff] }
 0x34b   : > { %vm4835_vm10 = vcmp.gt.f32.partialorder %v4707_v12, 0.0  ;;  %v4963_v52 = vmul.f32 0.01, %v4707_v12  ;;  %v6579_v36 = vadd.f32 %v3656_v57, %v10247_v54  ;;  %v3658_v33 = vpop.f32.mrb[109].mxu0  ;;  %v5089_v51 = vsel %vm4833_vm8, %v4705_v45, %v4961_v41 }
 0x34c   : > { %v4964_v60 = vmul.f32 0.01, %v4708_v25  ;;  %v6580_v8 = vadd.f32 %v3658_v33, %v10248_v31  ;;  %v3660_v26 = vpop.f32.mrb[110].mxu0  ;;  %vm4836_vm11 = vcmp.gt.f32.partialorder %v4708_v25, 0.0  ;;  %v5090_v53 = vsel %vm4834_vm9, %v4706_v14, %v4962_v59 }
 0x34d   : > { %v4197_v39 = vmul.f32 %v6579_v36, %v9750_v1  ;;  %v6581_v42 = vadd.f32 %v3660_v26, %v10249_v24  ;;  %v3662_v35 = vpop.f32.mrb[111].mxu0  ;;  %v5091_v38 = vsel %vm4835_vm10, %v4707_v12, %v4963_v52  ;;  %v4072_v26 = vpop.permute.xlu0 %4071 }
 0x34e   : > { %v4198_v49 = vmul.f32 %v6580_v8, %v9750_v1  ;;  %v6582_v58 = vadd.f32 %v3662_v35, %v10250_v10  ;;  %v5092_v29 = vsel %vm4836_vm11, %v4708_v25, %v4964_v60  ;;  %v5197_v62 = vpack.c.bf16 %v5091_v38, %v5089_v51  ;;  %v9808_v1 = vpop.permute.xlu1 %4066  ;;  %v10255_v60 = vld [vmem:[#allocation13_spill] sm:$0xff] }
 0x34f   : > { %v4709_v7 = vadd.f32 %v9763_v5, %v4197_v39  ;;  %v4199_v47 = vmul.f32 %v6581_v42, %v9755_v48  ;;  %v5198_v43 = vpack.c.bf16 %v5092_v29, %v5090_v53  ;;  %v10256_v39 = vld [vmem:[#allocation40_spill] sm:$0xff]  ;;  %v10257_v35 = vld [vmem:[#allocation41_spill] sm:$0xff]  ;;  %v10258_v29 = vld [vmem:[#allocation15_spill] sm:$0xff] }
 0x350   : > { %v4710_v2 = vadd.f32 %v9763_v5, %v4198_v49  ;;  %v4200_v21 = vmul.f32 %v6582_v58, %v9755_v48  ;;  %v10252_v48 = vld [vmem:[#allocation12_spill] sm:$0xff] }
 0x351   : > { %vm4837_vm12 = vcmp.gt.f32.partialorder %v4709_v7, 0.0  ;;  %v4965_v23 = vmul.f32 0.01, %v4709_v7  ;;  %v4711_v44 = vadd.f32 %v9769_v17, %v4199_v47  ;;  %5502 = vmatprep.subr.bf16.mxu1 %v5198_v43 }
 0x352   : > { %v4966_v20 = vmul.f32 0.01, %v4710_v2  ;;  %v4712_v0 = vadd.f32 %v9769_v17, %v4200_v21  ;;  %v3666_v13 = vpop.f32.mrb[112].mxu0  ;;  %5503 = vmatpush1.bf16.msra.mxu1 %v5197_v62  ;;  %vm4838_vm13 = vcmp.gt.f32.partialorder %v4710_v2, 0.0  ;;  %v4579_v12 = vpop.permute.xlu1 %4578 }
 0x353   : > { %vm4839_vm14 = vcmp.gt.f32.partialorder %v4711_v44, 0.0  ;;  %v4967_v6 = vmul.f32 0.01, %v4711_v44  ;;  %v6583_v30 = vadd.f32 %v3666_v13, %v10251_v40  ;;  %v3668_v5 = vpop.f32.mrb[113].mxu0  ;;  %v5093_v63 = vsel %vm4837_vm12, %v4709_v7, %v4965_v23  ;;  %v4584_v13 = vpop.permute.xlu0 %4583 }
 0x354   : > { %v4968_v28 = vmul.f32 0.01, %v4712_v0  ;;  %v6584_v9 = vadd.f32 %v3668_v5, %v10252_v48  ;;  %v3670_v15 = vpop.f32.mrb[114].mxu0  ;;  %vm4840_vm15 = vcmp.gt.f32.partialorder %v4712_v0, 0.0  ;;  %v5094_v19 = vsel %vm4838_vm13, %v4710_v2, %v4966_v20  ;;  %v10259_v5 = vld [vmem:[#allocation14_spill] sm:$0xff] }
 0x355   : > { %v4201_v50 = vmul.f32 %v6583_v30, %v9776_v4  ;;  %v6585_v16 = vadd.f32 %v3670_v15, %v10253_v18  ;;  %v3672_v17 = vpop.f32.mrb[115].mxu0  ;;  %v5095_v22 = vsel %vm4839_vm14, %v4711_v44, %v4967_v6 }
 0x356   : > { %v4202_v61 = vmul.f32 %v6584_v9, %v9776_v4  ;;  %v6586_v45 = vadd.f32 %v3672_v17, %v10254_v37  ;;  %v5096_v11 = vsel %vm4840_vm15, %v4712_v0, %v4968_v28  ;;  %v5199_v46 = vpack.c.bf16 %v5095_v22, %v5093_v63  ;;  %v4077_v10 = vpop.permute.xlu1 %4076  ;;  %v10260_v63 = vld [vmem:[#allocation16_spill] sm:$0xff]  ;;  %v10261_v17 = vld [vmem:[#allocation57_spill] sm:$0xff] }
 0x357   : > { %v4713_v14 = vadd.f32 %v9791_v27, %v4201_v50  ;;  %v4203_v55 = vmul.f32 %v6585_v16, %v9782_v3  ;;  %v5200_v41 = vpack.c.bf16 %v5096_v11, %v5094_v19 }
 0x358   : > { %v4714_v59 = vadd.f32 %v9791_v27, %v4202_v61  ;;  %v4204_v25 = vmul.f32 %v6586_v45, %v9782_v3  ;;  %v10262_v45 = vld [vmem:[#allocation58_spill] sm:$0xff] }
 0x359   : > { %vm4841_vm0 = vcmp.gt.f32.partialorder %v4713_v14, 0.0  ;;  %v4969_v57 = vmul.f32 0.01, %v4713_v14  ;;  %v4715_v52 = vadd.f32 %v4569_v56, %v4203_v55  ;;  %5504 = vmatprep.subr.bf16.mxu1 %v5200_v41 }
 0x35a   : > { %v4970_v54 = vmul.f32 0.01, %v4714_v59  ;;  %v4716_v4 = vadd.f32 %v4569_v56, %v4204_v25  ;;  %v3676_v36 = vpop.f32.mrb[116].mxu0  ;;  %5505 = vmatpush1.bf16.msra.mxu1 %v5199_v46  ;;  %vm4842_vm1 = vcmp.gt.f32.partialorder %v4714_v59, 0.0  ;;  %v4589_v9 = vpop.permute.xlu1 %4588 }
 0x35b   : > { %vm4843_vm2 = vcmp.gt.f32.partialorder %v4715_v52, 0.0  ;;  %v4971_v33 = vmul.f32 0.01, %v4715_v52  ;;  %v6587_v31 = vadd.f32 %v3676_v36, %v10255_v60  ;;  %v3678_v8 = vpop.f32.mrb[117].mxu0  ;;  %v5097_v3 = vsel %vm4841_vm0, %v4713_v14, %v4969_v57 }
 0x35c   : > { %v4972_v51 = vmul.f32 0.01, %v4716_v4  ;;  %v6588_v27 = vadd.f32 %v3678_v8, %v10256_v39  ;;  %v3680_v24 = vpop.f32.mrb[118].mxu0  ;;  %vm4844_vm3 = vcmp.gt.f32.partialorder %v4716_v4, 0.0  ;;  %v5098_v38 = vsel %vm4842_vm1, %v4714_v59, %v4970_v54  ;;  %v4082_v59 = vpop.permute.xlu0 %4081  ;;  %v10263_v8 = vld [vmem:[#allocation17_spill] sm:$0xff] }
 0x35d   : > { %v4205_v42 = vmul.f32 %v6587_v31, %v9803_v32  ;;  %v6589_v56 = vadd.f32 %v3680_v24, %v10257_v35  ;;  %v3682_v53 = vpop.f32.mrb[119].mxu0  ;;  %v5099_v49 = vsel %vm4843_vm2, %v4715_v52, %v4971_v33 }
 0x35e   : > { %v4206_v58 = vmul.f32 %v6588_v27, %v9803_v32  ;;  %v6590_v62 = vadd.f32 %v3682_v53, %v10258_v29  ;;  %v5100_v7 = vsel %vm4844_vm3, %v4716_v4, %v4972_v51  ;;  %v5201_v47 = vpack.c.bf16 %v5099_v49, %v5097_v3  ;;  %v4087_v4 = vpop.permute.xlu1 %4086  ;;  %v10264_v27 = vld [vmem:[#allocation59_spill] sm:$0xff] }
 0x35f   : > { %v4717_v43 = vadd.f32 %v4574_v34, %v4205_v42  ;;  %v4207_v2 = vmul.f32 %v6589_v56, %v9808_v1  ;;  %v5202_v21 = vpack.c.bf16 %v5100_v7, %v5098_v38  ;;  %v10265_v56 = vld [vmem:[#allocation60_spill] sm:$0xff] }
 0x360   : > { %v4718_v23 = vadd.f32 %v4574_v34, %v4206_v58  ;;  %v4208_v44 = vmul.f32 %v6590_v62, %v9808_v1  ;;  %v4594_v58 = vpop.permute.xlu0 %4593  ;;  %v10266_v62 = vld [vmem:[#allocation19_spill] sm:$0xff] }
 0x361   : > { %vm4845_vm4 = vcmp.gt.f32.partialorder %v4717_v43, 0.0  ;;  %v4973_v20 = vmul.f32 0.01, %v4717_v43  ;;  %v4719_v0 = vadd.f32 %v4579_v12, %v4207_v2  ;;  %5506 = vmatprep.subr.bf16.mxu1 %v5202_v21 }
 0x362   : > { %v4974_v6 = vmul.f32 0.01, %v4718_v23  ;;  %v4720_v40 = vadd.f32 %v4579_v12, %v4208_v44  ;;  %v3686_v30 = vpop.f32.mrb[120].mxu0  ;;  %5507 = vmatpush1.bf16.msra.mxu1 %v5201_v47  ;;  %vm4846_vm5 = vcmp.gt.f32.partialorder %v4718_v23, 0.0  ;;  %v4599_v44 = vpop.permute.xlu1 %4598 }
 0x363   : > { %vm4847_vm6 = vcmp.gt.f32.partialorder %v4719_v0, 0.0  ;;  %v4975_v32 = vmul.f32 0.01, %v4719_v0  ;;  %v6591_v28 = vadd.f32 %v3686_v30, %v10259_v5  ;;  %v3688_v48 = vpop.f32.mrb[121].mxu0  ;;  %v5101_v18 = vsel %vm4845_vm4, %v4717_v43, %v4973_v20 }
 0x364   : > { %v4976_v15 = vmul.f32 0.01, %v4720_v40  ;;  %v6592_v50 = vadd.f32 %v3688_v48, %v10260_v63  ;;  %v3690_v1 = vpop.f32.mrb[122].mxu0  ;;  %vm4848_vm7 = vcmp.gt.f32.partialorder %v4720_v40, 0.0  ;;  %v5102_v34 = vsel %vm4846_vm5, %v4718_v23, %v4974_v6 }
 0x365   : > { %v4209_v16 = vmul.f32 %v6591_v28, %v4072_v26  ;;  %v6593_v19 = vadd.f32 %v3690_v1, %v10261_v17  ;;  %v3692_v22 = vpop.f32.mrb[123].mxu0  ;;  %v5103_v61 = vsel %vm4847_vm6, %v4719_v0, %v4975_v32  ;;  %v6939_v1 = vld [vmem:[%s9951_s4 + $0x8] ss:$16 sps:$4 sm:$0xff]   ;;  %v6945_v17 = vld [vmem:[%s9951_s4 + $0x4c] ss:$16 sps:$4 sm:$0xff]  }
 0x366   : > { %v4210_v37 = vmul.f32 %v6592_v50, %v4072_v26  ;;  %v6594_v11 = vadd.f32 %v3692_v22, %v10262_v45  ;;  %v5104_v46 = vsel %vm4848_vm7, %v4720_v40, %v4976_v15  ;;  %v5203_v14 = vpack.c.bf16 %v5103_v61, %v5101_v18  ;;  %v6942_v18 = vld [vmem:[%s9951_s4 + $0x2c] ss:$16 sps:$4 sm:$0xff]  }
 0x367   : > { %v4721_v55 = vadd.f32 %v4584_v13, %v4209_v16  ;;  %v4211_v41 = vmul.f32 %v6593_v19, %v4077_v10  ;;  %v5204_v12 = vpack.c.bf16 %v5104_v46, %v5102_v34  ;;  %v6944_v16 = vld [vmem:[%s9951_s4 + $0x28] ss:$16 sps:$4 sm:$0xff]   ;;  %v6948_v22 = vld [vmem:[%s9951_s4 + $0x6c] ss:$16 sps:$4 sm:$0xff]  }
 0x368   : > { %v4722_v25 = vadd.f32 %v4584_v13, %v4210_v37  ;;  %v4212_v57 = vmul.f32 %v6594_v11, %v4077_v10  ;;  %v6947_v19 = vld [vmem:[%s9951_s4 + $0x48] ss:$16 sps:$4 sm:$0xff]   ;;  %v6951_v61 = vld [vmem:[%s9951_s4 + $0x8c] ss:$16 sps:$4 sm:$0xff]  }
 0x369   : > { %vm4849_vm8 = vcmp.gt.f32.partialorder %v4721_v55, 0.0  ;;  %v4977_v52 = vmul.f32 0.01, %v4721_v55  ;;  %v4723_v54 = vadd.f32 %v4589_v9, %v4211_v41  ;;  %5508 = vmatprep.subr.bf16.mxu1 %v5204_v12  ;;  %v6950_v34 = vld [vmem:[%s9951_s4 + $0x68] ss:$16 sps:$4 sm:$0xff]   ;;  %v10267_v12 = vmov 0  }
 0x36a   : > { %v4978_v36 = vmul.f32 0.01, %v4722_v25  ;;  %v4724_v33 = vadd.f32 %v4589_v9, %v4212_v57  ;;  %v3696_v60 = vpop.f32.mrb[124].mxu0  ;;  %5509 = vmatpush1.bf16.msra.mxu1 %v5203_v14  ;;  %vm4850_vm9 = vcmp.gt.f32.partialorder %v4722_v25, 0.0  ;;  %v6953_v37 = vld [vmem:[%s9951_s4 + $0x88] ss:$16 sps:$4 sm:$0xff]  }
 0x36b   : > { %vm4851_vm10 = vcmp.gt.f32.partialorder %v4723_v54, 0.0  ;;  %v4979_v31 = vmul.f32 0.01, %v4723_v54  ;;  %v6595_v26 = vadd.f32 %v3696_v60, %v10263_v8  ;;  %v3698_v51 = vpop.f32.mrb[125].mxu0  ;;  %v5105_v42 = vsel %vm4849_vm8, %v4721_v55, %v4977_v52  ;;  %v6954_v45 = vld [vmem:[%s9951_s4 + $0xac] ss:$16 sps:$4 sm:$0xff]  }
 0x36c   : > { %v4980_v39 = vmul.f32 0.01, %v4724_v33  ;;  %v6596_v24 = vadd.f32 %v3698_v51, %v10264_v27  ;;  %v3700_v3 = vpop.f32.mrb[126].mxu0  ;;  %vm4852_vm11 = vcmp.gt.f32.partialorder %v4724_v33, 0.0  ;;  %v5106_v49 = vsel %vm4850_vm9, %v4722_v25, %v4978_v36  ;;  %v6956_v11 = vld [vmem:[%s9951_s4 + $0xa8] ss:$16 sps:$4 sm:$0xff]   ;;  %v5619_v25 = vpop.permute.xlu1 %5618 }
 0x36d   : > { %v4213_v35 = vmul.f32 %v6595_v26, %v4082_v59  ;;  %v6597_v53 = vadd.f32 %v3700_v3, %v10265_v56  ;;  %v3702_v38 = vpop.f32.mrb[127].mxu0  ;;  %v5107_v10 = vsel %vm4851_vm10, %v4723_v54, %v4979_v31  ;;  %v6957_v46 = vld [vmem:[%s9951_s4 + $0xcc] ss:$16 sps:$4 sm:$0xff]   ;;  %v6959_v14 = vld [vmem:[%s9951_s4 + $0xc8] ss:$16 sps:$4 sm:$0xff]  }
 0x36e   : > { %v4214_v29 = vmul.f32 %v6596_v24, %v4082_v59  ;;  %v6598_v7 = vadd.f32 %v3702_v38, %v10266_v62  ;;  %v5108_v47 = vsel %vm4852_vm11, %v4724_v33, %v4980_v39  ;;  %v5205_v43 = vpack.c.bf16 %v5107_v10, %v5105_v42  ;;  %v6960_v55 = vld [vmem:[%s9951_s4 + $0xec] ss:$16 sps:$4 sm:$0xff]   ;;  %v6962_v41 = vld [vmem:[%s9951_s4 + $0xe8] ss:$16 sps:$4 sm:$0xff]   ;;  %v5614_v59 = vpop.permute.xlu0 %5613 }
 0x36f   : > { %v4725_v2 = vadd.f32 %v4594_v58, %v4213_v35  ;;  %v4215_v21 = vmul.f32 %v6597_v53, %v4087_v4  ;;  %v5206_v23 = vpack.c.bf16 %v5108_v47, %v5106_v49 }
 0x370   : > { %v4726_v20 = vadd.f32 %v4594_v58, %v4214_v29  ;;  %v4216_v0 = vmul.f32 %v6598_v7, %v4087_v4  ;;  %v5747_v52 = vpop.permute.xlu1 %5746 }
 0x371   : > { %v4981_v13 = vmul.f32 0.01, %v4725_v2  ;;  %v4727_v6 = vadd.f32 %v4599_v44, %v4215_v21  ;;  %5510 = vmatprep.subr.bf16.mxu1 %v5206_v23  ;;  %vm4853_vm12 = vcmp.gt.f32.partialorder %v4725_v2, 0.0 }
 0x372   : > { %v4982_v40 = vmul.f32 0.01, %v4726_v20  ;;  %v4728_v30 = vadd.f32 %v4599_v44, %v4216_v0  ;;  %5511 = vmatpush1.bf16.msra.mxu1 %v5205_v43  ;;  %vm4854_vm14 = vcmp.gt.f32.partialorder %v4726_v20, 0.0  ;;  %v5742_v57 = vpop.permute.xlu0 %5741 }
 0x373   : > { %vm4855_vm13 = vcmp.gt.f32.partialorder %v4727_v6, 0.0  ;;  %v4983_v32 = vmul.f32 0.01, %v4727_v6  ;;  %v5109_v28 = vsel %vm4853_vm12, %v4725_v2, %v4981_v13 }
 0x374   : > { %v4984_v5 = vmul.f32 0.01, %v4728_v30  ;;  %vm4856_vm15 = vcmp.gt.f32.partialorder %v4728_v30, 0.0  ;;  %v5110_v9 = vsel %vm4854_vm14, %v4726_v20, %v4982_v40  ;;  %v5629_v4 = vpop.permute.xlu1 %5628 }
 0x375   : > { %v5111_v48 = vsel %vm4855_vm13, %v4727_v6, %v4983_v32 }
 0x376   : > { %v5112_v15 = vsel %vm4856_vm15, %v4728_v30, %v4984_v5  ;;  %v5207_v63 = vpack.c.bf16 %v5111_v48, %v5109_v28  ;;  %v5624_v54 = vpop.permute.xlu0 %5623 }
 0x377   : > { %v5208_v50 = vpack.c.bf16 %v5112_v15, %v5110_v9 }
 0x378   : > { %v5757_v33 = vpop.permute.xlu1 %5756 }
 0x379   : > { %5512 = vmatprep.subr.bf16.mxu1 %v5208_v50 }
 0x37a   : > { %5513 = vmatpush1.bf16.msra.mxu1 %v5207_v63  ;;  %v5752_v36 = vpop.permute.xlu0 %5751 }
 0x37c   : > { %v9889_v31 = vpop.permute.xlu1 %5638 }
 0x37d   : > { %5515 = vmatmul.mubr.bf16.vlgmr.msra.gmra.mrb[128].mxu1 %v6939_v1 }
 0x37e   : > { %5524 = vmatprep.mubr.bf16.mxu1 %v6942_v18  ;;  %v9887_v60 = vpop.permute.xlu0 %5633 }
 0x380   : > { %v9893_v26 = vpop.permute.xlu1 %5766 }
 0x382   : > { %v9891_v8 = vpop.permute.xlu0 %5761 }
 0x384   : > { %v9897_v29 = vpop.permute.xlu1 %5648 }
 0x385   : > { %5525 = vmatmul.mubr.bf16.gmra.mrb[132].mxu1 %v6944_v16 }
 0x386   : > { %5534 = vmatprep.mubr.bf16.mxu1 %v6945_v17  ;;  %v9895_v53 = vpop.permute.xlu0 %5643 }
 0x388   : > { %v9901_v15 = vpop.permute.xlu1 %5776 }
 0x38a   : > { %v9899_v0 = vpop.permute.xlu0 %5771 }
 0x38d   : > { %5535 = vmatmul.mubr.bf16.gmra.mrb[136].mxu1 %v6947_v19 }
 0x38e   : > { %5544 = vmatprep.mubr.bf16.mxu1 %v6948_v22  ;;  %v9903_v22 = vpop.permute.xlu0 %5653 }
 0x395   : > { %5545 = vmatmul.mubr.bf16.gmra.mrb[140].mxu1 %v6950_v34 }
 0x396   : > { %5554 = vmatprep.mubr.bf16.mxu1 %v6951_v61 }
 0x39d   : > { %5555 = vmatmul.mubr.bf16.gmra.mrb[144].mxu1 %v6953_v37 }
 0x39e   : > { %5564 = vmatprep.mubr.bf16.mxu1 %v6954_v45 }
 0x3a5   : > { %5565 = vmatmul.mubr.bf16.gmra.mrb[148].mxu1 %v6956_v11 }
 0x3a6   : > { %5574 = vmatprep.mubr.bf16.mxu1 %v6957_v46 }
 0x3ad   : > { %5575 = vmatmul.mubr.bf16.gmra.mrb[152].mxu1 %v6959_v14  ;;  %v9906_v14 = vpop.permute.xlu1 %5658 }
 0x3ae   : > { %5584 = vmatprep.mubr.bf16.mxu1 %v6960_v55 }
 0x3b5   : > { %5585 = vmatmul.mubr.bf16.gmra.mrb[156].mxu1 %v6962_v41 }
 0x3b6   : > { %6026 = vmatprep.mubr.bf16.mxu1 %v10267_v12 }
 0x450   : > { %v5516_v51 = vpop.f32.mrb[128].mxu1 }
 0x451   : > { %v5691_v39 = vmul.f32 %v5614_v59, %v5516_v51  ;;  %v5518_v27 = vpop.f32.mrb[129].mxu1 }
 0x452   : > { %v5692_v24 = vmul.f32 %v5614_v59, %v5518_v27  ;;  %v5520_v3 = vpop.f32.mrb[130].mxu1 }
 0x453   : > { %v5819_v42 = vadd.f32 %v5742_v57, %v5691_v39  ;;  %v5693_v35 = vmul.f32 %v5619_v25, %v5520_v3  ;;  %v5522_v56 = vpop.f32.mrb[131].mxu1 }
 0x454   : > { %v5820_v38 = vadd.f32 %v5742_v57, %v5692_v24  ;;  %v5694_v49 = vmul.f32 %v5619_v25, %v5522_v56  ;;  %v5782_v24 = vpop.permute.xlu0 %5781 }
 0x455   : > { %v5883_v10 = vmul.f32 0.01, %v5819_v42  ;;  %v5821_v58 = vadd.f32 %v5747_v52, %v5693_v35  ;;  %vm5851_vm0 = vcmp.gt.f32.partialorder %v5819_v42, 0.0  ;;  %v5787_v35 = vpop.permute.xlu1 %5786 }
 0x456   : > { %v5884_v62 = vmul.f32 0.01, %v5820_v38  ;;  %v5822_v7 = vadd.f32 %v5747_v52, %v5694_v49  ;;  %vm5852_vm1 = vcmp.gt.f32.partialorder %v5820_v38, 0.0 }
 0x457   : > { %vm5853_vm2 = vcmp.gt.f32.partialorder %v5821_v58, 0.0  ;;  %v5885_v47 = vmul.f32 0.01, %v5821_v58  ;;  %v5915_v21 = vsel %vm5851_vm0, %v5819_v42, %v5883_v10 }
 0x458   : > { %vm5854_vm3 = vcmp.gt.f32.partialorder %v5822_v7, 0.0  ;;  %v5886_v43 = vmul.f32 0.01, %v5822_v7  ;;  %v5526_v2 = vpop.f32.mrb[132].mxu1  ;;  %v5916_v40 = vsel %vm5852_vm1, %v5820_v38, %v5884_v62 }
 0x459   : > { %v5917_v23 = vsel %vm5853_vm2, %v5821_v58, %v5885_v47  ;;  %v5695_v44 = vmul.f32 %v5624_v54, %v5526_v2  ;;  %v5528_v20 = vpop.f32.mrb[133].mxu1 }
 0x45a   : > { %v5696_v13 = vmul.f32 %v5624_v54, %v5528_v20  ;;  %v5530_v6 = vpop.f32.mrb[134].mxu1  ;;  %v5918_v30 = vsel %vm5854_vm3, %v5822_v7, %v5886_v43  ;;  %v5950_v32 = vpack.c.bf16 %v5917_v23, %v5915_v21 }
 0x45b   : > { %v5823_v5 = vadd.f32 %v5752_v36, %v5695_v44  ;;  %v5697_v28 = vmul.f32 %v5629_v4, %v5530_v6  ;;  %v5532_v48 = vpop.f32.mrb[135].mxu1  ;;  %v5951_v9 = vpack.c.bf16 %v5918_v30, %v5916_v40  ;;  %v5664_v44 = vpop.permute.xlu0 %5663 }
 0x45c   : > { %v5824_v63 = vadd.f32 %v5752_v36, %v5696_v13  ;;  %v5698_v50 = vmul.f32 %v5629_v4, %v5532_v48 }
 0x45d   : > { %v5887_v1 = vmul.f32 0.01, %v5823_v5  ;;  %v5825_v18 = vadd.f32 %v5757_v33, %v5697_v28  ;;  %5994 = vmatprep.subr.bf16.mxu1 %v5951_v9  ;;  %vm5855_vm4 = vcmp.gt.f32.partialorder %v5823_v5, 0.0 }
 0x45e   : > { %v5888_v16 = vmul.f32 0.01, %v5824_v63  ;;  %v5826_v17 = vadd.f32 %v5757_v33, %v5698_v50  ;;  %5995 = vmatpush1.bf16.msra.mxu1 %v5950_v32  ;;  %vm5856_vm5 = vcmp.gt.f32.partialorder %v5824_v63, 0.0 }
 0x45f   : > { %vm5857_vm6 = vcmp.gt.f32.partialorder %v5825_v18, 0.0  ;;  %v5889_v19 = vmul.f32 0.01, %v5825_v18  ;;  %v5919_v37 = vsel %vm5855_vm4, %v5823_v5, %v5887_v1  ;;  %v5792_v50 = vpop.permute.xlu0 %5791 }
 0x460   : > { %vm5858_vm7 = vcmp.gt.f32.partialorder %v5826_v17, 0.0  ;;  %v5890_v34 = vmul.f32 0.01, %v5826_v17  ;;  %v5536_v61 = vpop.f32.mrb[136].mxu1  ;;  %v5920_v59 = vsel %vm5856_vm5, %v5824_v63, %v5888_v16 }
 0x461   : > { %v5921_v45 = vsel %vm5857_vm6, %v5825_v18, %v5889_v19  ;;  %v5699_v11 = vmul.f32 %v9887_v60, %v5536_v61  ;;  %v5538_v46 = vpop.f32.mrb[137].mxu1 }
 0x462   : > { %v5700_v55 = vmul.f32 %v9887_v60, %v5538_v46  ;;  %v5540_v41 = vpop.f32.mrb[138].mxu1  ;;  %v5922_v25 = vsel %vm5858_vm7, %v5826_v17, %v5890_v34  ;;  %v5952_v57 = vpack.c.bf16 %v5921_v45, %v5919_v37 }
 0x463   : > { %v5827_v52 = vadd.f32 %v9891_v8, %v5699_v11  ;;  %v5701_v54 = vmul.f32 %v9889_v31, %v5540_v41  ;;  %v5542_v4 = vpop.f32.mrb[139].mxu1  ;;  %v5953_v36 = vpack.c.bf16 %v5922_v25, %v5920_v59 }
 0x464   : > { %v5828_v33 = vadd.f32 %v9891_v8, %v5700_v55  ;;  %v5702_v51 = vmul.f32 %v9889_v31, %v5542_v4 }
 0x465   : > { %v5891_v39 = vmul.f32 0.01, %v5827_v52  ;;  %v5829_v27 = vadd.f32 %v9893_v26, %v5701_v54  ;;  %5996 = vmatprep.subr.bf16.mxu1 %v5953_v36  ;;  %vm5859_vm8 = vcmp.gt.f32.partialorder %v5827_v52, 0.0 }
 0x466   : > { %v5892_v60 = vmul.f32 0.01, %v5828_v33  ;;  %v5830_v3 = vadd.f32 %v9893_v26, %v5702_v51  ;;  %5997 = vmatpush1.bf16.msra.mxu1 %v5952_v57  ;;  %vm5860_vm9 = vcmp.gt.f32.partialorder %v5828_v33, 0.0  ;;  %v5674_v57 = vpop.permute.xlu0 %5673 }
 0x467   : > { %vm5861_vm10 = vcmp.gt.f32.partialorder %v5829_v27, 0.0  ;;  %v5893_v42 = vmul.f32 0.01, %v5829_v27  ;;  %v5923_v8 = vsel %vm5859_vm8, %v5827_v52, %v5891_v39 }
 0x468   : > { %vm5862_vm11 = vcmp.gt.f32.partialorder %v5830_v3, 0.0  ;;  %v5894_v56 = vmul.f32 0.01, %v5830_v3  ;;  %v5546_v38 = vpop.f32.mrb[140].mxu1  ;;  %v5924_v7 = vsel %vm5860_vm9, %v5828_v33, %v5892_v60 }
 0x469   : > { %v5925_v49 = vsel %vm5861_vm10, %v5829_v27, %v5893_v42  ;;  %v5703_v31 = vmul.f32 %v9895_v53, %v5546_v38  ;;  %v5548_v10 = vpop.f32.mrb[141].mxu1 }
 0x46a   : > { %v5704_v58 = vmul.f32 %v9895_v53, %v5548_v10  ;;  %v5550_v62 = vpop.f32.mrb[142].mxu1  ;;  %v5926_v47 = vsel %vm5862_vm11, %v5830_v3, %v5894_v56  ;;  %v5954_v43 = vpack.c.bf16 %v5925_v49, %v5923_v8  ;;  %v5669_v53 = vpop.permute.xlu1 %5668 }
 0x46b   : > { %v5831_v26 = vadd.f32 %v9899_v0, %v5703_v31  ;;  %v5705_v2 = vmul.f32 %v9897_v29, %v5550_v62  ;;  %v5552_v21 = vpop.f32.mrb[143].mxu1  ;;  %v5955_v23 = vpack.c.bf16 %v5926_v47, %v5924_v7 }
 0x46c   : > { %v5832_v20 = vadd.f32 %v9899_v0, %v5704_v58  ;;  %v5706_v13 = vmul.f32 %v9897_v29, %v5552_v21  ;;  %v5802_v58 = vpop.permute.xlu0 %5801 }
 0x46d   : > { %v5895_v6 = vmul.f32 0.01, %v5831_v26  ;;  %v5833_v40 = vadd.f32 %v9901_v15, %v5705_v2  ;;  %5998 = vmatprep.subr.bf16.mxu1 %v5955_v23  ;;  %vm5863_vm12 = vcmp.gt.f32.partialorder %v5831_v26, 0.0 }
 0x46e   : > { %v5896_v30 = vmul.f32 0.01, %v5832_v20  ;;  %v5834_v32 = vadd.f32 %v9901_v15, %v5706_v13  ;;  %5999 = vmatpush1.bf16.msra.mxu1 %v5954_v43  ;;  %vm5864_vm13 = vcmp.gt.f32.partialorder %v5832_v20, 0.0  ;;  %v5797_v45 = vpop.permute.xlu1 %5796 }
 0x46f   : > { %vm5865_vm14 = vcmp.gt.f32.partialorder %v5833_v40, 0.0  ;;  %v5897_v5 = vmul.f32 0.01, %v5833_v40  ;;  %v5927_v9 = vsel %vm5863_vm12, %v5831_v26, %v5895_v6 }
 0x470   : > { %vm5866_vm15 = vcmp.gt.f32.partialorder %v5834_v32, 0.0  ;;  %v5898_v28 = vmul.f32 0.01, %v5834_v32  ;;  %v5556_v48 = vpop.f32.mrb[144].mxu1  ;;  %v5928_v16 = vsel %vm5864_vm13, %v5832_v20, %v5896_v30 }
 0x471   : > { %v5929_v0 = vsel %vm5865_vm14, %v5833_v40, %v5897_v5  ;;  %v5707_v29 = vmul.f32 %v9903_v22, %v5556_v48  ;;  %v5558_v63 = vpop.f32.mrb[145].mxu1 }
 0x472   : > { %v5708_v1 = vmul.f32 %v9903_v22, %v5558_v63  ;;  %v5560_v18 = vpop.f32.mrb[146].mxu1  ;;  %v5930_v17 = vsel %vm5866_vm15, %v5834_v32, %v5898_v28  ;;  %v5956_v19 = vpack.c.bf16 %v5929_v0, %v5927_v9  ;;  %v5679_v39 = vpop.permute.xlu1 %5678 }
 0x473   : > { %v5835_v15 = vadd.f32 %v5782_v24, %v5707_v29  ;;  %v5709_v34 = vmul.f32 %v9906_v14, %v5560_v18  ;;  %v5562_v61 = vpop.f32.mrb[147].mxu1  ;;  %v5957_v37 = vpack.c.bf16 %v5930_v17, %v5928_v16  ;;  %v5684_v9 = vpop.permute.xlu0 %5683 }
 0x474   : > { %v5836_v11 = vadd.f32 %v5782_v24, %v5708_v1  ;;  %v5710_v46 = vmul.f32 %v9906_v14, %v5562_v61 }
 0x475   : > { %v5899_v55 = vmul.f32 0.01, %v5835_v15  ;;  %v5837_v41 = vadd.f32 %v5787_v35, %v5709_v34  ;;  %6000 = vmatprep.subr.bf16.mxu1 %v5957_v37  ;;  %vm5867_vm0 = vcmp.gt.f32.partialorder %v5835_v15, 0.0 }
 0x476   : > { %v5900_v59 = vmul.f32 0.01, %v5836_v11  ;;  %v5838_v25 = vadd.f32 %v5787_v35, %v5710_v46  ;;  %6001 = vmatpush1.bf16.msra.mxu1 %v5956_v19  ;;  %vm5868_vm1 = vcmp.gt.f32.partialorder %v5836_v11, 0.0  ;;  %v5807_v43 = vpop.permute.xlu1 %5806 }
 0x477   : > { %vm5869_vm2 = vcmp.gt.f32.partialorder %v5837_v41, 0.0  ;;  %v5901_v22 = vmul.f32 0.01, %v5837_v41  ;;  %v5931_v4 = vsel %vm5867_vm0, %v5835_v15, %v5899_v55 }
 0x478   : > { %vm5870_vm3 = vcmp.gt.f32.partialorder %v5838_v25, 0.0  ;;  %v5902_v52 = vmul.f32 0.01, %v5838_v25  ;;  %v5566_v54 = vpop.f32.mrb[148].mxu1  ;;  %v5932_v24 = vsel %vm5868_vm1, %v5836_v11, %v5900_v59  ;;  %v5812_v11 = vpop.permute.xlu0 %5811 }
 0x479   : > { %v5933_v36 = vsel %vm5869_vm2, %v5837_v41, %v5901_v22  ;;  %v5711_v33 = vmul.f32 %v5664_v44, %v5566_v54  ;;  %v5568_v51 = vpop.f32.mrb[149].mxu1 }
 0x47a   : > { %v5712_v14 = vmul.f32 %v5664_v44, %v5568_v51  ;;  %v5570_v27 = vpop.f32.mrb[150].mxu1  ;;  %v5934_v60 = vsel %vm5870_vm3, %v5838_v25, %v5902_v52  ;;  %v5958_v3 = vpack.c.bf16 %v5933_v36, %v5931_v4  ;;  %v5689_v1 = vpop.permute.xlu1 %5688 }
 0x47b   : > { %v5839_v42 = vadd.f32 %v5792_v50, %v5711_v33  ;;  %v5713_v35 = vmul.f32 %v5669_v53, %v5570_v27  ;;  %v5572_v56 = vpop.f32.mrb[151].mxu1  ;;  %v5959_v38 = vpack.c.bf16 %v5934_v60, %v5932_v24 }
 0x47c   : > { %v5840_v8 = vadd.f32 %v5792_v50, %v5712_v14  ;;  %v5714_v49 = vmul.f32 %v5669_v53, %v5572_v56 }
 0x47d   : > { %v5903_v31 = vmul.f32 0.01, %v5839_v42  ;;  %v5841_v10 = vadd.f32 %v5797_v45, %v5713_v35  ;;  %6002 = vmatprep.subr.bf16.mxu1 %v5959_v38  ;;  %vm5871_vm4 = vcmp.gt.f32.partialorder %v5839_v42, 0.0 }
 0x47e   : > { %v5904_v62 = vmul.f32 0.01, %v5840_v8  ;;  %v5842_v7 = vadd.f32 %v5797_v45, %v5714_v49  ;;  %6003 = vmatpush1.bf16.msra.mxu1 %v5958_v3  ;;  %vm5872_vm5 = vcmp.gt.f32.partialorder %v5840_v8, 0.0  ;;  %v5817_v4 = vpop.permute.xlu1 %5816  ;;  %v6963_v49 = vld [vmem:[%s9954_s7] sm:$0xff]  }
 0x47f   : > { %vm5873_vm6 = vcmp.gt.f32.partialorder %v5841_v10, 0.0  ;;  %v5905_v47 = vmul.f32 0.01, %v5841_v10  ;;  %v5935_v21 = vsel %vm5871_vm4, %v5839_v42, %v5903_v31  ;;  %v6964_v31 = vld [vmem:[%s9954_s7 + $0x8] ss:$0 sps:$4 sm:$0x33]  }
 0x480   : > { %vm5874_vm7 = vcmp.gt.f32.partialorder %v5842_v7, 0.0  ;;  %v5906_v26 = vmul.f32 0.01, %v5842_v7  ;;  %v5576_v2 = vpop.f32.mrb[152].mxu1  ;;  %v5936_v40 = vsel %vm5872_vm5, %v5840_v8, %v5904_v62 }
 0x481   : > { %v5937_v23 = vsel %vm5873_vm6, %v5841_v10, %v5905_v47  ;;  %v5715_v44 = vmul.f32 %v5674_v57, %v5576_v2  ;;  %v5578_v20 = vpop.f32.mrb[153].mxu1  ;;  %v5972_v10 = vpop.permute.xlu0 %5971 }
 0x482   : > { %v5716_v13 = vmul.f32 %v5674_v57, %v5578_v20  ;;  %v5580_v6 = vpop.f32.mrb[154].mxu1  ;;  %v5938_v53 = vsel %vm5874_vm7, %v5842_v7, %v5906_v26  ;;  %v5960_v30 = vpack.c.bf16 %v5937_v23, %v5935_v21  ;;  %v5977_v47 = vpop.permute.xlu1 %5976 }
 0x483   : > { %v5843_v32 = vadd.f32 %v5802_v58, %v5715_v44  ;;  %v5717_v5 = vmul.f32 %v5679_v39, %v5580_v6  ;;  %v5582_v28 = vpop.f32.mrb[155].mxu1  ;;  %v5961_v48 = vpack.c.bf16 %v5938_v53, %v5936_v40 }
 0x484   : > { %v5844_v0 = vadd.f32 %v5802_v58, %v5716_v13  ;;  %v5718_v29 = vmul.f32 %v5679_v39, %v5582_v28 }
 0x485   : > { %v5907_v63 = vmul.f32 0.01, %v5843_v32  ;;  %v5845_v50 = vadd.f32 %v5807_v43, %v5717_v5  ;;  %6004 = vmatprep.subr.bf16.mxu1 %v5961_v48  ;;  %vm5875_vm8 = vcmp.gt.f32.partialorder %v5843_v32, 0.0  ;;  %v5982_v23 = vpop.permute.xlu0 %5981 }
 0x486   : > { %v5908_v18 = vmul.f32 0.01, %v5844_v0  ;;  %v5846_v16 = vadd.f32 %v5807_v43, %v5718_v29  ;;  %6005 = vmatpush1.bf16.msra.mxu1 %v5960_v30  ;;  %vm5876_vm9 = vcmp.gt.f32.partialorder %v5844_v0, 0.0 }
 0x487   : > { %vm5877_vm10 = vcmp.gt.f32.partialorder %v5845_v50, 0.0  ;;  %v5909_v17 = vmul.f32 0.01, %v5845_v50  ;;  %v5939_v34 = vsel %vm5875_vm8, %v5843_v32, %v5907_v63 }
 0x488   : > { %vm5878_vm11 = vcmp.gt.f32.partialorder %v5846_v16, 0.0  ;;  %v5910_v19 = vmul.f32 0.01, %v5846_v16  ;;  %v5586_v15 = vpop.f32.mrb[156].mxu1  ;;  %v5940_v41 = vsel %vm5876_vm9, %v5844_v0, %v5908_v18 }
 0x489   : > { %v5941_v61 = vsel %vm5877_vm10, %v5845_v50, %v5909_v17  ;;  %v5719_v37 = vmul.f32 %v5684_v9, %v5586_v15  ;;  %v5588_v45 = vpop.f32.mrb[157].mxu1 }
 0x48a   : > { %v5720_v46 = vmul.f32 %v5684_v9, %v5588_v45  ;;  %v5590_v55 = vpop.f32.mrb[158].mxu1  ;;  %v5942_v59 = vsel %vm5878_vm11, %v5846_v16, %v5910_v19  ;;  %v5962_v25 = vpack.c.bf16 %v5941_v61, %v5939_v34 }
 0x48b   : > { %v5847_v22 = vadd.f32 %v5812_v11, %v5719_v37  ;;  %v5721_v57 = vmul.f32 %v5689_v1, %v5590_v55  ;;  %v5592_v52 = vpop.f32.mrb[159].mxu1  ;;  %v5963_v54 = vpack.c.bf16 %v5942_v59, %v5940_v41 }
 0x48c   : > { %v5848_v36 = vadd.f32 %v5812_v11, %v5720_v46  ;;  %v5722_v33 = vmul.f32 %v5689_v1, %v5592_v52 }
 0x48d   : > { %v5911_v51 = vmul.f32 0.01, %v5847_v22  ;;  %v5849_v39 = vadd.f32 %v5817_v4, %v5721_v57  ;;  %6006 = vmatprep.subr.bf16.mxu1 %v5963_v54  ;;  %vm5879_vm12 = vcmp.gt.f32.partialorder %v5847_v22, 0.0 }
 0x48e   : > { %v5912_v14 = vmul.f32 0.01, %v5848_v36  ;;  %v5850_v27 = vadd.f32 %v5817_v4, %v5722_v33  ;;  %6007 = vmatpush1.bf16.msra.mxu1 %v5962_v25  ;;  %vm5880_vm13 = vcmp.gt.f32.partialorder %v5848_v36, 0.0 }
 0x48f   : > { %vm5881_vm14 = vcmp.gt.f32.partialorder %v5849_v39, 0.0  ;;  %v5913_v24 = vmul.f32 0.01, %v5849_v39  ;;  %v5943_v3 = vsel %vm5879_vm12, %v5847_v22, %v5911_v51 }
 0x490   : > { %vm5882_vm15 = vcmp.gt.f32.partialorder %v5850_v27, 0.0  ;;  %v5914_v60 = vmul.f32 0.01, %v5850_v27  ;;  %v5944_v35 = vsel %vm5880_vm13, %v5848_v36, %v5912_v14 }
 0x491   : > { %v5945_v42 = vsel %vm5881_vm14, %v5849_v39, %v5913_v24 }
 0x492   : > { %v5946_v56 = vsel %vm5882_vm15, %v5850_v27, %v5914_v60  ;;  %v5964_v38 = vpack.c.bf16 %v5945_v42, %v5943_v3 }
 0x493   : > { %v5965_v8 = vpack.c.bf16 %v5946_v56, %v5944_v35 }
 0x495   : > { %6008 = vmatprep.subr.bf16.mxu1 %v5965_v8 }
 0x496   : > { %6009 = vmatpush1.bf16.msra.mxu1 %v5964_v38 }
 0x499   : > { %6027 = vmatmul.mubr.bf16.vlgmr.msra.gmra.mrb[160].mxu1 %v6963_v49 }
 0x49a   : > { %6036 = vmatprep.mubr.bf16.mxu1 %v10267_v12 }
 0x4a1   : > { %6037 = vmatmul.mubr.bf16.gmra.mrb[164].mxu1 %v6964_v31 }
 0x56c   : > { %v6028_v58 = vpop.f32.mrb[160].mxu1 }
 0x56d   : > { %v6029_v62 = vadd.f32 %v6028_v58, %v5972_v10  ;;  %v6030_v7 = vpop.f32.mrb[161].mxu1 }
 0x56e   : > { %v6031_v43 = vadd.f32 %v6030_v7, %v5972_v10  ;;  %v6032_v26 = vpop.f32.mrb[162].mxu1 }
 0x56f   : > { %6045 = vst [vmem:[%s370_s14] sm:$0xff] %v6029_v62  ;;  %v6033_v2 = vadd.f32 %v6032_v26, %v5977_v47  ;;  %v6034_v12 = vpop.f32.mrb[163].mxu1 }
 0x570   : > { %6046 = vst [vmem:[%s370_s14 + $0x8] sm:$0xff] %v6031_v43  ;;  %v6035_v21 = vadd.f32 %v6034_v12, %v5977_v47 }
 0x571   : > { %6047 = vst [vmem:[%s370_s14 + $0x10] sm:$0xff] %v6033_v2 }
 0x572   : > { %6048 = vst [vmem:[%s370_s14 + $0x18] sm:$0xff] %v6035_v21 }
 0x574   : > { %v6038_v44 = vpop.f32.mrb[164].mxu1 }
 0x575   : > { %v6039_v20 = vadd.f32 %v6038_v44, %v5982_v23  ;;  %v6040_v13 = vpop.f32.mrb[165].mxu1 }
 0x576   : > { %v6041_v6 = vadd.f32 %v6040_v13, %v5982_v23  ;;  %v6042_v40 = vpop.f32.mrb[166].mxu1 }
 0x577   : > { %6049 = vst [vmem:[%s370_s14 + $0x20] sm:$0xf] %v6039_v20  ;;  %v6043_v53 = vpop.f32.mrb[167].mxu1 }
 0x578   : > { %6050 = vst [vmem:[%s370_s14 + $0x28] sm:$0xf] %v6041_v6 }
 0x579 PF: > { %s19_s11 = sadd.s32 1, %s6987_s11   ;;  %s10268_s30 = smov %s6983_s10 }
 0x57a   : > { %p16_p5 = scmp.ge.s32.totalorder %s19_s11, 4   ;;  %s10269_s10 = smov %s10271_s12 }
 0x57c   :  { %18 = sbr.rel (!%p16_p5) target bundleno = 2 (0x2), region = 86 }

</bundles_post_ra>
